<compile_context>
chip_gen: v7x
topology: tpu7x:2x2x1
jax: 0.10.0
libtpu: 0.0.40
codegen_flags: <defaults>
</compile_context>

<pallas_src>
import functools
import numpy as np
import jax
import jax.numpy as jnp
from jax import lax
from jax.experimental import pallas as pl
from jax.experimental.pallas import tpu as pltpu

EPS = 1e-5  # PyTorch InstanceNorm2d default


def _round_up(v, m):
    return -(-v // m) * m


def _vmem_capacity_bytes():
    try:
        return int(pltpu.get_tpu_info().vmem_capacity_bytes)
    except Exception:
        return 64 * 1024 * 1024  # conservative: v7x per-core VMEM


def _default_cfg():
    cap = _vmem_capacity_bytes()
    return {
        # per-grid-step streaming footprint budget (x tiles + acc + out tile)
        "tile_budget": max(cap // 16, 1 << 20),
        # whole-sample-output VMEM residency budget (fused single-pass path)
        "fused_budget": cap // 2,
        "vmem_limit": max(int(cap * 0.75), 32 << 20),
    }


# --------------------------------------------------------------------------
# In-kernel helpers.
# --------------------------------------------------------------------------
def _conv_tile(x_ref, w_ref, acc_ref, taps, tr, wp):
    """Folded-tap conv for one row tile.

    x_ref : (n_phase, rows_blk*wp, K) bf16   (K = kw*cin, column taps folded)
    w_ref : (kh, K, cout) bf16
    Accumulates kh matmuls of K depth into the f32 scratch acc_ref and
    returns its value, shape (tr*wp, cout).  All slice starts are static
    multiples of 8 (wp % 8 == 0).
    """
    for wi, (ph, roff) in enumerate(taps):
        lhs = x_ref[ph, pl.ds(roff * wp, tr * wp), :]            # (tr*wp, K)
        part = jnp.dot(lhs, w_ref[wi], preferred_element_type=jnp.float32)
        if wi == 0:
            acc_ref[...] = part
        else:
            acc_ref[...] += part
    return acc_ref[...]


def _valid_mask(t, *, tr, wp, wout, hout, nt):
    """1.0 where the flattened (row, col) position is a valid output pixel."""
    if nt * tr == hout and wout == wp:
        return jnp.ones((tr * wp, 1), jnp.float32)
    ridx = lax.broadcasted_iota(jnp.int32, (tr * wp, 1), 0)
    rows_valid = jnp.clip(hout - t * tr, 0, tr)
    ok = ridx < rows_valid * wp
    if wout != wp:
        ok = ok & ((ridx % wp) < wout)
    return jnp.where(ok, 1.0, 0.0)


def _update_stats(acc, mask, t, s1_ref, s2_ref, sh_ref, tile0_inv):
    """Streaming per-channel sum / shifted sum-of-squares (shift = tile-0 mean)."""
    @pl.when(t == 0)
    def _init():
        sh_ref[...] = jnp.sum(acc * mask, axis=0, keepdims=True) * tile0_inv
        s1_ref[...] = jnp.zeros_like(s1_ref)
        s2_ref[...] = jnp.zeros_like(s2_ref)

    yc = (acc - sh_ref[...]) * mask
    s1_ref[...] += jnp.sum(yc, axis=0, keepdims=True)
    s2_ref[...] += jnp.sum(yc * yc, axis=0, keepdims=True)


def _mean_scale(s1_ref, s2_ref, sh_ref, inv_cnt):
    d = s1_ref[...] * inv_cnt
    mean = sh_ref[...] + d
    var = jnp.maximum(s2_ref[...] * inv_cnt - d * d, 0.0)
    return mean, lax.rsqrt(var + EPS)


# Fused path: conv row tiles stream in, whole-sample output stays resident in
# VMEM (revisited across t); stats streamed; in-place normalize at the last t.
def _fused_kernel(x_ref, w_ref, o_ref, acc_ref, s1_ref, s2_ref, sh_ref, *,
                  taps, tr, wp, wout, hout, nt, inv_cnt, tile0_inv):
    t = pl.program_id(1)
    acc = _conv_tile(x_ref, w_ref, acc_ref, taps, tr, wp)
    mask = _valid_mask(t, tr=tr, wp=wp, wout=wout, hout=hout, nt=nt)
    _update_stats(acc, mask, t, s1_ref, s2_ref, sh_ref, tile0_inv)

    off = pl.multiple_of(t * (tr * wp), 8)
    o_ref[pl.ds(off, tr * wp), :] = acc.astype(o_ref.dtype)     # raw (VMEM only)

    @pl.when(t == nt - 1)
    def _finalize():
        mean, scale = _mean_scale(s1_ref, s2_ref, sh_ref, inv_cnt)

        def body(tt, carry):
            o2 = pl.multiple_of(tt * (tr * wp), 8)
            y = o_ref[pl.ds(o2, tr * wp), :].astype(jnp.float32)
            o_ref[pl.ds(o2, tr * wp), :] = jnp.maximum(
                (y - mean) * scale, 0.0).astype(o_ref.dtype)
            return carry

        lax.fori_loop(0, nt, body, 0)


# Fallback pass 1: conv + streaming stats only (no raw writeback to HBM).
def _stats_kernel(x_ref, w_ref, mean_ref, scale_ref,
                  acc_ref, s1_ref, s2_ref, sh_ref, *,
                  taps, tr, wp, wout, hout, nt, inv_cnt, tile0_inv):
    t = pl.program_id(1)
    acc = _conv_tile(x_ref, w_ref, acc_ref, taps, tr, wp)
    mask = _valid_mask(t, tr=tr, wp=wp, wout=wout, hout=hout, nt=nt)
    _update_stats(acc, mask, t, s1_ref, s2_ref, sh_ref, tile0_inv)

    @pl.when(t == nt - 1)
    def _finalize():
        mean, scale = _mean_scale(s1_ref, s2_ref, sh_ref, inv_cnt)
        mean_ref[...] = mean
        scale_ref[...] = scale


# Fallback pass 2: recompute the conv tile and normalize + ReLU directly.
def _norm_kernel(x_ref, w_ref, mean_ref, scale_ref, o_ref, acc_ref, *,
                 taps, tr, wp):
    acc = _conv_tile(x_ref, w_ref, acc_ref, taps, tr, wp)
    o_ref[...] = jnp.maximum(
        (acc - mean_ref[...]) * scale_ref[...], 0.0).astype(o_ref.dtype)


# --------------------------------------------------------------------------
# Host-side layout: fold column taps into channels, split row stride phases,
# and cut halo'd non-overlapping row tiles (row-slab streaming).
# --------------------------------------------------------------------------
def _build_tiles(x, kh, kw, stride, pad, hout, wout, wp, tr, nt):
    """Returns (n, nt, n_phase, rows_blk*wp, kw*cin) bf16 tiles, zero padded."""
    n, h, wsp, cin = x.shape
    xb = x.astype(jnp.bfloat16)
    K = kw * cin
    if stride == 1:
        NR = max(nt * tr + kh - 1, h + 2 * pad)
        NC = max(wp + kw - 1, wsp + 2 * pad)
        canvas = jnp.zeros((n, NR, NC, cin), jnp.bfloat16)
        canvas = canvas.at[:, pad:pad + h, pad:pad + wsp, :].set(xb)
        xw = jnp.concatenate([canvas[:, :, j:j + wp, :] for j in range(kw)],
                             axis=3)                              # (n,NR,wp,K)
        tiles = jnp.stack(
            [xw[:, t * tr: t * tr + tr + kh - 1] for t in range(nt)], axis=1)
        return tiles.reshape(n, nt, 1, (tr + kh - 1) * wp, K)
    else:  # stride == 2, k == 3, pad == 1
        Rp = nt * tr + 1
        NR = max(2 * Rp, h + 2 * pad)
        NC = max(2 * wp + kw - 1, wsp + 2 * pad)
        canvas = jnp.zeros((n, NR, NC, cin), jnp.bfloat16)
        canvas = canvas.at[:, pad:pad + h, pad:pad + wsp, :].set(xb)
        xw = jnp.concatenate(
            [canvas[:, :, j: j + 2 * wp - 1: 2, :] for j in range(kw)], axis=3)
        ph0 = xw[:, 0:2 * Rp:2]                                   # rows 2R
        ph1 = xw[:, 1:2 * Rp:2]                                   # rows 2R+1
        tiles = jnp.stack(
            [jnp.stack([ph0[:, t * tr: t * tr + tr + 1],
                        ph1[:, t * tr: t * tr + tr + 1]], axis=1)
             for t in range(nt)], axis=1)            # (n,nt,2,tr+1,wp,K)
        return tiles.reshape(n, nt, 2, (tr + 1) * wp, K)


def conv_instancenorm_relu(x, w, stride, pad, out_dtype=jnp.bfloat16, cfg=None):
    """Conv2d (bias dropped: cancelled by InstanceNorm) -> InstanceNorm2d -> ReLU.

    x : NHWC activation; w : (cout, cin, kh, kw) PyTorch-layout weight.
    """
    if cfg is None:
        cfg = _default_cfg()
    cout, cin, kh, kw = w.shape
    n, h, wsp, _ = x.shape
    assert stride in (1, 2)
    if stride == 2:
        assert kh == 3 and kw == 3 and pad == 1

    hout = (h + 2 * pad - kh) // stride + 1
    wout = (wsp + 2 * pad - kw) // stride + 1
    wp = _round_up(wout, 8)
    K = kw * cin
    n_phase = 1 if stride == 1 else 2
    halo = (kh - 1) if stride == 1 else 1
    taps = tuple((0, i) for i in range(kh)) if stride == 1 \
        else ((0, 0), (1, 0), (0, 1))

    # Fold the kw column taps into the contraction dim: wf[i, j*cin+c, o].
    wf = jnp.transpose(w, (2, 3, 1, 0)).reshape(kh, K, cout).astype(jnp.bfloat16)

    # Row-tile size: largest tile whose per-step streaming footprint fits.
    per_row = wp * (2 * n_phase * K * 2 + cout * 4 + 2 * cout * 2)
    fixed = 2 * n_phase * halo * wp * K * 2
    tr = int(max(1, min(hout, (cfg["tile_budget"] - fixed) // per_row)))
    nt = pl.cdiv(hout, tr)
    rows_blk = tr + halo

    x_tiles = _build_tiles(x, kh, kw, stride, pad, hout, wout, wp, tr, nt)

    out_bytes = jnp.dtype(out_dtype).itemsize
    fused_bytes = (2 * n_phase * rows_blk * wp * K * 2       # x tiles (x2 bufs)
                   + 2 * nt * tr * wp * cout * out_bytes      # resident output
                   + 2 * kh * K * cout * 2                    # weights
                   + tr * wp * cout * 4 + (1 << 16))          # acc + stats
    inv_cnt = 1.0 / float(hout * wout)
    tile0_inv = 1.0 / float(min(tr, hout) * wout)

    x_spec = pl.BlockSpec(
        (pl.Squeezed(), pl.Squeezed(), n_phase, rows_blk * wp, K),
        lambda i, t: (i, t, 0, 0, 0))
    w_spec = pl.BlockSpec((kh, K, cout), lambda i, t: (0, 0, 0))
    stat_spec = pl.BlockSpec((pl.Squeezed(), 1, cout), lambda i, t: (i, 0, 0))
    scratch_full = ([pltpu.VMEM((tr * wp, cout), jnp.float32)]
                    + [pltpu.VMEM((1, cout), jnp.float32)] * 3)

    def cparams(sem):
        return pltpu.CompilerParams(dimension_semantics=sem,
                                    vmem_limit_bytes=cfg["vmem_limit"])

    if fused_bytes <= cfg["fused_budget"]:
        # Single pass: stream input row tiles, keep the per-sample output
        # resident in VMEM, normalize it in place at the last tile.
        kern = functools.partial(
            _fused_kernel, taps=taps, tr=tr, wp=wp, wout=wout, hout=hout,
            nt=nt, inv_cnt=inv_cnt, tile0_inv=tile0_inv)
        out = pl.pallas_call(
            kern,
            out_shape=jax.ShapeDtypeStruct((n, nt * tr * wp, cout), out_dtype),
            grid=(n, nt),
            in_specs=[x_spec, w_spec],
            out_specs=pl.BlockSpec((pl.Squeezed(), nt * tr * wp, cout),
                                   lambda i, t: (i, 0, 0)),
            scratch_shapes=scratch_full,
            compiler_params=cparams(("parallel", "arbitrary")),
        )(x_tiles, wf)
    else:
        # Two-pass fallback for samples whose output does not fit VMEM:
        # pass 1 = conv + streaming stats; pass 2 = recompute conv + normalize
        # (no raw-activation HBM round trip).
        kern_a = functools.partial(
            _stats_kernel, taps=taps, tr=tr, wp=wp, wout=wout, hout=hout,
            nt=nt, inv_cnt=inv_cnt, tile0_inv=tile0_inv)
        mean, scale = pl.pallas_call(
            kern_a,
            out_shape=(jax.ShapeDtypeStruct((n, 1, cout), jnp.float32),
                       jax.ShapeDtypeStruct((n, 1, cout), jnp.float32)),
            grid=(n, nt),
            in_specs=[x_spec, w_spec],
            out_specs=(stat_spec, stat_spec),
            scratch_shapes=scratch_full,
            compiler_params=cparams(("parallel", "arbitrary")),
        )(x_tiles, wf)

        kern_b = functools.partial(_norm_kernel, taps=taps, tr=tr, wp=wp)
        out = pl.pallas_call(
            kern_b,
            out_shape=jax.ShapeDtypeStruct((n, nt * tr * wp, cout), out_dtype),
            grid=(n, nt),
            in_specs=[x_spec, w_spec, stat_spec, stat_spec],
            out_specs=pl.BlockSpec((pl.Squeezed(), tr * wp, cout),
                                   lambda i, t: (i, t, 0)),
            scratch_shapes=[pltpu.VMEM((tr * wp, cout), jnp.float32)],
            compiler_params=cparams(("parallel", "parallel")),
        )(x_tiles, wf, mean, scale)

    # Drop width/row padding; return NHWC.
    return out.reshape(n, nt * tr, wp, cout)[:, :hout, :wout, :]


# --------------------------------------------------------------------------
# Encoder wrapper (NCHW in / NCHW out, like the PyTorch module).
# --------------------------------------------------------------------------
def init_encoder_params(input_nc, key):
    ks = jax.random.split(key, 6)

    def wb(kw_, kb_, cout, cin, k):
        w = 0.05 * jax.random.normal(kw_, (cout, cin, k, k), dtype=jnp.float32)
        b = 0.05 * jax.random.normal(kb_, (cout,), dtype=jnp.float32)
        return w, b

    return (wb(ks[0], ks[1], 64, input_nc, 7),
            wb(ks[2], ks[3], 128, 64, 3),
            wb(ks[4], ks[5], 256, 128, 3))


def encoder_forward(x_nchw, params, cfg=None):
    (w1, _b1), (w2, _b2), (w3, _b3) = params
    if cfg is None:
        cfg = _default_cfg()
    # Conv biases are intentionally not applied: a per-channel constant is
    # exactly cancelled by the following InstanceNorm2d(affine=False).
    x = jnp.transpose(x_nchw, (0, 2, 3, 1))
    x = conv_instancenorm_relu(x, w1, 1, 3, jnp.bfloat16, cfg)
    x = conv_instancenorm_relu(x, w2, 2, 1, jnp.bfloat16, cfg)
    x = conv_instancenorm_relu(x, w3, 2, 1, jnp.float32, cfg)
    return jnp.transpose(x, (0, 3, 1, 2))


# ---------------- reference (plain JAX, f32, with bias) --------------------
def _ref_layer(x, w, b, stride, pad):
    w_hwio = jnp.transpose(w, (2, 3, 1, 0))
    y = lax.conv_general_dilated(
        x, w_hwio, (stride, stride), ((pad, pad), (pad, pad)),
        dimension_numbers=("NHWC", "HWIO", "NHWC"))
    y = y + b.reshape(1, 1, 1, -1)
    mean = jnp.mean(y, axis=(1, 2), keepdims=True)
    var = jnp.mean(jnp.square(y - mean), axis=(1, 2), keepdims=True)
    return jnp.maximum((y - mean) * lax.rsqrt(var + EPS), 0.0)


def encoder_reference(x_nchw, params):
    (w1, b1), (w2, b2), (w3, b3) = params
    x = jnp.transpose(x_nchw, (0, 2, 3, 1)).astype(jnp.float32)
    x = _ref_layer(x, w1, b1, 1, 3)
    x = _ref_layer(x, w2, b2, 2, 1)
    x = _ref_layer(x, w3, b3, 2, 1)
    return jnp.transpose(x, (0, 3, 1, 2))


if __name__ == "__main__":
    key = jax.random.PRNGKey(0)
    k_x, k_p = jax.random.split(key)

    batch, input_nc, spatial = 2, 4, 16
    x = jax.random.normal(k_x, (batch, input_nc, spatial, spatial),
                          dtype=jnp.float32)
    params = init_encoder_params(input_nc, k_p)

    ref = jax.block_until_ready(encoder_reference(x, params))

    def check(out, tag):
        out = jax.block_until_ready(out)
        assert out.shape == (batch, 256, spatial // 4, spatial // 4), (tag, out.shape)
        err = float(jnp.max(jnp.abs(out - ref)))
        rel = float(jnp.linalg.norm((out - ref).ravel()) /
                    jnp.linalg.norm(ref.ravel()))
        assert np.isfinite(err) and err < 0.2 and rel < 0.05, (tag, err, rel)

    cap = _vmem_capacity_bytes()
    vlim = max(int(cap * 0.75), 32 << 20)

    # 1) default: fused single-pass path (whole-sample output resident in VMEM).
    check(encoder_forward(x, params), "fused")
    # 2) tiny row tiles, still fused: exercises multi-tile streaming stats and
    #    in-place normalization over a revisited output block.
    cfg_small = {"tile_budget": 32 * 1024, "fused_budget": cap // 2,
                 "vmem_limit": vlim}
    check(encoder_forward(x, params, cfg_small), "fused_multitile")
    # 3) two-pass fallback (stats + recompute-normalize), as used when the
    #    per-sample output would not fit VMEM at realistic image sizes.
    cfg_tiled = {"tile_budget": 32 * 1024, "fused_budget": 0,
                 "vmem_limit": vlim}
    check(encoder_forward(x, params, cfg_tiled), "tiled")

    print("KERNEL_OK")
</pallas_src>

<mosaic_0001>
module attributes {stable_mosaic.version = 11 : i64} {
  func.func @_fused_kernel(%arg0: i32, %arg1: i32, %arg2: memref<1x1x1x352x28xbf16, #tpu.memory_space<vmem>>, %arg3: memref<7x28x64xbf16, #tpu.memory_space<vmem>>, %arg4: memref<1x256x64xbf16, #tpu.memory_space<vmem>>, %arg5: memref<256x64xf32, #tpu.memory_space<vmem>>, %arg6: memref<1x64xf32, #tpu.memory_space<vmem>>, %arg7: memref<1x64xf32, #tpu.memory_space<vmem>>, %arg8: memref<1x64xf32, #tpu.memory_space<vmem>>) attributes {dimension_semantics = [#tpu.dimension_semantics<parallel>, #tpu.dimension_semantics<arbitrary>], iteration_bounds = array<i64: 2, 1>, scalar_prefetch = 0 : i64, scratch_operands = 4 : i64, tpu.core_type = #tpu.core_type<tc>, window_params = [{transform_indices = @transform_0, window_bounds = array<i64: 1, 1, 1, 352, 28>}, {pipeline_mode = #tpu.pipeline_mode<synchronous>, transform_indices = @transform_1, window_bounds = array<i64: 7, 28, 64>}, {transform_indices = @transform_2, window_bounds = array<i64: 1, 256, 64>}]} {
    %c0 = arith.constant 0 : index
    %c0_0 = arith.constant 0 : index
    %c0_1 = arith.constant 0 : index
    %c0_2 = arith.constant 0 : index
    %c0_3 = arith.constant 0 : index
    %0 = vector.load %arg2[%c0, %c0_0, %c0_1, %c0_2, %c0_3] : memref<1x1x1x352x28xbf16, #tpu.memory_space<vmem>>, vector<1x1x1x256x28xbf16>
    %1 = vector.shape_cast %0 : vector<1x1x1x256x28xbf16> to vector<256x28xbf16>
    %c0_4 = arith.constant 0 : index
    %c0_5 = arith.constant 0 : index
    %c0_6 = arith.constant 0 : index
    %2 = vector.load %arg3[%c0_4, %c0_5, %c0_6] : memref<7x28x64xbf16, #tpu.memory_space<vmem>>, vector<1x28x64xbf16>
    %3 = vector.shape_cast %2 : vector<1x28x64xbf16> to vector<28x64xbf16>
    %cst = arith.constant dense<0.000000e+00> : vector<256x64xf32>
    %4 = tpu.matmul %1, %3, %cst {dimension_numbers = #tpu.dot_dimension_numbers<[1], [0], [0], [1], [0, 0, 1, 1], [], []>} : vector<256x28xbf16>, vector<28x64xbf16>, vector<256x64xf32> -> vector<256x64xf32>
    %c0_7 = arith.constant 0 : index
    %c0_8 = arith.constant 0 : index
    %5 = vector.load %arg5[%c0_7, %c0_8] : memref<256x64xf32, #tpu.memory_space<vmem>>, vector<256x64xf32>
    tpu.vector_store %arg5[%c0_7, %c0_8], %4 {strides = array<i32>} : memref<256x64xf32, #tpu.memory_space<vmem>>, vector<256x64xf32>,
    %c0_9 = arith.constant 0 : index
    %c0_10 = arith.constant 0 : index
    %c0_11 = arith.constant 0 : index
    %c16 = arith.constant 16 : index
    %c0_12 = arith.constant 0 : index
    %6 = vector.load %arg2[%c0_9, %c0_10, %c0_11, %c16, %c0_12] : memref<1x1x1x352x28xbf16, #tpu.memory_space<vmem>>, vector<1x1x1x256x28xbf16>
    %7 = vector.shape_cast %6 : vector<1x1x1x256x28xbf16> to vector<256x28xbf16>
    %c1 = arith.constant 1 : index
    %c0_13 = arith.constant 0 : index
    %c0_14 = arith.constant 0 : index
    %8 = vector.load %arg3[%c1, %c0_13, %c0_14] : memref<7x28x64xbf16, #tpu.memory_space<vmem>>, vector<1x28x64xbf16>
    %9 = vector.shape_cast %8 : vector<1x28x64xbf16> to vector<28x64xbf16>
    %cst_15 = arith.constant dense<0.000000e+00> : vector<256x64xf32>
    %10 = tpu.matmul %7, %9, %cst_15 {dimension_numbers = #tpu.dot_dimension_numbers<[1], [0], [0], [1], [0, 0, 1, 1], [], []>} : vector<256x28xbf16>, vector<28x64xbf16>, vector<256x64xf32> -> vector<256x64xf32>
    %c0_16 = arith.constant 0 : index
    %c0_17 = arith.constant 0 : index
    %11 = vector.load %arg5[%c0_16, %c0_17] : memref<256x64xf32, #tpu.memory_space<vmem>>, vector<256x64xf32>
    %12 = arith.addf %11, %10 : vector<256x64xf32>
    %c0_18 = arith.constant 0 : index
    %c0_19 = arith.constant 0 : index
    %13 = vector.load %arg5[%c0_18, %c0_19] : memref<256x64xf32, #tpu.memory_space<vmem>>, vector<256x64xf32>
    tpu.vector_store %arg5[%c0_18, %c0_19], %12 {strides = array<i32>} : memref<256x64xf32, #tpu.memory_space<vmem>>, vector<256x64xf32>,
    %c0_20 = arith.constant 0 : index
    %c0_21 = arith.constant 0 : index
    %c0_22 = arith.constant 0 : index
    %c32 = arith.constant 32 : index
    %c0_23 = arith.constant 0 : index
    %14 = vector.load %arg2[%c0_20, %c0_21, %c0_22, %c32, %c0_23] : memref<1x1x1x352x28xbf16, #tpu.memory_space<vmem>>, vector<1x1x1x256x28xbf16>
    %15 = vector.shape_cast %14 : vector<1x1x1x256x28xbf16> to vector<256x28xbf16>
    %c2 = arith.constant 2 : index
    %c0_24 = arith.constant 0 : index
    %c0_25 = arith.constant 0 : index
    %16 = vector.load %arg3[%c2, %c0_24, %c0_25] : memref<7x28x64xbf16, #tpu.memory_space<vmem>>, vector<1x28x64xbf16>
    %17 = vector.shape_cast %16 : vector<1x28x64xbf16> to vector<28x64xbf16>
    %cst_26 = arith.constant dense<0.000000e+00> : vector<256x64xf32>
    %18 = tpu.matmul %15, %17, %cst_26 {dimension_numbers = #tpu.dot_dimension_numbers<[1], [0], [0], [1], [0, 0, 1, 1], [], []>} : vector<256x28xbf16>, vector<28x64xbf16>, vector<256x64xf32> -> vector<256x64xf32>
    %c0_27 = arith.constant 0 : index
    %c0_28 = arith.constant 0 : index
    %19 = vector.load %arg5[%c0_27, %c0_28] : memref<256x64xf32, #tpu.memory_space<vmem>>, vector<256x64xf32>
    %20 = arith.addf %19, %18 : vector<256x64xf32>
    %c0_29 = arith.constant 0 : index
    %c0_30 = arith.constant 0 : index
    %21 = vector.load %arg5[%c0_29, %c0_30] : memref<256x64xf32, #tpu.memory_space<vmem>>, vector<256x64xf32>
    tpu.vector_store %arg5[%c0_29, %c0_30], %20 {strides = array<i32>} : memref<256x64xf32, #tpu.memory_space<vmem>>, vector<256x64xf32>,
    %c0_31 = arith.constant 0 : index
    %c0_32 = arith.constant 0 : index
    %c0_33 = arith.constant 0 : index
    %c48 = arith.constant 48 : index
    %c0_34 = arith.constant 0 : index
    %22 = vector.load %arg2[%c0_31, %c0_32, %c0_33, %c48, %c0_34] : memref<1x1x1x352x28xbf16, #tpu.memory_space<vmem>>, vector<1x1x1x256x28xbf16>
    %23 = vector.shape_cast %22 : vector<1x1x1x256x28xbf16> to vector<256x28xbf16>
    %c3 = arith.constant 3 : index
    %c0_35 = arith.constant 0 : index
    %c0_36 = arith.constant 0 : index
    %24 = vector.load %arg3[%c3, %c0_35, %c0_36] : memref<7x28x64xbf16, #tpu.memory_space<vmem>>, vector<1x28x64xbf16>
    %25 = vector.shape_cast %24 : vector<1x28x64xbf16> to vector<28x64xbf16>
    %cst_37 = arith.constant dense<0.000000e+00> : vector<256x64xf32>
    %26 = tpu.matmul %23, %25, %cst_37 {dimension_numbers = #tpu.dot_dimension_numbers<[1], [0], [0], [1], [0, 0, 1, 1], [], []>} : vector<256x28xbf16>, vector<28x64xbf16>, vector<256x64xf32> -> vector<256x64xf32>
    %c0_38 = arith.constant 0 : index
    %c0_39 = arith.constant 0 : index
    %27 = vector.load %arg5[%c0_38, %c0_39] : memref<256x64xf32, #tpu.memory_space<vmem>>, vector<256x64xf32>
    %28 = arith.addf %27, %26 : vector<256x64xf32>
    %c0_40 = arith.constant 0 : index
    %c0_41 = arith.constant 0 : index
    %29 = vector.load %arg5[%c0_40, %c0_41] : memref<256x64xf32, #tpu.memory_space<vmem>>, vector<256x64xf32>
    tpu.vector_store %arg5[%c0_40, %c0_41], %28 {strides = array<i32>} : memref<256x64xf32, #tpu.memory_space<vmem>>, vector<256x64xf32>,
    %c0_42 = arith.constant 0 : index
    %c0_43 = arith.constant 0 : index
    %c0_44 = arith.constant 0 : index
    %c64 = arith.constant 64 : index
    %c0_45 = arith.constant 0 : index
    %30 = vector.load %arg2[%c0_42, %c0_43, %c0_44, %c64, %c0_45] : memref<1x1x1x352x28xbf16, #tpu.memory_space<vmem>>, vector<1x1x1x256x28xbf16>
    %31 = vector.shape_cast %30 : vector<1x1x1x256x28xbf16> to vector<256x28xbf16>
    %c4 = arith.constant 4 : index
    %c0_46 = arith.constant 0 : index
    %c0_47 = arith.constant 0 : index
    %32 = vector.load %arg3[%c4, %c0_46, %c0_47] : memref<7x28x64xbf16, #tpu.memory_space<vmem>>, vector<1x28x64xbf16>
    %33 = vector.shape_cast %32 : vector<1x28x64xbf16> to vector<28x64xbf16>
    %cst_48 = arith.constant dense<0.000000e+00> : vector<256x64xf32>
    %34 = tpu.matmul %31, %33, %cst_48 {dimension_numbers = #tpu.dot_dimension_numbers<[1], [0], [0], [1], [0, 0, 1, 1], [], []>} : vector<256x28xbf16>, vector<28x64xbf16>, vector<256x64xf32> -> vector<256x64xf32>
    %c0_49 = arith.constant 0 : index
    %c0_50 = arith.constant 0 : index
    %35 = vector.load %arg5[%c0_49, %c0_50] : memref<256x64xf32, #tpu.memory_space<vmem>>, vector<256x64xf32>
    %36 = arith.addf %35, %34 : vector<256x64xf32>
    %c0_51 = arith.constant 0 : index
    %c0_52 = arith.constant 0 : index
    %37 = vector.load %arg5[%c0_51, %c0_52] : memref<256x64xf32, #tpu.memory_space<vmem>>, vector<256x64xf32>
    tpu.vector_store %arg5[%c0_51, %c0_52], %36 {strides = array<i32>} : memref<256x64xf32, #tpu.memory_space<vmem>>, vector<256x64xf32>,
    %c0_53 = arith.constant 0 : index
    %c0_54 = arith.constant 0 : index
    %c0_55 = arith.constant 0 : index
    %c80 = arith.constant 80 : index
    %c0_56 = arith.constant 0 : index
    %38 = vector.load %arg2[%c0_53, %c0_54, %c0_55, %c80, %c0_56] : memref<1x1x1x352x28xbf16, #tpu.memory_space<vmem>>, vector<1x1x1x256x28xbf16>
    %39 = vector.shape_cast %38 : vector<1x1x1x256x28xbf16> to vector<256x28xbf16>
    %c5 = arith.constant 5 : index
    %c0_57 = arith.constant 0 : index
    %c0_58 = arith.constant 0 : index
    %40 = vector.load %arg3[%c5, %c0_57, %c0_58] : memref<7x28x64xbf16, #tpu.memory_space<vmem>>, vector<1x28x64xbf16>
    %41 = vector.shape_cast %40 : vector<1x28x64xbf16> to vector<28x64xbf16>
    %cst_59 = arith.constant dense<0.000000e+00> : vector<256x64xf32>
    %42 = tpu.matmul %39, %41, %cst_59 {dimension_numbers = #tpu.dot_dimension_numbers<[1], [0], [0], [1], [0, 0, 1, 1], [], []>} : vector<256x28xbf16>, vector<28x64xbf16>, vector<256x64xf32> -> vector<256x64xf32>
    %c0_60 = arith.constant 0 : index
    %c0_61 = arith.constant 0 : index
    %43 = vector.load %arg5[%c0_60, %c0_61] : memref<256x64xf32, #tpu.memory_space<vmem>>, vector<256x64xf32>
    %44 = arith.addf %43, %42 : vector<256x64xf32>
    %c0_62 = arith.constant 0 : index
    %c0_63 = arith.constant 0 : index
    %45 = vector.load %arg5[%c0_62, %c0_63] : memref<256x64xf32, #tpu.memory_space<vmem>>, vector<256x64xf32>
    tpu.vector_store %arg5[%c0_62, %c0_63], %44 {strides = array<i32>} : memref<256x64xf32, #tpu.memory_space<vmem>>, vector<256x64xf32>,
    %c0_64 = arith.constant 0 : index
    %c0_65 = arith.constant 0 : index
    %c0_66 = arith.constant 0 : index
    %c96 = arith.constant 96 : index
    %c0_67 = arith.constant 0 : index
    %46 = vector.load %arg2[%c0_64, %c0_65, %c0_66, %c96, %c0_67] : memref<1x1x1x352x28xbf16, #tpu.memory_space<vmem>>, vector<1x1x1x256x28xbf16>
    %47 = vector.shape_cast %46 : vector<1x1x1x256x28xbf16> to vector<256x28xbf16>
    %c6 = arith.constant 6 : index
    %c0_68 = arith.constant 0 : index
    %c0_69 = arith.constant 0 : index
    %48 = vector.load %arg3[%c6, %c0_68, %c0_69] : memref<7x28x64xbf16, #tpu.memory_space<vmem>>, vector<1x28x64xbf16>
    %49 = vector.shape_cast %48 : vector<1x28x64xbf16> to vector<28x64xbf16>
    %cst_70 = arith.constant dense<0.000000e+00> : vector<256x64xf32>
    %50 = tpu.matmul %47, %49, %cst_70 {dimension_numbers = #tpu.dot_dimension_numbers<[1], [0], [0], [1], [0, 0, 1, 1], [], []>} : vector<256x28xbf16>, vector<28x64xbf16>, vector<256x64xf32> -> vector<256x64xf32>
    %c0_71 = arith.constant 0 : index
    %c0_72 = arith.constant 0 : index
    %51 = vector.load %arg5[%c0_71, %c0_72] : memref<256x64xf32, #tpu.memory_space<vmem>>, vector<256x64xf32>
    %52 = arith.addf %51, %50 : vector<256x64xf32>
    %c0_73 = arith.constant 0 : index
    %c0_74 = arith.constant 0 : index
    %53 = vector.load %arg5[%c0_73, %c0_74] : memref<256x64xf32, #tpu.memory_space<vmem>>, vector<256x64xf32>
    tpu.vector_store %arg5[%c0_73, %c0_74], %52 {strides = array<i32>} : memref<256x64xf32, #tpu.memory_space<vmem>>, vector<256x64xf32>,
    %c0_75 = arith.constant 0 : index
    %c0_76 = arith.constant 0 : index
    %54 = vector.load %arg5[%c0_75, %c0_76] : memref<256x64xf32, #tpu.memory_space<vmem>>, vector<256x64xf32>
    %cst_77 = arith.constant 1.000000e+00 : f32
    %55 = vector.broadcast %cst_77 : f32 to vector<256x1xf32>
    %c0_i32 = arith.constant 0 : i32
    %56 = arith.cmpi eq, %arg1, %c0_i32 : i32
    %57 = arith.extui %56 : i1 to i32
    %c0_i32_78 = arith.constant 0 : i32
    %58 = arith.cmpi ne, %57, %c0_i32_78 : i32
    scf.if %58 {
      %85 = vector.broadcast %55 : vector<256x1xf32> to vector<256x64xf32>
      %86 = arith.mulf %54, %85 : vector<256x64xf32>
      %cst_95 = arith.constant dense<0.000000e+00> : vector<64xf32>
      %87 = vector.multi_reduction <add>, %86, %cst_95 [0] : vector<256x64xf32> to vector<64xf32>
      %88 = vector.shape_cast %87 : vector<64xf32> to vector<1x64xf32>
      %cst_96 = arith.constant 3.906250e-03 : f32
      %89 = vector.broadcast %cst_96 : f32 to vector<1x64xf32>
      %90 = arith.mulf %88, %89 : vector<1x64xf32>
      %c0_97 = arith.constant 0 : index
      %c0_98 = arith.constant 0 : index
      %91 = vector.load %arg8[%c0_97, %c0_98] : memref<1x64xf32, #tpu.memory_space<vmem>>, vector<1x64xf32>
      tpu.vector_store %arg8[%c0_97, %c0_98], %90 {strides = array<i32>} : memref<1x64xf32, #tpu.memory_space<vmem>>, vector<1x64xf32>,
      %cst_99 = arith.constant 0.000000e+00 : f32
      %92 = vector.broadcast %cst_99 : f32 to vector<1x64xf32>
      %c0_100 = arith.constant 0 : index
      %c0_101 = arith.constant 0 : index
      %93 = vector.load %arg6[%c0_100, %c0_101] : memref<1x64xf32, #tpu.memory_space<vmem>>, vector<1x64xf32>
      tpu.vector_store %arg6[%c0_100, %c0_101], %92 {strides = array<i32>} : memref<1x64xf32, #tpu.memory_space<vmem>>, vector<1x64xf32>,
      %cst_102 = arith.constant 0.000000e+00 : f32
      %94 = vector.broadcast %cst_102 : f32 to vector<1x64xf32>
      %c0_103 = arith.constant 0 : index
      %c0_104 = arith.constant 0 : index
      %95 = vector.load %arg7[%c0_103, %c0_104] : memref<1x64xf32, #tpu.memory_space<vmem>>, vector<1x64xf32>
      tpu.vector_store %arg7[%c0_103, %c0_104], %94 {strides = array<i32>} : memref<1x64xf32, #tpu.memory_space<vmem>>, vector<1x64xf32>,
    } else {
    }
    %c0_79 = arith.constant 0 : index
    %c0_80 = arith.constant 0 : index
    %59 = vector.load %arg8[%c0_79, %c0_80] : memref<1x64xf32, #tpu.memory_space<vmem>>, vector<1x64xf32>
    %60 = vector.broadcast %59 : vector<1x64xf32> to vector<256x64xf32>
    %61 = arith.subf %54, %60 : vector<256x64xf32>
    %62 = vector.broadcast %55 : vector<256x1xf32> to vector<256x64xf32>
    %63 = arith.mulf %61, %62 : vector<256x64xf32>
    %c0_81 = arith.constant 0 : index
    %c0_82 = arith.constant 0 : index
    %64 = vector.load %arg6[%c0_81, %c0_82] : memref<1x64xf32, #tpu.memory_space<vmem>>, vector<1x64xf32>
    %cst_83 = arith.constant dense<0.000000e+00> : vector<64xf32>
    %65 = vector.multi_reduction <add>, %63, %cst_83 [0] : vector<256x64xf32> to vector<64xf32>
    %66 = vector.shape_cast %65 : vector<64xf32> to vector<1x64xf32>
    %67 = arith.addf %64, %66 : vector<1x64xf32>
    %c0_84 = arith.constant 0 : index
    %c0_85 = arith.constant 0 : index
    %68 = vector.load %arg6[%c0_84, %c0_85] : memref<1x64xf32, #tpu.memory_space<vmem>>, vector<1x64xf32>
    tpu.vector_store %arg6[%c0_84, %c0_85], %67 {strides = array<i32>} : memref<1x64xf32, #tpu.memory_space<vmem>>, vector<1x64xf32>,
    %c0_86 = arith.constant 0 : index
    %c0_87 = arith.constant 0 : index
    %69 = vector.load %arg7[%c0_86, %c0_87] : memref<1x64xf32, #tpu.memory_space<vmem>>, vector<1x64xf32>
    %70 = arith.mulf %63, %63 : vector<256x64xf32>
    %cst_88 = arith.constant dense<0.000000e+00> : vector<64xf32>
    %71 = vector.multi_reduction <add>, %70, %cst_88 [0] : vector<256x64xf32> to vector<64xf32>
    %72 = vector.shape_cast %71 : vector<64xf32> to vector<1x64xf32>
    %73 = arith.addf %69, %72 : vector<1x64xf32>
    %c0_89 = arith.constant 0 : index
    %c0_90 = arith.constant 0 : index
    %74 = vector.load %arg7[%c0_89, %c0_90] : memref<1x64xf32, #tpu.memory_space<vmem>>, vector<1x64xf32>
    tpu.vector_store %arg7[%c0_89, %c0_90], %73 {strides = array<i32>} : memref<1x64xf32, #tpu.memory_space<vmem>>, vector<1x64xf32>,
    %c256_i32 = arith.constant 256 : i32
    %75 = arith.muli %arg1, %c256_i32 : i32
    %76 = tpu.assume_multiple %75, 8 : i32
    %77 = arith.truncf %54 : vector<256x64xf32> to vector<256x64xbf16>
    %c0_91 = arith.constant 0 : index
    %78 = arith.index_cast %76 : i32 to index
    %c0_92 = arith.constant 0 : index
    %79 = vector.load %arg4[%c0_91, %78, %c0_92] : memref<1x256x64xbf16, #tpu.memory_space<vmem>>, vector<1x256x64xbf16>
    %80 = vector.shape_cast %79 : vector<1x256x64xbf16> to vector<256x64xbf16>
    %81 = vector.shape_cast %77 : vector<256x64xbf16> to vector<1x256x64xbf16>
    tpu.vector_store %arg4[%c0_91, %78, %c0_92], %81 {strides = array<i32>} : memref<1x256x64xbf16, #tpu.memory_space<vmem>>, vector<1x256x64xbf16>,
    %c0_i32_93 = arith.constant 0 : i32
    %82 = arith.cmpi eq, %arg1, %c0_i32_93 : i32
    %83 = arith.extui %82 : i1 to i32
    %c0_i32_94 = arith.constant 0 : i32
    %84 = arith.cmpi ne, %83, %c0_i32_94 : i32
    scf.if %84 {
      %c0_95 = arith.constant 0 : index
      %c0_96 = arith.constant 0 : index
      %85 = vector.load %arg6[%c0_95, %c0_96] : memref<1x64xf32, #tpu.memory_space<vmem>>, vector<1x64xf32>
      %cst_97 = arith.constant 3.906250e-03 : f32
      %86 = vector.broadcast %cst_97 : f32 to vector<1x64xf32>
      %87 = arith.mulf %85, %86 : vector<1x64xf32>
      %c0_98 = arith.constant 0 : index
      %c0_99 = arith.constant 0 : index
      %88 = vector.load %arg8[%c0_98, %c0_99] : memref<1x64xf32, #tpu.memory_space<vmem>>, vector<1x64xf32>
      %89 = arith.addf %88, %87 : vector<1x64xf32>
      %c0_100 = arith.constant 0 : index
      %c0_101 = arith.constant 0 : index
      %90 = vector.load %arg7[%c0_100, %c0_101] : memref<1x64xf32, #tpu.memory_space<vmem>>, vector<1x64xf32>
      %cst_102 = arith.constant 3.906250e-03 : f32
      %91 = vector.broadcast %cst_102 : f32 to vector<1x64xf32>
      %92 = arith.mulf %90, %91 : vector<1x64xf32>
      %93 = arith.mulf %87, %87 : vector<1x64xf32>
      %94 = arith.subf %92, %93 : vector<1x64xf32>
      %cst_103 = arith.constant 0.000000e+00 : f32
      %95 = vector.broadcast %cst_103 : f32 to vector<1x64xf32>
      %96 = arith.maximumf %94, %95 : vector<1x64xf32>
      %cst_104 = arith.constant 9.99999974E-6 : f32
      %97 = vector.broadcast %cst_104 : f32 to vector<1x64xf32>
      %98 = arith.addf %96, %97 : vector<1x64xf32>
      %99 = math.rsqrt %98 : vector<1x64xf32>
      %c0_i32_105 = arith.constant 0 : i32
      %c256_i32_106 = arith.constant 256 : i32
      %100 = arith.muli %c0_i32_105, %c256_i32_106 : i32
      %101 = tpu.assume_multiple %100, 8 : i32
      %c0_107 = arith.constant 0 : index
      %102 = arith.index_cast %101 : i32 to index
      %c0_108 = arith.constant 0 : index
      %103 = vector.load %arg4[%c0_107, %102, %c0_108] : memref<1x256x64xbf16, #tpu.memory_space<vmem>>, vector<1x256x64xbf16>
      %104 = vector.shape_cast %103 : vector<1x256x64xbf16> to vector<256x64xbf16>
      %105 = arith.extf %104 : vector<256x64xbf16> to vector<256x64xf32>
      %106 = vector.broadcast %89 : vector<1x64xf32> to vector<256x64xf32>
      %107 = arith.subf %105, %106 : vector<256x64xf32>
      %108 = vector.broadcast %99 : vector<1x64xf32> to vector<256x64xf32>
      %109 = arith.mulf %107, %108 : vector<256x64xf32>
      %cst_109 = arith.constant 0.000000e+00 : f32
      %110 = vector.broadcast %cst_109 : f32 to vector<256x64xf32>
      %111 = arith.maximumf %109, %110 : vector<256x64xf32>
      %112 = arith.truncf %111 : vector<256x64xf32> to vector<256x64xbf16>
      %c0_110 = arith.constant 0 : index
      %113 = arith.index_cast %101 : i32 to index
      %c0_111 = arith.constant 0 : index
      %114 = vector.load %arg4[%c0_110, %113, %c0_111] : memref<1x256x64xbf16, #tpu.memory_space<vmem>>, vector<1x256x64xbf16>
      %115 = vector.shape_cast %114 : vector<1x256x64xbf16> to vector<256x64xbf16>
      %116 = vector.shape_cast %112 : vector<256x64xbf16> to vector<1x256x64xbf16>
      tpu.vector_store %arg4[%c0_110, %113, %c0_111], %116 {strides = array<i32>} : memref<1x256x64xbf16, #tpu.memory_space<vmem>>, vector<1x256x64xbf16>,
      %c1_i32 = arith.constant 1 : i32
    } else {
    }
    return
  }
  func.func @transform_0(%arg0: i32, %arg1: i32) -> (i32, i32, i32, i32, i32) {
    %c0_i32 = arith.constant 0 : i32
    %c0_i32_0 = arith.constant 0 : i32
    %c0_i32_1 = arith.constant 0 : i32
    %c0_i32_2 = arith.constant 0 : i32
    return %arg0, %arg1, %c0_i32, %c0_i32_0, %c0_i32_1 : i32, i32, i32, i32, i32
  }
  func.func @transform_1(%arg0: i32, %arg1: i32) -> (i32, i32, i32) {
    %c0_i32 = arith.constant 0 : i32
    %c0_i32_0 = arith.constant 0 : i32
    %c0_i32_1 = arith.constant 0 : i32
    %c0_i32_2 = arith.constant 0 : i32
    return %c0_i32, %c0_i32_0, %c0_i32_1 : i32, i32, i32
  }
  func.func @transform_2(%arg0: i32, %arg1: i32) -> (i32, i32, i32) {
    %c0_i32 = arith.constant 0 : i32
    %c0_i32_0 = arith.constant 0 : i32
    %c0_i32_1 = arith.constant 0 : i32
    return %arg0, %c0_i32, %c0_i32_0 : i32, i32, i32
  }
}

</mosaic_0001>

<bundles_post_ra>
// kernel: tpu_custom_call.1
= control target key start
LH: loop header
LB: loop body
LE: loop exit
PB: predicated region body
PF: predicated region fallthrough
CT: control target
= control target key end

     0   :  { %s5138_s9 = smov 0   ;;  %s5140_s10 = smov 0   ;;  %s6262_s0 = inlined_call_operand.vmem [shape: bf16[2,1,1,352,28], index: 0, kind: input, shape index: {}]   ;;  %s6263_s1 = inlined_call_operand.vmem [shape: bf16[7,28,64], index: 1, kind: input, shape index: {}]   ;;  %s6264_s2 = inlined_call_operand.vmem [shape: bf16[2,256,64], index: 2, kind: output, shape index: {}]  }
   0x1   :  { %s5142_s11 = smov 0  }
   0x2 LB: > { %s24_s12 = sadd.s32 1, %s5116_s10  ;;  %p4077_p0 = scmp.ge.s32.totalorder %s5120_s11, 1  ;;  %s5120_s11 = sphi %s5142_s11, %s12_s11   ;;  %s5116_s10 = sphi %s5140_s10, %s6266_s10   ;;  %s5112_s9 = sphi %s5138_s9, %s6265_s9  }
   0x3   : > { %p26_p1 = scmp.ge.s32.totalorder %s24_s12, 2  ;;  %p130_p2 = scmp.lt.s32.totalorder %s5120_s11, 3 }
   0x5   : > { %s6268_s12 = smov (%p26_p1, %s24_s12), 0  ;;  %p131_p3 = pnand %p4077_p0, %p130_p2 }
   0x6   : > { %v4970_v0 = vld [vmem:[%s6263_s1] sm:$0xff] (!%p131_p3)   ;;  %vm347_vm0 = vcmask (!%p131_p3), 1045504   ;;  %v4971_v1 = vld [vmem:[%s6263_s1 + $0x8] sm:$0x3f] (!%p131_p3)   ;;  %p156_p4 = scmp.lt.s32.totalorder (!%p131_p3), %s5112_s9, 1  ;;  %v4974_v3 = vld [vmem:[%s6263_s1 + $0x10] sm:$0xff] (!%p131_p3)  }
   0x7   : > { %134 = sbr.rel (%p131_p3) target bundleno = 649 (0x289), region = 28  ;;  %4932 = vmatprep.subr.bf16.mxu1 (!%p131_p3), %v4970_v0  ;;  %4680 = vmatprep.subr.bf16.mxu0 (!%p131_p3), %v4970_v0  ;;  %v349_v2 = vsel (!%p131_p3), %vm347_vm0, %v4971_v1, 0  ;;  %v4979_v4 = vld [vmem:[%s6263_s1 + $0x20] sm:$0xff] (!%p131_p3)   ;;  %vm298_vm1 = vcmask (!%p131_p3), 228352   ;;  %v4984_v5 = vld [vmem:[%s6263_s1 + $0x18] sm:$0x3f] (!%p131_p3)  }
   0x8   : > { %4934 = vmatpush3.bf16.msra.mxu1 (!%p131_p3), %v4970_v0  ;;  %4681 = vmatpush3.bf16.msra.mxu0 (!%p131_p3), %v4970_v0  ;;  %v4989_v9 = vld [vmem:[%s6263_s1 + $0x28] sm:$0x3f] (!%p131_p3)   ;;  %v722_v12 = vsel (!%p131_p3), %vm347_vm0, %v4984_v5, 0  ;;  %v4994_v13 = vld [vmem:[%s6263_s1 + $0x30] sm:$0xff] (!%p131_p3)   ;;  %v4999_v15 = vld [vmem:[%s6263_s1 + $0x40] sm:$0xff] (!%p131_p3)   ;;  %vm512_vm2 = vcmask (!%p131_p3), 523264  }
   0x9   : > { %4937 = vmatprep.subr.msk.bf16.mxu1 (!%p131_p3), %vm347_vm0, %v4971_v1  ;;  %4936 = vmatprep.subr.msk.bf16.mxu0 (!%p131_p3), %vm347_vm0, %v4971_v1  ;;  %v1158_v18 = vsel (!%p131_p3), %vm347_vm0, %v4989_v9, 0  ;;  %v5012_v32 = vld [vmem:[%s6263_s1 + $0x38] sm:$0x3f] (!%p131_p3)   ;;  %v5245_v35 = vld [vmem:[%s6263_s1 + $0x50] sm:$0xff] (!%p131_p3)   ;;  %v5017_v37 = vld [vmem:[%s6263_s1 + $0x48] sm:$0x3f] (!%p131_p3)  }
   0xa   : > { %v1594_v34 = vsel (!%p131_p3), %vm347_vm0, %v5012_v32, 0  ;;  %v2030_v39 = vsel (!%p131_p3), %vm347_vm0, %v5017_v37, 0  ;;  %v5035_v48 = vld [vmem:[%s6263_s1 + $0x60] sm:$0xff] (!%p131_p3)   ;;  %vm3267_vm3 = vcmask (!%p131_p3), 516096   ;;  %vm3620_vm4 = vcmask (!%p131_p3), 519168  }
   0xc   : > { %4935 = vmatpush3.bf16.msra.mxu1 (!%p131_p3), %v349_v2  ;;  %4683 = vmatpush3.bf16.msra.mxu0 (!%p131_p3), %v349_v2 }
   0xd   : > { %4716 = vmatprep.subr.bf16.mxu1 (!%p131_p3), %v4974_v3  ;;  %4752 = vmatprep.subr.bf16.mxu0 (!%p131_p3), %v4979_v4 }
   0xe   : > { %s6270_s9 = smov (!%p156_p4, %s5112_s9), 1 }
   0xf   : > { %s4944_s21 = smul.u32 176, %s6270_s9 }
  0x11   : > { %s5177_s24 = scalar_lea.vmem %s6262_s0, %s4944_s21  ;;  %s4410_s21 = sshll.u32 %s6270_s9, 7 }
  0x12   : > { %v4972_v6 = vld [vmem:[%s5177_s24 + $0x40] sm:$0xff]   ;;  %v4973_v7 = vld [vmem:[%s5177_s24 + $0x48] sm:$0xff]   ;;  %v4976_v10 = vld [vmem:[%s5177_s24 + $0x50] sm:$0xff]  }
  0x13   : > { %4700 = vmatprep.mubr.msk.bf16.mxu1 %vm298_vm1, %v4972_v6  ;;  %v4975_v8 = vld [vmem:[%s5177_s24] sm:$0xff]   ;;  %v4977_v11 = vld [vmem:[%s5177_s24 + $0x8] sm:$0xff]   ;;  %v4980_v14 = vld [vmem:[%s5177_s24 + $0x10] sm:$0xff]  }
  0x14   : > { %4701 = vmatmul.mubr.msk.bf16.vlgmr.msra.gmra.mrb[0].mxu1 %vm298_vm1, %v4973_v7  ;;  %4684 = vmatprep.mubr.msk.bf16.mxu0 %vm298_vm1, %v4975_v8  ;;  %v4978_v16 = vld [vmem:[%s5177_s24 + $0x58] sm:$0xff]   ;;  %v4981_v17 = vld [vmem:[%s5177_s24 + $0x60] sm:$0xff]   ;;  %v4983_v21 = vld [vmem:[%s5177_s24 + $0x68] sm:$0xff]  }
  0x15   : > { %4717 = vmatpush3.bf16.msra.mxu1 %v4974_v3  ;;  %4704 = vmatprep.mubr.msk.bf16.mxu1 %vm298_vm1, %v4976_v10  ;;  %v4982_v19 = vld [vmem:[%s5177_s24 + $0x18] sm:$0xff]   ;;  %v4985_v20 = vld [vmem:[%s5177_s24 + $0x20] sm:$0xff]   ;;  %v4986_v22 = vld [vmem:[%s5177_s24 + $0x70] sm:$0xff]  }
  0x16   : > { %4938 = vmatprep.subr.msk.bf16.mxu1 %vm347_vm0, %v4984_v5  ;;  %4685 = vmatmul.mubr.msk.bf16.vlgmr.msra.gmra.mrb[0].mxu0 %vm298_vm1, %v4977_v11  ;;  %v4987_v23 = vld [vmem:[%s5177_s24 + $0x28] sm:$0xff]   ;;  %v4990_v24 = vld [vmem:[%s5177_s24 + $0x30] sm:$0xff]   ;;  %v4988_v25 = vld [vmem:[%s5177_s24 + $0x78] sm:$0xff]  }
  0x17   : > { %4753 = vmatpush3.bf16.msra.mxu0 %v4979_v4  ;;  %4688 = vmatprep.mubr.msk.bf16.mxu0 %vm298_vm1, %v4980_v14  ;;  %v4991_v26 = vld [vmem:[%s5177_s24 + $0x8] sm:$0xff]   ;;  %v4992_v27 = vld [vmem:[%s5177_s24 + $0x38] sm:$0xff]   ;;  %v4996_v28 = vld [vmem:[%s5177_s24 + $0x10] sm:$0xff]  }
  0x18   : > { %4939 = vmatprep.subr.msk.bf16.mxu0 %vm347_vm0, %v4989_v9  ;;  %v4993_v29 = vld [vmem:[%s5177_s24 + $0x10] sm:$0xff]   ;;  %v4995_v30 = vld [vmem:[%s5177_s24 + $0x18] sm:$0xff]   ;;  %v5001_v33 = vld [vmem:[%s5177_s24 + $0x20] sm:$0xff]  }
  0x19   : > { %4719 = vmatpush3.bf16.msra.mxu1 %v722_v12  ;;  %v4998_v31 = vld [vmem:[%s5177_s24 + $0x18] sm:$0xff]   ;;  %v4997_v36 = vld [vmem:[%s5177_s24 + $0x20] sm:$0xff]   ;;  %v5000_v38 = vld [vmem:[%s5177_s24 + $0x28] sm:$0xff]  }
  0x1a   : > { %4788 = vmatprep.subr.bf16.mxu1 %v4994_v13  ;;  %v5003_v40 = vld [vmem:[%s5177_s24 + $0x28] sm:$0xff]   ;;  %v5005_v41 = vld [vmem:[%s5177_s24 + $0x30] sm:$0xff]   ;;  %v5004_v43 = vld [vmem:[%s5177_s24 + $0x38] sm:$0xff]  }
  0x1b   : > { %4755 = vmatpush3.bf16.msra.mxu0 %v1158_v18  ;;  %v5002_v42 = vld [vmem:[%s5177_s24 + $0x30] sm:$0xff]   ;;  %v5007_v44 = vld [vmem:[%s5177_s24 + $0x38] sm:$0xff]   ;;  %v5009_v45 = vld [vmem:[%s5177_s24 + $0x40] sm:$0xff]  }
  0x1c   : > { %4705 = vmatmul.mubr.msk.bf16.gmra.mrb[4].mxu1 %vm298_vm1, %v4978_v16  ;;  %4824 = vmatprep.subr.bf16.mxu0 %v4999_v15  ;;  %v5006_v46 = vld [vmem:[%s5177_s24 + $0x40] sm:$0xff]   ;;  %v5008_v47 = vld [vmem:[%s5177_s24 + $0x48] sm:$0xff]   ;;  %v5014_v50 = vld [vmem:[%s5177_s24 + $0x50] sm:$0xff]  }
  0x1d   : > { %4708 = vmatprep.mubr.msk.bf16.mxu1 %vm298_vm1, %v4981_v17  ;;  %v5011_v49 = vld [vmem:[%s5177_s24 + $0x48] sm:$0xff]   ;;  %v5010_v51 = vld [vmem:[%s5177_s24 + $0x50] sm:$0xff]   ;;  %v5013_v52 = vld [vmem:[%s5177_s24 + $0x58] sm:$0xff]  }
  0x1e   : > { %4689 = vmatmul.mubr.msk.bf16.gmra.mrb[4].mxu0 %vm298_vm1, %v4982_v19  ;;  %v5016_v53 = vld [vmem:[%s5177_s24 + $0x58] sm:$0xff]   ;;  %v5019_v54 = vld [vmem:[%s5177_s24 + $0x60] sm:$0xff]   ;;  %v5018_v56 = vld [vmem:[%s5177_s24 + $0x68] sm:$0xff]  }
  0x1f   : > { %4692 = vmatprep.mubr.msk.bf16.mxu0 %vm298_vm1, %v4985_v20  ;;  %v5015_v55 = vld [vmem:[%s5177_s24 + $0x60] sm:$0xff]   ;;  %v5021_v57 = vld [vmem:[%s5177_s24 + $0x68] sm:$0xff]   ;;  %v5023_v58 = vld [vmem:[%s5177_s24 + $0x70] sm:$0xff]  }
  0x20   : > { %v5020_v59 = vld [vmem:[%s5177_s24 + $0x70] sm:$0xff]   ;;  %v5022_v60 = vld [vmem:[%s5177_s24 + $0x78] sm:$0xff]   ;;  %v5026_v62 = vld [vmem:[%s5177_s24 + $0x80] sm:$0xff]  }
  0x21   : > { %v5025_v61 = vld [vmem:[%s5177_s24 + $0x78] sm:$0xff]   ;;  %v5024_v63 = vld [vmem:[%s5177_s24 + $0x80] sm:$0xff]   ;;  %v5028_v1 = vld [vmem:[%s5177_s24 + $0x88] sm:$0xff]  }
  0x22   : > { %v5027_v0 = vld [vmem:[%s5177_s24 + $0x18] sm:$0xff]   ;;  %v5032_v2 = vld [vmem:[%s5177_s24 + $0x20] sm:$0xff]   ;;  %v5031_v4 = vld [vmem:[%s5177_s24 + $0x28] sm:$0xff]  }
  0x23   : > { %v5029_v3 = vld [vmem:[%s5177_s24 + $0x20] sm:$0xff]   ;;  %v5048_v5 = vld [vmem:[%s6263_s1 + $0x58] sm:$0x3f]   ;;  %v5034_v6 = vld [vmem:[%s5177_s24 + $0x28] sm:$0xff]  }
  0x24   : > { %4709 = vmatmul.mubr.msk.bf16.gmra.mrb[8].mxu1 %vm298_vm1, %v4983_v21  ;;  %v5037_v7 = vld [vmem:[%s5177_s24 + $0x30] sm:$0xff]   ;;  %v5053_v8 = vld [vmem:[%s6263_s1 + $0x68] sm:$0x3f]   ;;  %v2466_v9 = vsel %vm347_vm0, %v5048_v5, 0  ;;  %v5036_v11 = vld [vmem:[%s5177_s24 + $0x38] sm:$0xff]  }
  0x25   : > { %4712 = vmatprep.mubr.msk.bf16.mxu1 %vm298_vm1, %v4986_v22  ;;  %v5033_v10 = vld [vmem:[%s5177_s24 + $0x30] sm:$0xff]   ;;  %v2902_v12 = vsel %vm347_vm0, %v5053_v8, 0  ;;  %v5041_v14 = vld [vmem:[%s5177_s24 + $0x40] sm:$0xff]   ;;  %v5040_v16 = vld [vmem:[%s5177_s24 + $0x48] sm:$0xff]  }
  0x26   : > { %4693 = vmatmul.mubr.msk.bf16.gmra.mrb[8].mxu0 %vm298_vm1, %v4987_v23  ;;  %v5043_v17 = vld [vmem:[%s5177_s24 + $0x48] sm:$0xff]   ;;  %v5045_v18 = vld [vmem:[%s5177_s24 + $0x50] sm:$0xff]   ;;  %v5044_v20 = vld [vmem:[%s5177_s24 + $0x58] sm:$0xff]  }
  0x27   : > { %4696 = vmatprep.mubr.msk.bf16.mxu0 %vm298_vm1, %v4990_v24  ;;  %v5042_v19 = vld [vmem:[%s5177_s24 + $0x50] sm:$0xff]   ;;  %v5047_v21 = vld [vmem:[%s5177_s24 + $0x58] sm:$0xff]   ;;  %v5050_v22 = vld [vmem:[%s5177_s24 + $0x60] sm:$0xff]  }
  0x28   : > { %v5046_v23 = vld [vmem:[%s5177_s24 + $0x60] sm:$0xff]   ;;  %v5049_v24 = vld [vmem:[%s5177_s24 + $0x68] sm:$0xff]  }
  0x2c   : > { %4713 = vmatmul.mubr.msk.bf16.gmra.mrb[12].mxu1 %vm298_vm1, %v4988_v25  ;;  %v5052_v25 = vld [vmem:[%s5177_s24 + $0x68] sm:$0xff]  }
  0x2d   : > { %4720 = vmatprep.mubr.msk.bf16.mxu1 %vm298_vm1, %v4991_v26  ;;  %v5055_v26 = vld [vmem:[%s5177_s24 + $0x70] sm:$0xff]  }
  0x2e   : > { %4697 = vmatmul.mubr.msk.bf16.gmra.mrb[12].mxu0 %vm298_vm1, %v4992_v27  ;;  %v5051_v27 = vld [vmem:[%s5177_s24 + $0x70] sm:$0xff]  }
  0x2f   : > { %4756 = vmatprep.mubr.msk.bf16.mxu0 %vm298_vm1, %v4996_v28  ;;  %v5054_v28 = vld [vmem:[%s5177_s24 + $0x78] sm:$0xff]  }
  0x34   : > { %4721 = vmatmul.mubr.msk.bf16.vlgmr.msra.gmra.mrb[16].mxu1 %vm298_vm1, %v4993_v29  ;;  %v5057_v29 = vld [vmem:[%s5177_s24 + $0x78] sm:$0xff]  }
  0x35   : > { %4789 = vmatpush3.bf16.msra.mxu1 %v4994_v13  ;;  %4724 = vmatprep.mubr.msk.bf16.mxu1 %vm298_vm1, %v4995_v30  ;;  %v5039_v13 = vld [vmem:[%s5177_s24 + $0x38] sm:$0xff]   ;;  %v5059_v30 = vld [vmem:[%s5177_s24 + $0x80] sm:$0xff]  }
  0x36   : > { %4940 = vmatprep.subr.msk.bf16.mxu1 %vm347_vm0, %v5012_v32  ;;  %4757 = vmatmul.mubr.msk.bf16.vlgmr.msra.gmra.mrb[16].mxu0 %vm298_vm1, %v4998_v31  ;;  %v5056_v31 = vld [vmem:[%s5177_s24 + $0x80] sm:$0xff]   ;;  %v5058_v32 = vld [vmem:[%s5177_s24 + $0x88] sm:$0xff]  }
  0x37   : > { %4825 = vmatpush3.bf16.msra.mxu0 %v4999_v15  ;;  %4760 = vmatprep.mubr.msk.bf16.mxu0 %vm298_vm1, %v5001_v33  ;;  %v5038_v15 = vld [vmem:[%s5177_s24 + $0x40] sm:$0xff]   ;;  %v5061_v33 = vld [vmem:[%s5177_s24 + $0x88] sm:$0xff]  }
  0x38   : > { %4941 = vmatprep.subr.msk.bf16.mxu0 %vm347_vm0, %v5017_v37  ;;  %v5064_v37 = vld [vmem:[%s5177_s24 + $0x98] sm:$0xff]  }
  0x39   : > { %4791 = vmatpush3.bf16.msra.mxu1 %v1594_v34  ;;  %v5062_v34 = vld [vmem:[%s5177_s24 + $0x90] sm:$0xff]  }
  0x3a   : > { %4860 = vmatprep.subr.bf16.mxu1 %v5245_v35 }
  0x3b   : > { %4827 = vmatpush3.bf16.msra.mxu0 %v2030_v39  ;;  %v5065_v39 = vld [vmem:[%s5177_s24 + $0x30] sm:$0xff]  }
  0x3c   : > { %4725 = vmatmul.mubr.msk.bf16.gmra.mrb[20].mxu1 %vm298_vm1, %v4997_v36  ;;  %4896 = vmatprep.subr.bf16.mxu0 %v5035_v48  ;;  %v5063_v36 = vld [vmem:[%s5177_s24 + $0x28] sm:$0xff]  }
  0x3d   : > { %4728 = vmatprep.mubr.msk.bf16.mxu1 %vm298_vm1, %v5000_v38  ;;  %v5067_v38 = vld [vmem:[%s5177_s24 + $0x30] sm:$0xff]  }
  0x3e   : > { %4761 = vmatmul.mubr.msk.bf16.gmra.mrb[20].mxu0 %vm298_vm1, %v5003_v40  ;;  %v5066_v40 = vld [vmem:[%s5177_s24 + $0x38] sm:$0xff]  }
  0x3f   : > { %4764 = vmatprep.mubr.msk.bf16.mxu0 %vm298_vm1, %v5005_v41  ;;  %v5069_v41 = vld [vmem:[%s5177_s24 + $0x38] sm:$0xff]  }
  0x44   : > { %4729 = vmatmul.mubr.msk.bf16.gmra.mrb[24].mxu1 %vm298_vm1, %v5002_v42  ;;  %v5071_v42 = vld [vmem:[%s5177_s24 + $0x40] sm:$0xff]  }
  0x45   : > { %4732 = vmatprep.mubr.msk.bf16.mxu1 %vm298_vm1, %v5004_v43  ;;  %v5068_v43 = vld [vmem:[%s5177_s24 + $0x40] sm:$0xff]  }
  0x46   : > { %4765 = vmatmul.mubr.msk.bf16.gmra.mrb[24].mxu0 %vm298_vm1, %v5007_v44  ;;  %v5070_v44 = vld [vmem:[%s5177_s24 + $0x48] sm:$0xff]  }
  0x47   : > { %4768 = vmatprep.mubr.msk.bf16.mxu0 %vm298_vm1, %v5009_v45  ;;  %v5073_v45 = vld [vmem:[%s5177_s24 + $0x48] sm:$0xff]  }
  0x4c   : > { %4733 = vmatmul.mubr.msk.bf16.gmra.mrb[28].mxu1 %vm298_vm1, %v5006_v46  ;;  %v5075_v46 = vld [vmem:[%s5177_s24 + $0x50] sm:$0xff]  }
  0x4d   : > { %4736 = vmatprep.mubr.msk.bf16.mxu1 %vm298_vm1, %v5008_v47  ;;  %v5072_v47 = vld [vmem:[%s5177_s24 + $0x50] sm:$0xff]  }
  0x4e   : > { %4769 = vmatmul.mubr.msk.bf16.gmra.mrb[28].mxu0 %vm298_vm1, %v5011_v49  ;;  %v5077_v49 = vld [vmem:[%s5177_s24 + $0x58] sm:$0xff]  }
  0x4f   : > { %4772 = vmatprep.mubr.msk.bf16.mxu0 %vm298_vm1, %v5014_v50  ;;  %v5079_v50 = vld [vmem:[%s5177_s24 + $0x60] sm:$0xff]  }
  0x54   : > { %4737 = vmatmul.mubr.msk.bf16.gmra.mrb[32].mxu1 %vm298_vm1, %v5010_v51  ;;  %v5076_v51 = vld [vmem:[%s5177_s24 + $0x60] sm:$0xff]  }
  0x55   : > { %4740 = vmatprep.mubr.msk.bf16.mxu1 %vm298_vm1, %v5013_v52  ;;  %v5078_v52 = vld [vmem:[%s5177_s24 + $0x68] sm:$0xff]  }
  0x56   : > { %4773 = vmatmul.mubr.msk.bf16.gmra.mrb[32].mxu0 %vm298_vm1, %v5016_v53  ;;  %v5081_v53 = vld [vmem:[%s5177_s24 + $0x68] sm:$0xff]  }
  0x57   : > { %4776 = vmatprep.mubr.msk.bf16.mxu0 %vm298_vm1, %v5019_v54  ;;  %v5083_v54 = vld [vmem:[%s5177_s24 + $0x70] sm:$0xff]  }
  0x5c   : > { %4741 = vmatmul.mubr.msk.bf16.gmra.mrb[36].mxu1 %vm298_vm1, %v5015_v55  ;;  %v5080_v55 = vld [vmem:[%s5177_s24 + $0x70] sm:$0xff]  }
  0x5d   : > { %4744 = vmatprep.mubr.msk.bf16.mxu1 %vm298_vm1, %v5018_v56  ;;  %v5082_v56 = vld [vmem:[%s5177_s24 + $0x78] sm:$0xff]  }
  0x5e   : > { %4777 = vmatmul.mubr.msk.bf16.gmra.mrb[36].mxu0 %vm298_vm1, %v5021_v57  ;;  %v5085_v57 = vld [vmem:[%s5177_s24 + $0x78] sm:$0xff]  }
  0x5f   : > { %4780 = vmatprep.mubr.msk.bf16.mxu0 %vm298_vm1, %v5023_v58  ;;  %v5087_v58 = vld [vmem:[%s5177_s24 + $0x80] sm:$0xff]  }
  0x64   : > { %4745 = vmatmul.mubr.msk.bf16.gmra.mrb[40].mxu1 %vm298_vm1, %v5020_v59  ;;  %v5084_v59 = vld [vmem:[%s5177_s24 + $0x80] sm:$0xff]  }
  0x65   : > { %4748 = vmatprep.mubr.msk.bf16.mxu1 %vm298_vm1, %v5022_v60  ;;  %v5086_v60 = vld [vmem:[%s5177_s24 + $0x88] sm:$0xff]  }
  0x66   : > { %4781 = vmatmul.mubr.msk.bf16.gmra.mrb[40].mxu0 %vm298_vm1, %v5025_v61  ;;  %v5089_v61 = vld [vmem:[%s5177_s24 + $0x88] sm:$0xff]  }
  0x67   : > { %4784 = vmatprep.mubr.msk.bf16.mxu0 %vm298_vm1, %v5026_v62  ;;  %v5091_v62 = vld [vmem:[%s5177_s24 + $0x90] sm:$0xff]  }
  0x6c   : > { %4749 = vmatmul.mubr.msk.bf16.gmra.mrb[44].mxu1 %vm298_vm1, %v5024_v63  ;;  %v5088_v63 = vld [vmem:[%s5177_s24 + $0x90] sm:$0xff]  }
  0x6d   : > { %4792 = vmatprep.mubr.msk.bf16.mxu1 %vm298_vm1, %v5027_v0  ;;  %v5090_v0 = vld [vmem:[%s5177_s24 + $0x98] sm:$0xff]  }
  0x6e   : > { %4785 = vmatmul.mubr.msk.bf16.gmra.mrb[44].mxu0 %vm298_vm1, %v5028_v1  ;;  %v5093_v1 = vld [vmem:[%s5177_s24 + $0x98] sm:$0xff]  }
  0x6f   : > { %4828 = vmatprep.mubr.msk.bf16.mxu0 %vm298_vm1, %v5032_v2  ;;  %v5094_v2 = vld [vmem:[%s5177_s24 + $0xa0] sm:$0xff]  }
  0x74   : > { %4793 = vmatmul.mubr.msk.bf16.vlgmr.msra.gmra.mrb[48].mxu1 %vm298_vm1, %v5029_v3 }
  0x75   : > { %4861 = vmatpush3.bf16.msra.mxu1 %v5245_v35  ;;  %4796 = vmatprep.mubr.msk.bf16.mxu1 %vm298_vm1, %v5031_v4  ;;  %v5060_v35 = vld [vmem:[%s5177_s24 + $0x90] sm:$0xff]  }
  0x76   : > { %4942 = vmatprep.subr.msk.bf16.mxu1 %vm347_vm0, %v5048_v5  ;;  %4829 = vmatmul.mubr.msk.bf16.vlgmr.msra.gmra.mrb[48].mxu0 %vm298_vm1, %v5034_v6  ;;  %v5092_v5 = vld [vmem:[%s5177_s24 + $0xa0] sm:$0xff]  }
  0x77   : > { %4897 = vmatpush3.bf16.msra.mxu0 %v5035_v48  ;;  %4832 = vmatprep.mubr.msk.bf16.mxu0 %vm298_vm1, %v5037_v7  ;;  %v5074_v48 = vld [vmem:[%s5177_s24 + $0x58] sm:$0xff]  }
  0x78   : > { %4943 = vmatprep.subr.msk.bf16.mxu0 %vm347_vm0, %v5053_v8 }
  0x79   : > { %4863 = vmatpush3.bf16.msra.mxu1 %v2466_v9 }
  0x7b   : > { %4899 = vmatpush3.bf16.msra.mxu0 %v2902_v12 }
  0x7c   : > { %4797 = vmatmul.mubr.msk.bf16.gmra.mrb[52].mxu1 %vm298_vm1, %v5033_v10  ;;  %v5095_v10 = vld [vmem:[%s5177_s24 + $0xa8] sm:$0xff]   ;;  %s5628_s24 = scalar_lea.vmem %s6264_s2, %s4410_s21 }
  0x7d   : > { %4800 = vmatprep.mubr.msk.bf16.mxu1 %vm298_vm1, %v5036_v11 }
  0x7e   : > { %4833 = vmatmul.mubr.msk.bf16.gmra.mrb[52].mxu0 %vm298_vm1, %v5039_v13 }
  0x7f   : > { %4836 = vmatprep.mubr.msk.bf16.mxu0 %vm298_vm1, %v5041_v14 }
  0x84   : > { %4801 = vmatmul.mubr.msk.bf16.gmra.mrb[56].mxu1 %vm298_vm1, %v5038_v15 }
  0x85   : > { %4804 = vmatprep.mubr.msk.bf16.mxu1 %vm298_vm1, %v5040_v16 }
  0x86   : > { %4837 = vmatmul.mubr.msk.bf16.gmra.mrb[56].mxu0 %vm298_vm1, %v5043_v17 }
  0x87   : > { %4840 = vmatprep.mubr.msk.bf16.mxu0 %vm298_vm1, %v5045_v18 }
  0x8c   : > { %4805 = vmatmul.mubr.msk.bf16.gmra.mrb[60].mxu1 %vm298_vm1, %v5042_v19 }
  0x8d   : > { %4808 = vmatprep.mubr.msk.bf16.mxu1 %vm298_vm1, %v5044_v20 }
  0x8e   : > { %4841 = vmatmul.mubr.msk.bf16.gmra.mrb[60].mxu0 %vm298_vm1, %v5047_v21 }
  0x8f   : > { %4844 = vmatprep.mubr.msk.bf16.mxu0 %vm298_vm1, %v5050_v22 }
  0x94   : > { %4809 = vmatmul.mubr.msk.bf16.gmra.mrb[64].mxu1 %vm298_vm1, %v5046_v23 }
  0x95   : > { %4812 = vmatprep.mubr.msk.bf16.mxu1 %vm298_vm1, %v5049_v24 }
  0x96   : > { %4845 = vmatmul.mubr.msk.bf16.gmra.mrb[64].mxu0 %vm298_vm1, %v5052_v25 }
  0x97   : > { %4848 = vmatprep.mubr.msk.bf16.mxu0 %vm298_vm1, %v5055_v26 }
  0x9c   : > { %4813 = vmatmul.mubr.msk.bf16.gmra.mrb[68].mxu1 %vm298_vm1, %v5051_v27 }
  0x9d   : > { %4816 = vmatprep.mubr.msk.bf16.mxu1 %vm298_vm1, %v5054_v28 }
  0x9e   : > { %4849 = vmatmul.mubr.msk.bf16.gmra.mrb[68].mxu0 %vm298_vm1, %v5057_v29 }
  0x9f   : > { %4852 = vmatprep.mubr.msk.bf16.mxu0 %vm298_vm1, %v5059_v30 }
  0xa4   : > { %4817 = vmatmul.mubr.msk.bf16.gmra.mrb[72].mxu1 %vm298_vm1, %v5056_v31 }
  0xa5   : > { %4820 = vmatprep.mubr.msk.bf16.mxu1 %vm298_vm1, %v5058_v32 }
  0xa6   : > { %4853 = vmatmul.mubr.msk.bf16.gmra.mrb[72].mxu0 %vm298_vm1, %v5061_v33 }
  0xa7   : > { %4856 = vmatprep.mubr.msk.bf16.mxu0 %vm298_vm1, %v5062_v34 }
  0xac   : > { %4821 = vmatmul.mubr.msk.bf16.gmra.mrb[76].mxu1 %vm298_vm1, %v5060_v35 }
  0xad   : > { %4864 = vmatprep.mubr.msk.bf16.mxu1 %vm298_vm1, %v5063_v36 }
  0xae   : > { %4857 = vmatmul.mubr.msk.bf16.gmra.mrb[76].mxu0 %vm298_vm1, %v5064_v37 }
  0xaf   : > { %4900 = vmatprep.mubr.msk.bf16.mxu0 %vm298_vm1, %v5067_v38 }
  0xb4   : > { %4865 = vmatmul.mubr.msk.bf16.vlgmr.msra.gmra.mrb[80].mxu1 %vm298_vm1, %v5065_v39 }
  0xb5   : > { %4868 = vmatprep.mubr.msk.bf16.mxu1 %vm298_vm1, %v5066_v40 }
  0xb6   : > { %4901 = vmatmul.mubr.msk.bf16.vlgmr.msra.gmra.mrb[80].mxu0 %vm298_vm1, %v5069_v41 }
  0xb7   : > { %4904 = vmatprep.mubr.msk.bf16.mxu0 %vm298_vm1, %v5071_v42 }
  0xbc   : > { %4869 = vmatmul.mubr.msk.bf16.gmra.mrb[84].mxu1 %vm298_vm1, %v5068_v43 }
  0xbd   : > { %4872 = vmatprep.mubr.msk.bf16.mxu1 %vm298_vm1, %v5070_v44 }
  0xbe   : > { %4905 = vmatmul.mubr.msk.bf16.gmra.mrb[84].mxu0 %vm298_vm1, %v5073_v45 }
  0xbf   : > { %4908 = vmatprep.mubr.msk.bf16.mxu0 %vm298_vm1, %v5075_v46 }
  0xc4   : > { %4873 = vmatmul.mubr.msk.bf16.gmra.mrb[88].mxu1 %vm298_vm1, %v5072_v47 }
  0xc5   : > { %4876 = vmatprep.mubr.msk.bf16.mxu1 %vm298_vm1, %v5074_v48 }
  0xc6   : > { %4909 = vmatmul.mubr.msk.bf16.gmra.mrb[88].mxu0 %vm298_vm1, %v5077_v49 }
  0xc7   : > { %4912 = vmatprep.mubr.msk.bf16.mxu0 %vm298_vm1, %v5079_v50 }
  0xcc   : > { %4877 = vmatmul.mubr.msk.bf16.gmra.mrb[92].mxu1 %vm298_vm1, %v5076_v51 }
  0xcd   : > { %4880 = vmatprep.mubr.msk.bf16.mxu1 %vm298_vm1, %v5078_v52 }
  0xce   : > { %4913 = vmatmul.mubr.msk.bf16.gmra.mrb[92].mxu0 %vm298_vm1, %v5081_v53 }
  0xcf   : > { %4916 = vmatprep.mubr.msk.bf16.mxu0 %vm298_vm1, %v5083_v54 }
  0xd4   : > { %4881 = vmatmul.mubr.msk.bf16.gmra.mrb[96].mxu1 %vm298_vm1, %v5080_v55 }
  0xd5   : > { %4884 = vmatprep.mubr.msk.bf16.mxu1 %vm298_vm1, %v5082_v56 }
  0xd6   : > { %4917 = vmatmul.mubr.msk.bf16.gmra.mrb[96].mxu0 %vm298_vm1, %v5085_v57 }
  0xd7   : > { %4920 = vmatprep.mubr.msk.bf16.mxu0 %vm298_vm1, %v5087_v58 }
  0xdc   : > { %4885 = vmatmul.mubr.msk.bf16.gmra.mrb[100].mxu1 %vm298_vm1, %v5084_v59 }
  0xdd   : > { %4888 = vmatprep.mubr.msk.bf16.mxu1 %vm298_vm1, %v5086_v60 }
  0xde   : > { %4921 = vmatmul.mubr.msk.bf16.gmra.mrb[100].mxu0 %vm298_vm1, %v5089_v61 }
  0xdf   : > { %4924 = vmatprep.mubr.msk.bf16.mxu0 %vm298_vm1, %v5091_v62 }
  0xe4   : > { %4889 = vmatmul.mubr.msk.bf16.gmra.mrb[104].mxu1 %vm298_vm1, %v5088_v63 }
  0xe5   : > { %4892 = vmatprep.mubr.msk.bf16.mxu1 %vm298_vm1, %v5090_v0 }
  0xe6   : > { %4925 = vmatmul.mubr.msk.bf16.gmra.mrb[104].mxu0 %vm298_vm1, %v5093_v1 }
  0xe7   : > { %v4702_v3 = vpop.f32.mrb[0].mxu1  ;;  %4928 = vmatprep.mubr.msk.bf16.mxu0 %vm298_vm1, %v5094_v2 }
  0xe8   : > { %531 = vst.msk [vmem:[#allocation2 + $0x90] sm:$0xff] %vm512_vm2, %v4702_v3  ;;  %v449_v4 = vpop.f32.mrb[1].mxu1 }
  0xe9   : > { %529 = vst.msk [vmem:[#allocation2 + $0x80] sm:$0xff] %vm512_vm2, %v449_v4  ;;  %v4703_v6 = vpop.f32.mrb[2].mxu1  ;;  %v4686_v8 = vpop.f32.mrb[0].mxu0 }
  0xea   : > { %532 = vst.msk [vmem:[#allocation2 + $0x98] sm:$0xff] %vm512_vm2, %v4703_v6  ;;  %v452_v7 = vpop.f32.mrb[3].mxu1  ;;  %515 = vst.msk [vmem:[#allocation2 + $0x10] sm:$0xff] %vm512_vm2, %v4686_v8  ;;  %v385_v9 = vpop.f32.mrb[1].mxu0 }
  0xeb   : > { %530 = vst.msk [vmem:[#allocation2 + $0x88] sm:$0xff] %vm512_vm2, %v452_v7  ;;  %513 = vst.msk [vmem:[#allocation2] sm:$0xff] %vm512_vm2, %v385_v9  ;;  %v4687_v11 = vpop.f32.mrb[2].mxu0 }
  0xec   : > { %4893 = vmatmul.mubr.msk.bf16.gmra.mrb[108].mxu1 %vm298_vm1, %v5092_v5  ;;  %516 = vst.msk [vmem:[#allocation2 + $0x18] sm:$0xff] %vm512_vm2, %v4687_v11  ;;  %v388_v12 = vpop.f32.mrb[3].mxu0 }
  0xed   : > { %514 = vst.msk [vmem:[#allocation2 + $0x8] sm:$0xff] %vm512_vm2, %v388_v12 }
  0xee   : > { %4929 = vmatmul.mubr.msk.bf16.gmra.mrb[108].mxu0 %vm298_vm1, %v5095_v10 }
  0xef   : > { %v4706_v13 = vpop.f32.mrb[4].mxu1 }
  0xf0   : > { %535 = vst.msk [vmem:[#allocation2 + $0xb0] sm:$0xff] %vm512_vm2, %v4706_v13  ;;  %v465_v14 = vpop.f32.mrb[5].mxu1 }
  0xf1   : > { %533 = vst.msk [vmem:[#allocation2 + $0xa0] sm:$0xff] %vm512_vm2, %v465_v14  ;;  %v4707_v15 = vpop.f32.mrb[6].mxu1  ;;  %v4690_v17 = vpop.f32.mrb[4].mxu0  ;;  %v887_v38 = vld [vmem:[#allocation2 + $0x10] sm:$0xff] }
  0xf2   : > { %536 = vst.msk [vmem:[#allocation2 + $0xb8] sm:$0xff] %vm512_vm2, %v4707_v15  ;;  %v468_v16 = vpop.f32.mrb[7].mxu1  ;;  %519 = vst.msk [vmem:[#allocation2 + $0x30] sm:$0xff] %vm512_vm2, %v4690_v17  ;;  %v401_v18 = vpop.f32.mrb[5].mxu0  ;;  %v885_v41 = vld [vmem:[#allocation2] sm:$0xff] }
  0xf3   : > { %534 = vst.msk [vmem:[#allocation2 + $0xa8] sm:$0xff] %vm512_vm2, %v468_v16  ;;  %517 = vst.msk [vmem:[#allocation2 + $0x20] sm:$0xff] %vm512_vm2, %v401_v18  ;;  %v4691_v19 = vpop.f32.mrb[6].mxu0  ;;  %v888_v44 = vld [vmem:[#allocation2 + $0x18] sm:$0xff] }
  0xf4   : > { %520 = vst.msk [vmem:[#allocation2 + $0x38] sm:$0xff] %vm512_vm2, %v4691_v19  ;;  %v404_v20 = vpop.f32.mrb[7].mxu0  ;;  %v886_v47 = vld [vmem:[#allocation2 + $0x8] sm:$0xff] }
  0xf5   : > { %518 = vst.msk [vmem:[#allocation2 + $0x28] sm:$0xff] %vm512_vm2, %v404_v20 }
  0xf7   : > { %v4710_v21 = vpop.f32.mrb[8].mxu1 }
  0xf8   : > { %539 = vst.msk [vmem:[#allocation2 + $0xd0] sm:$0xff] %vm512_vm2, %v4710_v21  ;;  %v481_v22 = vpop.f32.mrb[9].mxu1 }
  0xf9   : > { %537 = vst.msk [vmem:[#allocation2 + $0xc0] sm:$0xff] %vm512_vm2, %v481_v22  ;;  %v4711_v23 = vpop.f32.mrb[10].mxu1  ;;  %v4694_v25 = vpop.f32.mrb[8].mxu0  ;;  %v891_v54 = vld [vmem:[#allocation2 + $0x30] sm:$0xff] }
  0xfa   : > { %540 = vst.msk [vmem:[#allocation2 + $0xd8] sm:$0xff] %vm512_vm2, %v4711_v23  ;;  %v484_v24 = vpop.f32.mrb[11].mxu1  ;;  %523 = vst.msk [vmem:[#allocation2 + $0x50] sm:$0xff] %vm512_vm2, %v4694_v25  ;;  %v417_v26 = vpop.f32.mrb[9].mxu0  ;;  %v889_v57 = vld [vmem:[#allocation2 + $0x20] sm:$0xff] }
  0xfb   : > { %538 = vst.msk [vmem:[#allocation2 + $0xc8] sm:$0xff] %vm512_vm2, %v484_v24  ;;  %521 = vst.msk [vmem:[#allocation2 + $0x40] sm:$0xff] %vm512_vm2, %v417_v26  ;;  %v4695_v27 = vpop.f32.mrb[10].mxu0  ;;  %v892_v61 = vld [vmem:[#allocation2 + $0x38] sm:$0xff] }
  0xfc   : > { %524 = vst.msk [vmem:[#allocation2 + $0x58] sm:$0xff] %vm512_vm2, %v4695_v27  ;;  %v420_v28 = vpop.f32.mrb[11].mxu0  ;;  %v890_v2 = vld [vmem:[#allocation2 + $0x28] sm:$0xff] }
  0xfd   : > { %522 = vst.msk [vmem:[#allocation2 + $0x48] sm:$0xff] %vm512_vm2, %v420_v28 }
  0xff   : > { %v4714_v29 = vpop.f32.mrb[12].mxu1 }
 0x100   : > { %543 = vst.msk [vmem:[#allocation2 + $0xf0] sm:$0xff] %vm512_vm2, %v4714_v29  ;;  %v497_v30 = vpop.f32.mrb[13].mxu1 }
 0x101   : > { %541 = vst.msk [vmem:[#allocation2 + $0xe0] sm:$0xff] %vm512_vm2, %v497_v30  ;;  %v4715_v31 = vpop.f32.mrb[14].mxu1  ;;  %v4698_v33 = vpop.f32.mrb[12].mxu0  ;;  %v895_v14 = vld [vmem:[#allocation2 + $0x50] sm:$0xff] }
 0x102   : > { %544 = vst.msk [vmem:[#allocation2 + $0xf8] sm:$0xff] %vm512_vm2, %v4715_v31  ;;  %v500_v32 = vpop.f32.mrb[15].mxu1  ;;  %527 = vst.msk [vmem:[#allocation2 + $0x70] sm:$0xff] %vm512_vm2, %v4698_v33  ;;  %v433_v34 = vpop.f32.mrb[13].mxu0  ;;  %v893_v17 = vld [vmem:[#allocation2 + $0x40] sm:$0xff] }
 0x103   : > { %542 = vst.msk [vmem:[#allocation2 + $0xe8] sm:$0xff] %vm512_vm2, %v500_v32  ;;  %525 = vst.msk [vmem:[#allocation2 + $0x60] sm:$0xff] %vm512_vm2, %v433_v34  ;;  %v4699_v35 = vpop.f32.mrb[14].mxu0  ;;  %v896_v21 = vld [vmem:[#allocation2 + $0x58] sm:$0xff] }
 0x104   : > { %528 = vst.msk [vmem:[#allocation2 + $0x78] sm:$0xff] %vm512_vm2, %v4699_v35  ;;  %v436_v36 = vpop.f32.mrb[15].mxu0  ;;  %v894_v26 = vld [vmem:[#allocation2 + $0x48] sm:$0xff] }
 0x105   : > { %526 = vst.msk [vmem:[#allocation2 + $0x68] sm:$0xff] %vm512_vm2, %v436_v36 }
 0x107   : > { %v4722_v37 = vpop.f32.mrb[16].mxu1 }
 0x108   : > { %v919_v39 = vadd.f32 %v4722_v37, %v887_v38  ;;  %v758_v40 = vpop.f32.mrb[17].mxu1 }
 0x109   : > { %v917_v42 = vadd.f32 %v885_v41, %v758_v40  ;;  %v4723_v43 = vpop.f32.mrb[18].mxu1  ;;  %v4758_v48 = vpop.f32.mrb[16].mxu0  ;;  %v899_v38 = vld [vmem:[#allocation2 + $0x70] sm:$0xff] }
 0x10a   : > { %951 = vst.msk [vmem:[#allocation2 + $0x10] sm:$0xff] %vm512_vm2, %v919_v39  ;;  %v920_v45 = vadd.f32 %v4723_v43, %v888_v44  ;;  %v761_v46 = vpop.f32.mrb[19].mxu1  ;;  %v1194_v50 = vpop.f32.mrb[17].mxu0  ;;  %v897_v41 = vld [vmem:[#allocation2 + $0x60] sm:$0xff] }
 0x10b   : > { %949 = vst.msk [vmem:[#allocation2] sm:$0xff] %vm512_vm2, %v917_v42  ;;  %v918_v49 = vadd.f32 %v886_v47, %v761_v46  ;;  %v4759_v51 = vpop.f32.mrb[18].mxu0 }
 0x10c   : > { %952 = vst.msk [vmem:[#allocation2 + $0x18] sm:$0xff] %vm512_vm2, %v920_v45  ;;  %v1197_v52 = vpop.f32.mrb[19].mxu0  ;;  %v900_v45 = vld [vmem:[#allocation2 + $0x78] sm:$0xff] }
 0x10d   : > { %950 = vst.msk [vmem:[#allocation2 + $0x8] sm:$0xff] %vm512_vm2, %v918_v49 }
 0x10f   : > { %v4726_v53 = vpop.f32.mrb[20].mxu1 }
 0x110   : > { %v923_v55 = vadd.f32 %v4726_v53, %v891_v54  ;;  %v774_v56 = vpop.f32.mrb[21].mxu1 }
 0x111   : > { %v1323_v58 = vld [vmem:[#allocation2 + $0x10] sm:$0xff]  ;;  %v921_v59 = vadd.f32 %v889_v57, %v774_v56  ;;  %v4727_v60 = vpop.f32.mrb[22].mxu1  ;;  %v4762_v3 = vpop.f32.mrb[20].mxu0 }
 0x112   : > { %955 = vst.msk [vmem:[#allocation2 + $0x30] sm:$0xff] %vm512_vm2, %v923_v55  ;;  %v1355_v62 = vadd.f32 %v4758_v48, %v1323_v58  ;;  %v1321_v63 = vld [vmem:[#allocation2] sm:$0xff]  ;;  %v924_v0 = vadd.f32 %v4727_v60, %v892_v61  ;;  %v777_v1 = vpop.f32.mrb[23].mxu1  ;;  %v1210_v7 = vpop.f32.mrb[21].mxu0 }
 0x113   : > { %953 = vst.msk [vmem:[#allocation2 + $0x20] sm:$0xff] %vm512_vm2, %v921_v59  ;;  %v1353_v4 = vadd.f32 %v1321_v63, %v1194_v50  ;;  %v1324_v5 = vld [vmem:[#allocation2 + $0x18] sm:$0xff]  ;;  %v922_v6 = vadd.f32 %v890_v2, %v777_v1  ;;  %v4763_v10 = vpop.f32.mrb[22].mxu0  ;;  %v898_v50 = vld [vmem:[#allocation2 + $0x68] sm:$0xff]  ;;  %v901_v1 = vld [vmem:[#allocation2 + $0x80] sm:$0xff] }
 0x114   : > { %1387 = vst.msk [vmem:[#allocation2 + $0x10] sm:$0xff] %vm512_vm2, %v1355_v62  ;;  %956 = vst.msk [vmem:[#allocation2 + $0x38] sm:$0xff] %vm512_vm2, %v924_v0  ;;  %v1356_v8 = vadd.f32 %v4759_v51, %v1324_v5  ;;  %v1322_v9 = vld [vmem:[#allocation2 + $0x8] sm:$0xff]  ;;  %v1213_v12 = vpop.f32.mrb[23].mxu0  ;;  %v903_v62 = vld [vmem:[#allocation2 + $0x90] sm:$0xff] }
 0x115   : > { %1385 = vst.msk [vmem:[#allocation2] sm:$0xff] %vm512_vm2, %v1353_v4  ;;  %954 = vst.msk [vmem:[#allocation2 + $0x28] sm:$0xff] %vm512_vm2, %v922_v6  ;;  %v1354_v11 = vadd.f32 %v1322_v9, %v1197_v52  ;;  %v904_v5 = vld [vmem:[#allocation2 + $0x98] sm:$0xff] }
 0x116   : > { %1388 = vst.msk [vmem:[#allocation2 + $0x18] sm:$0xff] %vm512_vm2, %v1356_v8 }
 0x117   : > { %1386 = vst.msk [vmem:[#allocation2 + $0x8] sm:$0xff] %vm512_vm2, %v1354_v11  ;;  %v4730_v13 = vpop.f32.mrb[24].mxu1 }
 0x118   : > { %v927_v15 = vadd.f32 %v4730_v13, %v895_v14  ;;  %v790_v16 = vpop.f32.mrb[25].mxu1 }
 0x119   : > { %v1327_v18 = vld [vmem:[#allocation2 + $0x30] sm:$0xff]  ;;  %v925_v19 = vadd.f32 %v893_v17, %v790_v16  ;;  %v4731_v20 = vpop.f32.mrb[26].mxu1  ;;  %v4766_v27 = vpop.f32.mrb[24].mxu0 }
 0x11a   : > { %959 = vst.msk [vmem:[#allocation2 + $0x50] sm:$0xff] %vm512_vm2, %v927_v15  ;;  %v1359_v22 = vadd.f32 %v4762_v3, %v1327_v18  ;;  %v1325_v23 = vld [vmem:[#allocation2 + $0x20] sm:$0xff]  ;;  %v928_v24 = vadd.f32 %v4731_v20, %v896_v21  ;;  %v793_v25 = vpop.f32.mrb[27].mxu1  ;;  %v1226_v31 = vpop.f32.mrb[25].mxu0 }
 0x11b   : > { %957 = vst.msk [vmem:[#allocation2 + $0x40] sm:$0xff] %vm512_vm2, %v925_v19  ;;  %v1357_v28 = vadd.f32 %v1325_v23, %v1210_v7  ;;  %v1328_v29 = vld [vmem:[#allocation2 + $0x38] sm:$0xff]  ;;  %v926_v30 = vadd.f32 %v894_v26, %v793_v25  ;;  %v4767_v34 = vpop.f32.mrb[26].mxu0  ;;  %v905_v25 = vld [vmem:[#allocation2 + $0xa0] sm:$0xff] }
 0x11c   : > { %1391 = vst.msk [vmem:[#allocation2 + $0x30] sm:$0xff] %vm512_vm2, %v1359_v22  ;;  %960 = vst.msk [vmem:[#allocation2 + $0x58] sm:$0xff] %vm512_vm2, %v928_v24  ;;  %v1360_v32 = vadd.f32 %v4763_v10, %v1328_v29  ;;  %v1326_v33 = vld [vmem:[#allocation2 + $0x28] sm:$0xff]  ;;  %v1229_v36 = vpop.f32.mrb[27].mxu0  ;;  %v907_v22 = vld [vmem:[#allocation2 + $0xb0] sm:$0xff] }
 0x11d   : > { %1389 = vst.msk [vmem:[#allocation2 + $0x20] sm:$0xff] %vm512_vm2, %v1357_v28  ;;  %958 = vst.msk [vmem:[#allocation2 + $0x48] sm:$0xff] %vm512_vm2, %v926_v30  ;;  %v1358_v35 = vadd.f32 %v1326_v33, %v1213_v12  ;;  %v902_v10 = vld [vmem:[#allocation2 + $0x88] sm:$0xff]  ;;  %v908_v29 = vld [vmem:[#allocation2 + $0xb8] sm:$0xff] }
 0x11e   : > { %1392 = vst.msk [vmem:[#allocation2 + $0x38] sm:$0xff] %vm512_vm2, %v1360_v32 }
 0x11f   : > { %1390 = vst.msk [vmem:[#allocation2 + $0x28] sm:$0xff] %vm512_vm2, %v1358_v35  ;;  %v4734_v37 = vpop.f32.mrb[28].mxu1 }
 0x120   : > { %v931_v39 = vadd.f32 %v4734_v37, %v899_v38  ;;  %v806_v40 = vpop.f32.mrb[29].mxu1 }
 0x121   : > { %v1331_v42 = vld [vmem:[#allocation2 + $0x50] sm:$0xff]  ;;  %v929_v43 = vadd.f32 %v897_v41, %v806_v40  ;;  %v4735_v44 = vpop.f32.mrb[30].mxu1  ;;  %v4770_v51 = vpop.f32.mrb[28].mxu0 }
 0x122   : > { %963 = vst.msk [vmem:[#allocation2 + $0x70] sm:$0xff] %vm512_vm2, %v931_v39  ;;  %v1363_v46 = vadd.f32 %v4766_v27, %v1331_v42  ;;  %v1329_v47 = vld [vmem:[#allocation2 + $0x40] sm:$0xff]  ;;  %v932_v48 = vadd.f32 %v4735_v44, %v900_v45  ;;  %v809_v49 = vpop.f32.mrb[31].mxu1  ;;  %v1242_v55 = vpop.f32.mrb[29].mxu0 }
 0x123   : > { %961 = vst.msk [vmem:[#allocation2 + $0x60] sm:$0xff] %vm512_vm2, %v929_v43  ;;  %v1361_v52 = vadd.f32 %v1329_v47, %v1226_v31  ;;  %v1332_v53 = vld [vmem:[#allocation2 + $0x58] sm:$0xff]  ;;  %v930_v54 = vadd.f32 %v898_v50, %v809_v49  ;;  %v4771_v58 = vpop.f32.mrb[30].mxu0  ;;  %v909_v49 = vld [vmem:[#allocation2 + $0xc0] sm:$0xff] }
 0x124   : > { %1395 = vst.msk [vmem:[#allocation2 + $0x50] sm:$0xff] %vm512_vm2, %v1363_v46  ;;  %964 = vst.msk [vmem:[#allocation2 + $0x78] sm:$0xff] %vm512_vm2, %v932_v48  ;;  %v1364_v56 = vadd.f32 %v4767_v34, %v1332_v53  ;;  %v1330_v57 = vld [vmem:[#allocation2 + $0x48] sm:$0xff]  ;;  %v1245_v60 = vpop.f32.mrb[31].mxu0  ;;  %v911_v46 = vld [vmem:[#allocation2 + $0xd0] sm:$0xff] }
 0x125   : > { %1393 = vst.msk [vmem:[#allocation2 + $0x40] sm:$0xff] %vm512_vm2, %v1361_v52  ;;  %962 = vst.msk [vmem:[#allocation2 + $0x68] sm:$0xff] %vm512_vm2, %v930_v54  ;;  %v1362_v59 = vadd.f32 %v1330_v57, %v1229_v36  ;;  %v906_v34 = vld [vmem:[#allocation2 + $0xa8] sm:$0xff]  ;;  %v912_v53 = vld [vmem:[#allocation2 + $0xd8] sm:$0xff] }
 0x126   : > { %1396 = vst.msk [vmem:[#allocation2 + $0x58] sm:$0xff] %vm512_vm2, %v1364_v56 }
 0x127   : > { %1394 = vst.msk [vmem:[#allocation2 + $0x48] sm:$0xff] %vm512_vm2, %v1362_v59  ;;  %v4738_v61 = vpop.f32.mrb[32].mxu1 }
 0x128   : > { %v935_v63 = vadd.f32 %v4738_v61, %v903_v62  ;;  %v822_v0 = vpop.f32.mrb[33].mxu1 }
 0x129   : > { %v1335_v2 = vld [vmem:[#allocation2 + $0x70] sm:$0xff]  ;;  %v933_v3 = vadd.f32 %v901_v1, %v822_v0  ;;  %v4739_v4 = vpop.f32.mrb[34].mxu1  ;;  %v4774_v11 = vpop.f32.mrb[32].mxu0 }
 0x12a   : > { %967 = vst.msk [vmem:[#allocation2 + $0x90] sm:$0xff] %vm512_vm2, %v935_v63  ;;  %v1367_v6 = vadd.f32 %v4770_v51, %v1335_v2  ;;  %v1333_v7 = vld [vmem:[#allocation2 + $0x60] sm:$0xff]  ;;  %v936_v8 = vadd.f32 %v4739_v4, %v904_v5  ;;  %v825_v9 = vpop.f32.mrb[35].mxu1  ;;  %v1258_v15 = vpop.f32.mrb[33].mxu0 }
 0x12b   : > { %965 = vst.msk [vmem:[#allocation2 + $0x80] sm:$0xff] %vm512_vm2, %v933_v3  ;;  %v1365_v12 = vadd.f32 %v1333_v7, %v1242_v55  ;;  %v1336_v13 = vld [vmem:[#allocation2 + $0x78] sm:$0xff]  ;;  %v934_v14 = vadd.f32 %v902_v10, %v825_v9  ;;  %v4775_v18 = vpop.f32.mrb[34].mxu0  ;;  %v913_v9 = vld [vmem:[#allocation2 + $0xe0] sm:$0xff] }
 0x12c   : > { %1399 = vst.msk [vmem:[#allocation2 + $0x70] sm:$0xff] %vm512_vm2, %v1367_v6  ;;  %968 = vst.msk [vmem:[#allocation2 + $0x98] sm:$0xff] %vm512_vm2, %v936_v8  ;;  %v1368_v16 = vadd.f32 %v4771_v58, %v1336_v13  ;;  %v1334_v17 = vld [vmem:[#allocation2 + $0x68] sm:$0xff]  ;;  %v1261_v20 = vpop.f32.mrb[35].mxu0  ;;  %v915_v6 = vld [vmem:[#allocation2 + $0xf0] sm:$0xff] }
 0x12d   : > { %1397 = vst.msk [vmem:[#allocation2 + $0x60] sm:$0xff] %vm512_vm2, %v1365_v12  ;;  %966 = vst.msk [vmem:[#allocation2 + $0x88] sm:$0xff] %vm512_vm2, %v934_v14  ;;  %v1366_v19 = vadd.f32 %v1334_v17, %v1245_v60  ;;  %v910_v58 = vld [vmem:[#allocation2 + $0xc8] sm:$0xff]  ;;  %v916_v13 = vld [vmem:[#allocation2 + $0xf8] sm:$0xff] }
 0x12e   : > { %1400 = vst.msk [vmem:[#allocation2 + $0x78] sm:$0xff] %vm512_vm2, %v1368_v16 }
 0x12f   : > { %1398 = vst.msk [vmem:[#allocation2 + $0x68] sm:$0xff] %vm512_vm2, %v1366_v19  ;;  %v4742_v21 = vpop.f32.mrb[36].mxu1 }
 0x130   : > { %v939_v23 = vadd.f32 %v4742_v21, %v907_v22  ;;  %v838_v24 = vpop.f32.mrb[37].mxu1 }
 0x131   : > { %v1339_v26 = vld [vmem:[#allocation2 + $0x90] sm:$0xff]  ;;  %v937_v27 = vadd.f32 %v905_v25, %v838_v24  ;;  %v4743_v28 = vpop.f32.mrb[38].mxu1  ;;  %v4778_v35 = vpop.f32.mrb[36].mxu0 }
 0x132   : > { %971 = vst.msk [vmem:[#allocation2 + $0xb0] sm:$0xff] %vm512_vm2, %v939_v23  ;;  %v1371_v30 = vadd.f32 %v4774_v11, %v1339_v26  ;;  %v1337_v31 = vld [vmem:[#allocation2 + $0x80] sm:$0xff]  ;;  %v940_v32 = vadd.f32 %v4743_v28, %v908_v29  ;;  %v841_v33 = vpop.f32.mrb[39].mxu1  ;;  %v1274_v39 = vpop.f32.mrb[37].mxu0 }
 0x133   : > { %969 = vst.msk [vmem:[#allocation2 + $0xa0] sm:$0xff] %vm512_vm2, %v937_v27  ;;  %v1369_v36 = vadd.f32 %v1337_v31, %v1258_v15  ;;  %v1340_v37 = vld [vmem:[#allocation2 + $0x98] sm:$0xff]  ;;  %v938_v38 = vadd.f32 %v906_v34, %v841_v33  ;;  %v4779_v42 = vpop.f32.mrb[38].mxu0  ;;  %v1757_v33 = vld [vmem:[#allocation2] sm:$0xff] }
 0x134   : > { %1403 = vst.msk [vmem:[#allocation2 + $0x90] sm:$0xff] %vm512_vm2, %v1371_v30  ;;  %972 = vst.msk [vmem:[#allocation2 + $0xb8] sm:$0xff] %vm512_vm2, %v940_v32  ;;  %v1372_v40 = vadd.f32 %v4775_v18, %v1340_v37  ;;  %v1338_v41 = vld [vmem:[#allocation2 + $0x88] sm:$0xff]  ;;  %v1277_v44 = vpop.f32.mrb[39].mxu0  ;;  %v1759_v30 = vld [vmem:[#allocation2 + $0x10] sm:$0xff] }
 0x135   : > { %1401 = vst.msk [vmem:[#allocation2 + $0x80] sm:$0xff] %vm512_vm2, %v1369_v36  ;;  %970 = vst.msk [vmem:[#allocation2 + $0xa8] sm:$0xff] %vm512_vm2, %v938_v38  ;;  %v1370_v43 = vadd.f32 %v1338_v41, %v1261_v20  ;;  %v914_v18 = vld [vmem:[#allocation2 + $0xe8] sm:$0xff]  ;;  %v1760_v37 = vld [vmem:[#allocation2 + $0x18] sm:$0xff] }
 0x136   : > { %1404 = vst.msk [vmem:[#allocation2 + $0x98] sm:$0xff] %vm512_vm2, %v1372_v40 }
 0x137   : > { %1402 = vst.msk [vmem:[#allocation2 + $0x88] sm:$0xff] %vm512_vm2, %v1370_v43  ;;  %v4746_v45 = vpop.f32.mrb[40].mxu1 }
 0x138   : > { %v943_v47 = vadd.f32 %v4746_v45, %v911_v46  ;;  %v854_v48 = vpop.f32.mrb[41].mxu1 }
 0x139   : > { %v1343_v50 = vld [vmem:[#allocation2 + $0xb0] sm:$0xff]  ;;  %v941_v51 = vadd.f32 %v909_v49, %v854_v48  ;;  %v4747_v52 = vpop.f32.mrb[42].mxu1  ;;  %v4782_v59 = vpop.f32.mrb[40].mxu0 }
 0x13a   : > { %975 = vst.msk [vmem:[#allocation2 + $0xd0] sm:$0xff] %vm512_vm2, %v943_v47  ;;  %v1375_v54 = vadd.f32 %v4778_v35, %v1343_v50  ;;  %v1341_v55 = vld [vmem:[#allocation2 + $0xa0] sm:$0xff]  ;;  %v944_v56 = vadd.f32 %v4747_v52, %v912_v53  ;;  %v857_v57 = vpop.f32.mrb[43].mxu1  ;;  %v1290_v63 = vpop.f32.mrb[41].mxu0 }
 0x13b   : > { %973 = vst.msk [vmem:[#allocation2 + $0xc0] sm:$0xff] %vm512_vm2, %v941_v51  ;;  %v1373_v60 = vadd.f32 %v1341_v55, %v1274_v39  ;;  %v1344_v61 = vld [vmem:[#allocation2 + $0xb8] sm:$0xff]  ;;  %v942_v62 = vadd.f32 %v910_v58, %v857_v57  ;;  %v4783_v2 = vpop.f32.mrb[42].mxu0  ;;  %v1761_v57 = vld [vmem:[#allocation2 + $0x20] sm:$0xff] }
 0x13c   : > { %1407 = vst.msk [vmem:[#allocation2 + $0xb0] sm:$0xff] %vm512_vm2, %v1375_v54  ;;  %976 = vst.msk [vmem:[#allocation2 + $0xd8] sm:$0xff] %vm512_vm2, %v944_v56  ;;  %v1376_v0 = vadd.f32 %v4779_v42, %v1344_v61  ;;  %v1342_v1 = vld [vmem:[#allocation2 + $0xa8] sm:$0xff]  ;;  %v1293_v4 = vpop.f32.mrb[43].mxu0  ;;  %v1763_v54 = vld [vmem:[#allocation2 + $0x30] sm:$0xff] }
 0x13d   : > { %1405 = vst.msk [vmem:[#allocation2 + $0xa0] sm:$0xff] %vm512_vm2, %v1373_v60  ;;  %974 = vst.msk [vmem:[#allocation2 + $0xc8] sm:$0xff] %vm512_vm2, %v942_v62  ;;  %v1374_v3 = vadd.f32 %v1342_v1, %v1277_v44  ;;  %v1758_v42 = vld [vmem:[#allocation2 + $0x8] sm:$0xff]  ;;  %v1764_v61 = vld [vmem:[#allocation2 + $0x38] sm:$0xff] }
 0x13e   : > { %1408 = vst.msk [vmem:[#allocation2 + $0xb8] sm:$0xff] %vm512_vm2, %v1376_v0 }
 0x13f   : > { %1406 = vst.msk [vmem:[#allocation2 + $0xa8] sm:$0xff] %vm512_vm2, %v1374_v3  ;;  %v4750_v5 = vpop.f32.mrb[44].mxu1 }
 0x140   : > { %v947_v7 = vadd.f32 %v4750_v5, %v915_v6  ;;  %v870_v8 = vpop.f32.mrb[45].mxu1 }
 0x141   : > { %v1347_v10 = vld [vmem:[#allocation2 + $0xd0] sm:$0xff]  ;;  %v945_v11 = vadd.f32 %v913_v9, %v870_v8  ;;  %v4751_v12 = vpop.f32.mrb[46].mxu1  ;;  %v4786_v19 = vpop.f32.mrb[44].mxu0 }
 0x142   : > { %979 = vst.msk [vmem:[#allocation2 + $0xf0] sm:$0xff] %vm512_vm2, %v947_v7  ;;  %v1379_v14 = vadd.f32 %v4782_v59, %v1347_v10  ;;  %v1345_v15 = vld [vmem:[#allocation2 + $0xc0] sm:$0xff]  ;;  %v948_v16 = vadd.f32 %v4751_v12, %v916_v13  ;;  %v873_v17 = vpop.f32.mrb[47].mxu1  ;;  %v1306_v23 = vpop.f32.mrb[45].mxu0 }
 0x143   : > { %977 = vst.msk [vmem:[#allocation2 + $0xe0] sm:$0xff] %vm512_vm2, %v945_v11  ;;  %v1377_v20 = vadd.f32 %v1345_v15, %v1290_v63  ;;  %v1348_v21 = vld [vmem:[#allocation2 + $0xd8] sm:$0xff]  ;;  %v946_v22 = vadd.f32 %v914_v18, %v873_v17  ;;  %v4787_v26 = vpop.f32.mrb[46].mxu0  ;;  %v1765_v17 = vld [vmem:[#allocation2 + $0x40] sm:$0xff] }
 0x144   : > { %1411 = vst.msk [vmem:[#allocation2 + $0xd0] sm:$0xff] %vm512_vm2, %v1379_v14  ;;  %980 = vst.msk [vmem:[#allocation2 + $0xf8] sm:$0xff] %vm512_vm2, %v948_v16  ;;  %v1380_v24 = vadd.f32 %v4783_v2, %v1348_v21  ;;  %v1346_v25 = vld [vmem:[#allocation2 + $0xc8] sm:$0xff]  ;;  %v1309_v28 = vpop.f32.mrb[47].mxu0  ;;  %v1767_v14 = vld [vmem:[#allocation2 + $0x50] sm:$0xff] }
 0x145   : > { %1409 = vst.msk [vmem:[#allocation2 + $0xc0] sm:$0xff] %vm512_vm2, %v1377_v20  ;;  %978 = vst.msk [vmem:[#allocation2 + $0xe8] sm:$0xff] %vm512_vm2, %v946_v22  ;;  %v1378_v27 = vadd.f32 %v1346_v25, %v1293_v4  ;;  %v1762_v2 = vld [vmem:[#allocation2 + $0x28] sm:$0xff]  ;;  %v1768_v21 = vld [vmem:[#allocation2 + $0x58] sm:$0xff] }
 0x146   : > { %1412 = vst.msk [vmem:[#allocation2 + $0xd8] sm:$0xff] %vm512_vm2, %v1380_v24 }
 0x147   : > { %1410 = vst.msk [vmem:[#allocation2 + $0xc8] sm:$0xff] %vm512_vm2, %v1378_v27  ;;  %v4794_v29 = vpop.f32.mrb[48].mxu1 }
 0x148   : > { %v1791_v31 = vadd.f32 %v4794_v29, %v1759_v30  ;;  %v1630_v32 = vpop.f32.mrb[49].mxu1 }
 0x149   : > { %v1351_v34 = vld [vmem:[#allocation2 + $0xf0] sm:$0xff]  ;;  %v1789_v35 = vadd.f32 %v1757_v33, %v1630_v32  ;;  %v4795_v36 = vpop.f32.mrb[50].mxu1  ;;  %v4830_v43 = vpop.f32.mrb[48].mxu0 }
 0x14a   : > { %v1383_v38 = vadd.f32 %v4786_v19, %v1351_v34  ;;  %1823 = vst.msk [vmem:[#allocation2 + $0x10] sm:$0xff] %vm512_vm2, %v1791_v31  ;;  %v1349_v39 = vld [vmem:[#allocation2 + $0xe0] sm:$0xff]  ;;  %v1792_v40 = vadd.f32 %v4795_v36, %v1760_v37  ;;  %v1633_v41 = vpop.f32.mrb[51].mxu1  ;;  %v2066_v47 = vpop.f32.mrb[49].mxu0 }
 0x14b   : > { %v1381_v44 = vadd.f32 %v1349_v39, %v1306_v23  ;;  %1821 = vst.msk [vmem:[#allocation2] sm:$0xff] %vm512_vm2, %v1789_v35  ;;  %v1352_v45 = vld [vmem:[#allocation2 + $0xf8] sm:$0xff]  ;;  %v1790_v46 = vadd.f32 %v1758_v42, %v1633_v41  ;;  %v4831_v50 = vpop.f32.mrb[50].mxu0  ;;  %v1769_v41 = vld [vmem:[#allocation2 + $0x60] sm:$0xff] }
 0x14c   : > { %1415 = vst.msk [vmem:[#allocation2 + $0xf0] sm:$0xff] %vm512_vm2, %v1383_v38  ;;  %v1384_v48 = vadd.f32 %v4787_v26, %v1352_v45  ;;  %1824 = vst.msk [vmem:[#allocation2 + $0x18] sm:$0xff] %vm512_vm2, %v1792_v40  ;;  %v1350_v49 = vld [vmem:[#allocation2 + $0xe8] sm:$0xff]  ;;  %v2069_v52 = vpop.f32.mrb[51].mxu0  ;;  %v1771_v38 = vld [vmem:[#allocation2 + $0x70] sm:$0xff] }
 0x14d   : > { %1413 = vst.msk [vmem:[#allocation2 + $0xe0] sm:$0xff] %vm512_vm2, %v1381_v44  ;;  %v1382_v51 = vadd.f32 %v1350_v49, %v1309_v28  ;;  %1822 = vst.msk [vmem:[#allocation2 + $0x8] sm:$0xff] %vm512_vm2, %v1790_v46  ;;  %v1766_v26 = vld [vmem:[#allocation2 + $0x48] sm:$0xff]  ;;  %v1772_v45 = vld [vmem:[#allocation2 + $0x78] sm:$0xff] }
 0x14e   : > { %1416 = vst.msk [vmem:[#allocation2 + $0xf8] sm:$0xff] %vm512_vm2, %v1384_v48 }
 0x14f   : > { %1414 = vst.msk [vmem:[#allocation2 + $0xe8] sm:$0xff] %vm512_vm2, %v1382_v51  ;;  %v4798_v53 = vpop.f32.mrb[52].mxu1 }
 0x150   : > { %v1795_v55 = vadd.f32 %v4798_v53, %v1763_v54  ;;  %v1646_v56 = vpop.f32.mrb[53].mxu1 }
 0x151   : > { %v2195_v58 = vld [vmem:[#allocation2 + $0x10] sm:$0xff]  ;;  %v1793_v59 = vadd.f32 %v1761_v57, %v1646_v56  ;;  %v4799_v60 = vpop.f32.mrb[54].mxu1  ;;  %v4834_v3 = vpop.f32.mrb[52].mxu0 }
 0x152   : > { %1827 = vst.msk [vmem:[#allocation2 + $0x30] sm:$0xff] %vm512_vm2, %v1795_v55  ;;  %v2227_v62 = vadd.f32 %v4830_v43, %v2195_v58  ;;  %v2193_v63 = vld [vmem:[#allocation2] sm:$0xff]  ;;  %v1796_v0 = vadd.f32 %v4799_v60, %v1764_v61  ;;  %v1649_v1 = vpop.f32.mrb[55].mxu1  ;;  %v2082_v7 = vpop.f32.mrb[53].mxu0 }
 0x153   : > { %1825 = vst.msk [vmem:[#allocation2 + $0x20] sm:$0xff] %vm512_vm2, %v1793_v59  ;;  %v2225_v4 = vadd.f32 %v2193_v63, %v2066_v47  ;;  %v2196_v5 = vld [vmem:[#allocation2 + $0x18] sm:$0xff]  ;;  %v1794_v6 = vadd.f32 %v1762_v2, %v1649_v1  ;;  %v4835_v10 = vpop.f32.mrb[54].mxu0  ;;  %v1773_v1 = vld [vmem:[#allocation2 + $0x80] sm:$0xff] }
 0x154   : > { %2259 = vst.msk [vmem:[#allocation2 + $0x10] sm:$0xff] %vm512_vm2, %v2227_v62  ;;  %1828 = vst.msk [vmem:[#allocation2 + $0x38] sm:$0xff] %vm512_vm2, %v1796_v0  ;;  %v2228_v8 = vadd.f32 %v4831_v50, %v2196_v5  ;;  %v2194_v9 = vld [vmem:[#allocation2 + $0x8] sm:$0xff]  ;;  %v2085_v12 = vpop.f32.mrb[55].mxu0  ;;  %v1775_v62 = vld [vmem:[#allocation2 + $0x90] sm:$0xff] }
 0x155   : > { %2257 = vst.msk [vmem:[#allocation2] sm:$0xff] %vm512_vm2, %v2225_v4  ;;  %1826 = vst.msk [vmem:[#allocation2 + $0x28] sm:$0xff] %vm512_vm2, %v1794_v6  ;;  %v2226_v11 = vadd.f32 %v2194_v9, %v2069_v52  ;;  %v1770_v50 = vld [vmem:[#allocation2 + $0x68] sm:$0xff]  ;;  %v1776_v5 = vld [vmem:[#allocation2 + $0x98] sm:$0xff] }
 0x156   : > { %2260 = vst.msk [vmem:[#allocation2 + $0x18] sm:$0xff] %vm512_vm2, %v2228_v8 }
 0x157   : > { %2258 = vst.msk [vmem:[#allocation2 + $0x8] sm:$0xff] %vm512_vm2, %v2226_v11  ;;  %v4802_v13 = vpop.f32.mrb[56].mxu1 }
 0x158   : > { %v1799_v15 = vadd.f32 %v4802_v13, %v1767_v14  ;;  %v1662_v16 = vpop.f32.mrb[57].mxu1 }
 0x159   : > { %v2199_v18 = vld [vmem:[#allocation2 + $0x30] sm:$0xff]  ;;  %v1797_v19 = vadd.f32 %v1765_v17, %v1662_v16  ;;  %v4803_v20 = vpop.f32.mrb[58].mxu1  ;;  %v4838_v27 = vpop.f32.mrb[56].mxu0 }
 0x15a   : > { %1831 = vst.msk [vmem:[#allocation2 + $0x50] sm:$0xff] %vm512_vm2, %v1799_v15  ;;  %v2231_v22 = vadd.f32 %v4834_v3, %v2199_v18  ;;  %v2197_v23 = vld [vmem:[#allocation2 + $0x20] sm:$0xff]  ;;  %v1800_v24 = vadd.f32 %v4803_v20, %v1768_v21  ;;  %v1665_v25 = vpop.f32.mrb[59].mxu1  ;;  %v2098_v31 = vpop.f32.mrb[57].mxu0  ;;  %v5122_v21 = vmov 0.0  }
 0x15b   : > { %1829 = vst.msk [vmem:[#allocation2 + $0x40] sm:$0xff] %vm512_vm2, %v1797_v19  ;;  %v2229_v28 = vadd.f32 %v2197_v23, %v2082_v7  ;;  %v2200_v29 = vld [vmem:[#allocation2 + $0x38] sm:$0xff]  ;;  %v1798_v30 = vadd.f32 %v1766_v26, %v1665_v25  ;;  %v4839_v34 = vpop.f32.mrb[58].mxu0  ;;  %v1779_v23 = vld [vmem:[#allocation2 + $0xb0] sm:$0xff]  ;;  %v1777_v26 = vld [vmem:[#allocation2 + $0xa0] sm:$0xff] }
 0x15c   : > { %2263 = vst.msk [vmem:[#allocation2 + $0x30] sm:$0xff] %vm512_vm2, %v2231_v22  ;;  %1832 = vst.msk [vmem:[#allocation2 + $0x58] sm:$0xff] %vm512_vm2, %v1800_v24  ;;  %v2232_v32 = vadd.f32 %v4835_v10, %v2200_v29  ;;  %v2198_v33 = vld [vmem:[#allocation2 + $0x28] sm:$0xff]  ;;  %v2101_v36 = vpop.f32.mrb[59].mxu0 }
 0x15d   : > { %2261 = vst.msk [vmem:[#allocation2 + $0x20] sm:$0xff] %vm512_vm2, %v2229_v28  ;;  %1830 = vst.msk [vmem:[#allocation2 + $0x48] sm:$0xff] %vm512_vm2, %v1798_v30  ;;  %v2230_v35 = vadd.f32 %v2198_v33, %v2085_v12  ;;  %v1774_v10 = vld [vmem:[#allocation2 + $0x88] sm:$0xff]  ;;  %v1780_v30 = vld [vmem:[#allocation2 + $0xb8] sm:$0xff] }
 0x15e   : > { %2264 = vst.msk [vmem:[#allocation2 + $0x38] sm:$0xff] %vm512_vm2, %v2232_v32 }
 0x15f   : > { %2262 = vst.msk [vmem:[#allocation2 + $0x28] sm:$0xff] %vm512_vm2, %v2230_v35  ;;  %v4806_v37 = vpop.f32.mrb[60].mxu1  ;;  %v1778_v35 = vld [vmem:[#allocation2 + $0xa8] sm:$0xff] }
 0x160   : > { %v1803_v39 = vadd.f32 %v4806_v37, %v1771_v38  ;;  %v1678_v40 = vpop.f32.mrb[61].mxu1  ;;  %3269 = vst.msk [vmem:[#allocation3] sm:$0x1] %vm3267_vm3, %v5122_v21  ;;  %3270 = vst.msk [vmem:[#allocation4] sm:$0x1] %vm3267_vm3, %v5122_v21 }
 0x161   : > { %v2203_v42 = vld [vmem:[#allocation2 + $0x50] sm:$0xff]  ;;  %v1801_v43 = vadd.f32 %v1769_v41, %v1678_v40  ;;  %v4807_v44 = vpop.f32.mrb[62].mxu1  ;;  %v4842_v51 = vpop.f32.mrb[60].mxu0 }
 0x162   : > { %1835 = vst.msk [vmem:[#allocation2 + $0x70] sm:$0xff] %vm512_vm2, %v1803_v39  ;;  %v2235_v46 = vadd.f32 %v4838_v27, %v2203_v42  ;;  %v2201_v47 = vld [vmem:[#allocation2 + $0x40] sm:$0xff]  ;;  %v1804_v48 = vadd.f32 %v4807_v44, %v1772_v45  ;;  %v1681_v49 = vpop.f32.mrb[63].mxu1  ;;  %v2114_v55 = vpop.f32.mrb[61].mxu0 }
 0x163   : > { %1833 = vst.msk [vmem:[#allocation2 + $0x60] sm:$0xff] %vm512_vm2, %v1801_v43  ;;  %v2233_v52 = vadd.f32 %v2201_v47, %v2098_v31  ;;  %v2204_v53 = vld [vmem:[#allocation2 + $0x58] sm:$0xff]  ;;  %v1802_v54 = vadd.f32 %v1770_v50, %v1681_v49  ;;  %v4843_v58 = vpop.f32.mrb[62].mxu0  ;;  %v1783_v47 = vld [vmem:[#allocation2 + $0xd0] sm:$0xff]  ;;  %v1781_v50 = vld [vmem:[#allocation2 + $0xc0] sm:$0xff] }
 0x164   : > { %2267 = vst.msk [vmem:[#allocation2 + $0x50] sm:$0xff] %vm512_vm2, %v2235_v46  ;;  %1836 = vst.msk [vmem:[#allocation2 + $0x78] sm:$0xff] %vm512_vm2, %v1804_v48  ;;  %v2236_v56 = vadd.f32 %v4839_v34, %v2204_v53  ;;  %v2202_v57 = vld [vmem:[#allocation2 + $0x48] sm:$0xff]  ;;  %v2117_v60 = vpop.f32.mrb[63].mxu0 }
 0x165   : > { %2265 = vst.msk [vmem:[#allocation2 + $0x40] sm:$0xff] %vm512_vm2, %v2233_v52  ;;  %1834 = vst.msk [vmem:[#allocation2 + $0x68] sm:$0xff] %vm512_vm2, %v1802_v54  ;;  %v2234_v59 = vadd.f32 %v2202_v57, %v2101_v36  ;;  %v1784_v54 = vld [vmem:[#allocation2 + $0xd8] sm:$0xff] }
 0x166   : > { %2268 = vst.msk [vmem:[#allocation2 + $0x58] sm:$0xff] %vm512_vm2, %v2236_v56 }
 0x167   : > { %2266 = vst.msk [vmem:[#allocation2 + $0x48] sm:$0xff] %vm512_vm2, %v2234_v59  ;;  %v4810_v61 = vpop.f32.mrb[64].mxu1  ;;  %v1782_v59 = vld [vmem:[#allocation2 + $0xc8] sm:$0xff] }
 0x168   : > { %v1807_v63 = vadd.f32 %v4810_v61, %v1775_v62  ;;  %v1694_v0 = vpop.f32.mrb[65].mxu1 }
 0x169   : > { %v2207_v2 = vld [vmem:[#allocation2 + $0x70] sm:$0xff]  ;;  %v1805_v3 = vadd.f32 %v1773_v1, %v1694_v0  ;;  %v4811_v4 = vpop.f32.mrb[66].mxu1  ;;  %v4846_v11 = vpop.f32.mrb[64].mxu0 }
 0x16a   : > { %1839 = vst.msk [vmem:[#allocation2 + $0x90] sm:$0xff] %vm512_vm2, %v1807_v63  ;;  %v2239_v6 = vadd.f32 %v4842_v51, %v2207_v2  ;;  %v2205_v7 = vld [vmem:[#allocation2 + $0x60] sm:$0xff]  ;;  %v1808_v8 = vadd.f32 %v4811_v4, %v1776_v5  ;;  %v1697_v9 = vpop.f32.mrb[67].mxu1  ;;  %v2130_v15 = vpop.f32.mrb[65].mxu0 }
 0x16b   : > { %1837 = vst.msk [vmem:[#allocation2 + $0x80] sm:$0xff] %vm512_vm2, %v1805_v3  ;;  %v2237_v12 = vadd.f32 %v2205_v7, %v2114_v55  ;;  %v2208_v13 = vld [vmem:[#allocation2 + $0x78] sm:$0xff]  ;;  %v1806_v14 = vadd.f32 %v1774_v10, %v1697_v9  ;;  %v4847_v18 = vpop.f32.mrb[66].mxu0  ;;  %v1787_v7 = vld [vmem:[#allocation2 + $0xf0] sm:$0xff]  ;;  %v1785_v10 = vld [vmem:[#allocation2 + $0xe0] sm:$0xff] }
 0x16c   : > { %2271 = vst.msk [vmem:[#allocation2 + $0x70] sm:$0xff] %vm512_vm2, %v2239_v6  ;;  %1840 = vst.msk [vmem:[#allocation2 + $0x98] sm:$0xff] %vm512_vm2, %v1808_v8  ;;  %v2240_v16 = vadd.f32 %v4843_v58, %v2208_v13  ;;  %v2206_v17 = vld [vmem:[#allocation2 + $0x68] sm:$0xff]  ;;  %v2133_v20 = vpop.f32.mrb[67].mxu0 }
 0x16d   : > { %2269 = vst.msk [vmem:[#allocation2 + $0x60] sm:$0xff] %vm512_vm2, %v2237_v12  ;;  %1838 = vst.msk [vmem:[#allocation2 + $0x88] sm:$0xff] %vm512_vm2, %v1806_v14  ;;  %v2238_v19 = vadd.f32 %v2206_v17, %v2117_v60  ;;  %v1788_v14 = vld [vmem:[#allocation2 + $0xf8] sm:$0xff] }
 0x16e   : > { %2272 = vst.msk [vmem:[#allocation2 + $0x78] sm:$0xff] %vm512_vm2, %v2240_v16 }
 0x16f   : > { %2270 = vst.msk [vmem:[#allocation2 + $0x68] sm:$0xff] %vm512_vm2, %v2238_v19  ;;  %v4814_v22 = vpop.f32.mrb[68].mxu1  ;;  %v1786_v19 = vld [vmem:[#allocation2 + $0xe8] sm:$0xff] }
 0x170   : > { %v1811_v24 = vadd.f32 %v4814_v22, %v1779_v23  ;;  %v1710_v25 = vpop.f32.mrb[69].mxu1 }
 0x171   : > { %v2211_v27 = vld [vmem:[#allocation2 + $0x90] sm:$0xff]  ;;  %v1809_v28 = vadd.f32 %v1777_v26, %v1710_v25  ;;  %v4815_v29 = vpop.f32.mrb[70].mxu1  ;;  %v4850_v36 = vpop.f32.mrb[68].mxu0 }
 0x172   : > { %1843 = vst.msk [vmem:[#allocation2 + $0xb0] sm:$0xff] %vm512_vm2, %v1811_v24  ;;  %v2243_v31 = vadd.f32 %v4846_v11, %v2211_v27  ;;  %v2209_v32 = vld [vmem:[#allocation2 + $0x80] sm:$0xff]  ;;  %v1812_v33 = vadd.f32 %v4815_v29, %v1780_v30  ;;  %v1713_v34 = vpop.f32.mrb[71].mxu1  ;;  %v2146_v40 = vpop.f32.mrb[69].mxu0 }
 0x173   : > { %1841 = vst.msk [vmem:[#allocation2 + $0xa0] sm:$0xff] %vm512_vm2, %v1809_v28  ;;  %v2241_v37 = vadd.f32 %v2209_v32, %v2130_v15  ;;  %v2212_v38 = vld [vmem:[#allocation2 + $0x98] sm:$0xff]  ;;  %v1810_v39 = vadd.f32 %v1778_v35, %v1713_v34  ;;  %v4851_v43 = vpop.f32.mrb[70].mxu0  ;;  %v2629_v34 = vld [vmem:[#allocation2] sm:$0xff] }
 0x174   : > { %2275 = vst.msk [vmem:[#allocation2 + $0x90] sm:$0xff] %vm512_vm2, %v2243_v31  ;;  %1844 = vst.msk [vmem:[#allocation2 + $0xb8] sm:$0xff] %vm512_vm2, %v1812_v33  ;;  %v2244_v41 = vadd.f32 %v4847_v18, %v2212_v38  ;;  %v2210_v42 = vld [vmem:[#allocation2 + $0x88] sm:$0xff]  ;;  %v2149_v45 = vpop.f32.mrb[71].mxu0  ;;  %v2631_v31 = vld [vmem:[#allocation2 + $0x10] sm:$0xff] }
 0x175   : > { %2273 = vst.msk [vmem:[#allocation2 + $0x80] sm:$0xff] %vm512_vm2, %v2241_v37  ;;  %1842 = vst.msk [vmem:[#allocation2 + $0xa8] sm:$0xff] %vm512_vm2, %v1810_v39  ;;  %v2242_v44 = vadd.f32 %v2210_v42, %v2133_v20  ;;  %v2632_v38 = vld [vmem:[#allocation2 + $0x18] sm:$0xff] }
 0x176   : > { %2276 = vst.msk [vmem:[#allocation2 + $0x98] sm:$0xff] %vm512_vm2, %v2244_v41 }
 0x177   : > { %2274 = vst.msk [vmem:[#allocation2 + $0x88] sm:$0xff] %vm512_vm2, %v2242_v44  ;;  %v4818_v46 = vpop.f32.mrb[72].mxu1 }
 0x178   : > { %v1815_v48 = vadd.f32 %v4818_v46, %v1783_v47  ;;  %v1726_v49 = vpop.f32.mrb[73].mxu1 }
 0x179   : > { %v2215_v51 = vld [vmem:[#allocation2 + $0xb0] sm:$0xff]  ;;  %v1813_v52 = vadd.f32 %v1781_v50, %v1726_v49  ;;  %v4819_v53 = vpop.f32.mrb[74].mxu1  ;;  %v4854_v60 = vpop.f32.mrb[72].mxu0 }
 0x17a   : > { %1847 = vst.msk [vmem:[#allocation2 + $0xd0] sm:$0xff] %vm512_vm2, %v1815_v48  ;;  %v2247_v55 = vadd.f32 %v4850_v36, %v2215_v51  ;;  %v2213_v56 = vld [vmem:[#allocation2 + $0xa0] sm:$0xff]  ;;  %v1816_v57 = vadd.f32 %v4819_v53, %v1784_v54  ;;  %v1729_v58 = vpop.f32.mrb[75].mxu1  ;;  %v2162_v0 = vpop.f32.mrb[73].mxu0 }
 0x17b   : > { %1845 = vst.msk [vmem:[#allocation2 + $0xc0] sm:$0xff] %vm512_vm2, %v1813_v52  ;;  %v2245_v61 = vadd.f32 %v2213_v56, %v2146_v40  ;;  %v2216_v62 = vld [vmem:[#allocation2 + $0xb8] sm:$0xff]  ;;  %v1814_v63 = vadd.f32 %v1782_v59, %v1729_v58  ;;  %v4855_v3 = vpop.f32.mrb[74].mxu0  ;;  %v2633_v58 = vld [vmem:[#allocation2 + $0x20] sm:$0xff] }
 0x17c   : > { %2279 = vst.msk [vmem:[#allocation2 + $0xb0] sm:$0xff] %vm512_vm2, %v2247_v55  ;;  %1848 = vst.msk [vmem:[#allocation2 + $0xd8] sm:$0xff] %vm512_vm2, %v1816_v57  ;;  %v2248_v1 = vadd.f32 %v4851_v43, %v2216_v62  ;;  %v2214_v2 = vld [vmem:[#allocation2 + $0xa8] sm:$0xff]  ;;  %v2165_v5 = vpop.f32.mrb[75].mxu0  ;;  %v2635_v55 = vld [vmem:[#allocation2 + $0x30] sm:$0xff] }
 0x17d   : > { %2277 = vst.msk [vmem:[#allocation2 + $0xa0] sm:$0xff] %vm512_vm2, %v2245_v61  ;;  %1846 = vst.msk [vmem:[#allocation2 + $0xc8] sm:$0xff] %vm512_vm2, %v1814_v63  ;;  %v2246_v4 = vadd.f32 %v2214_v2, %v2149_v45  ;;  %v2630_v43 = vld [vmem:[#allocation2 + $0x8] sm:$0xff]  ;;  %v2636_v62 = vld [vmem:[#allocation2 + $0x38] sm:$0xff] }
 0x17e   : > { %2280 = vst.msk [vmem:[#allocation2 + $0xb8] sm:$0xff] %vm512_vm2, %v2248_v1 }
 0x17f   : > { %2278 = vst.msk [vmem:[#allocation2 + $0xa8] sm:$0xff] %vm512_vm2, %v2246_v4  ;;  %v4822_v6 = vpop.f32.mrb[76].mxu1 }
 0x180   : > { %v1819_v8 = vadd.f32 %v4822_v6, %v1787_v7  ;;  %v1742_v9 = vpop.f32.mrb[77].mxu1 }
 0x181   : > { %v2219_v11 = vld [vmem:[#allocation2 + $0xd0] sm:$0xff]  ;;  %v1817_v12 = vadd.f32 %v1785_v10, %v1742_v9  ;;  %v4823_v13 = vpop.f32.mrb[78].mxu1  ;;  %v4858_v20 = vpop.f32.mrb[76].mxu0 }
 0x182   : > { %1851 = vst.msk [vmem:[#allocation2 + $0xf0] sm:$0xff] %vm512_vm2, %v1819_v8  ;;  %v2251_v15 = vadd.f32 %v4854_v60, %v2219_v11  ;;  %v2217_v16 = vld [vmem:[#allocation2 + $0xc0] sm:$0xff]  ;;  %v1820_v17 = vadd.f32 %v4823_v13, %v1788_v14  ;;  %v1745_v18 = vpop.f32.mrb[79].mxu1  ;;  %v2178_v24 = vpop.f32.mrb[77].mxu0 }
 0x183   : > { %1849 = vst.msk [vmem:[#allocation2 + $0xe0] sm:$0xff] %vm512_vm2, %v1817_v12  ;;  %v2249_v21 = vadd.f32 %v2217_v16, %v2162_v0  ;;  %v2220_v22 = vld [vmem:[#allocation2 + $0xd8] sm:$0xff]  ;;  %v1818_v23 = vadd.f32 %v1786_v19, %v1745_v18  ;;  %v4859_v27 = vpop.f32.mrb[78].mxu0  ;;  %v2637_v18 = vld [vmem:[#allocation2 + $0x40] sm:$0xff] }
 0x184   : > { %2283 = vst.msk [vmem:[#allocation2 + $0xd0] sm:$0xff] %vm512_vm2, %v2251_v15  ;;  %1852 = vst.msk [vmem:[#allocation2 + $0xf8] sm:$0xff] %vm512_vm2, %v1820_v17  ;;  %v2252_v25 = vadd.f32 %v4855_v3, %v2220_v22  ;;  %v2218_v26 = vld [vmem:[#allocation2 + $0xc8] sm:$0xff]  ;;  %v2181_v29 = vpop.f32.mrb[79].mxu0  ;;  %v2639_v15 = vld [vmem:[#allocation2 + $0x50] sm:$0xff] }
 0x185   : > { %2281 = vst.msk [vmem:[#allocation2 + $0xc0] sm:$0xff] %vm512_vm2, %v2249_v21  ;;  %1850 = vst.msk [vmem:[#allocation2 + $0xe8] sm:$0xff] %vm512_vm2, %v1818_v23  ;;  %v2250_v28 = vadd.f32 %v2218_v26, %v2165_v5  ;;  %v2634_v3 = vld [vmem:[#allocation2 + $0x28] sm:$0xff]  ;;  %v2640_v22 = vld [vmem:[#allocation2 + $0x58] sm:$0xff] }
 0x186   : > { %2284 = vst.msk [vmem:[#allocation2 + $0xd8] sm:$0xff] %vm512_vm2, %v2252_v25 }
 0x187   : > { %2282 = vst.msk [vmem:[#allocation2 + $0xc8] sm:$0xff] %vm512_vm2, %v2250_v28  ;;  %v4866_v30 = vpop.f32.mrb[80].mxu1 }
 0x188   : > { %v2663_v32 = vadd.f32 %v4866_v30, %v2631_v31  ;;  %v2502_v33 = vpop.f32.mrb[81].mxu1 }
 0x189   : > { %v2223_v35 = vld [vmem:[#allocation2 + $0xf0] sm:$0xff]  ;;  %v2661_v36 = vadd.f32 %v2629_v34, %v2502_v33  ;;  %v4867_v37 = vpop.f32.mrb[82].mxu1  ;;  %v4902_v44 = vpop.f32.mrb[80].mxu0 }
 0x18a   : > { %v2255_v39 = vadd.f32 %v4858_v20, %v2223_v35  ;;  %2695 = vst.msk [vmem:[#allocation2 + $0x10] sm:$0xff] %vm512_vm2, %v2663_v32  ;;  %v2221_v40 = vld [vmem:[#allocation2 + $0xe0] sm:$0xff]  ;;  %v2664_v41 = vadd.f32 %v4867_v37, %v2632_v38  ;;  %v2505_v42 = vpop.f32.mrb[83].mxu1  ;;  %v2938_v48 = vpop.f32.mrb[81].mxu0 }
 0x18b   : > { %v2253_v45 = vadd.f32 %v2221_v40, %v2178_v24  ;;  %2693 = vst.msk [vmem:[#allocation2] sm:$0xff] %vm512_vm2, %v2661_v36  ;;  %v2224_v46 = vld [vmem:[#allocation2 + $0xf8] sm:$0xff]  ;;  %v2662_v47 = vadd.f32 %v2630_v43, %v2505_v42  ;;  %v4903_v51 = vpop.f32.mrb[82].mxu0 }
 0x18c   : > { %2287 = vst.msk [vmem:[#allocation2 + $0xf0] sm:$0xff] %vm512_vm2, %v2255_v39  ;;  %v2256_v49 = vadd.f32 %v4859_v27, %v2224_v46  ;;  %2696 = vst.msk [vmem:[#allocation2 + $0x18] sm:$0xff] %vm512_vm2, %v2664_v41  ;;  %v2222_v50 = vld [vmem:[#allocation2 + $0xe8] sm:$0xff]  ;;  %v2941_v53 = vpop.f32.mrb[83].mxu0 }
 0x18d   : > { %2285 = vst.msk [vmem:[#allocation2 + $0xe0] sm:$0xff] %vm512_vm2, %v2253_v45  ;;  %v2254_v52 = vadd.f32 %v2222_v50, %v2181_v29  ;;  %2694 = vst.msk [vmem:[#allocation2 + $0x8] sm:$0xff] %vm512_vm2, %v2662_v47  ;;  %v2638_v27 = vld [vmem:[#allocation2 + $0x48] sm:$0xff] }
 0x18e   : > { %2288 = vst.msk [vmem:[#allocation2 + $0xf8] sm:$0xff] %vm512_vm2, %v2256_v49  ;;  %v2643_v49 = vld [vmem:[#allocation2 + $0x70] sm:$0xff] }
 0x18f   : > { %2286 = vst.msk [vmem:[#allocation2 + $0xe8] sm:$0xff] %vm512_vm2, %v2254_v52  ;;  %v4870_v54 = vpop.f32.mrb[84].mxu1 }
 0x190   : > { %v2667_v56 = vadd.f32 %v4870_v54, %v2635_v55  ;;  %v2518_v57 = vpop.f32.mrb[85].mxu1 }
 0x191   : > { %v3067_v59 = vld [vmem:[#allocation2 + $0x10] sm:$0xff]  ;;  %v2665_v60 = vadd.f32 %v2633_v58, %v2518_v57  ;;  %v4871_v61 = vpop.f32.mrb[86].mxu1  ;;  %v4906_v4 = vpop.f32.mrb[84].mxu0  ;;  %v2644_v58 = vld [vmem:[#allocation2 + $0x78] sm:$0xff] }
 0x192   : > { %2699 = vst.msk [vmem:[#allocation2 + $0x30] sm:$0xff] %vm512_vm2, %v2667_v56  ;;  %v3099_v63 = vadd.f32 %v4902_v44, %v3067_v59  ;;  %v3065_v0 = vld [vmem:[#allocation2] sm:$0xff]  ;;  %v2668_v1 = vadd.f32 %v4871_v61, %v2636_v62  ;;  %v2521_v2 = vpop.f32.mrb[87].mxu1  ;;  %v2954_v8 = vpop.f32.mrb[85].mxu0 }
 0x193   : > { %2697 = vst.msk [vmem:[#allocation2 + $0x20] sm:$0xff] %vm512_vm2, %v2665_v60  ;;  %v3097_v5 = vadd.f32 %v3065_v0, %v2938_v48  ;;  %v3068_v6 = vld [vmem:[#allocation2 + $0x18] sm:$0xff]  ;;  %v2666_v7 = vadd.f32 %v2634_v3, %v2521_v2  ;;  %v4907_v11 = vpop.f32.mrb[86].mxu0  ;;  %v2642_v0 = vld [vmem:[#allocation2 + $0x68] sm:$0xff] }
 0x194   : > { %3131 = vst.msk [vmem:[#allocation2 + $0x10] sm:$0xff] %vm512_vm2, %v3099_v63  ;;  %2700 = vst.msk [vmem:[#allocation2 + $0x38] sm:$0xff] %vm512_vm2, %v2668_v1  ;;  %v3100_v9 = vadd.f32 %v4903_v51, %v3068_v6  ;;  %v3066_v10 = vld [vmem:[#allocation2 + $0x8] sm:$0xff]  ;;  %v2957_v13 = vpop.f32.mrb[87].mxu0 }
 0x195   : > { %3129 = vst.msk [vmem:[#allocation2] sm:$0xff] %vm512_vm2, %v3097_v5  ;;  %2698 = vst.msk [vmem:[#allocation2 + $0x28] sm:$0xff] %vm512_vm2, %v2666_v7  ;;  %v3098_v12 = vadd.f32 %v3066_v10, %v2941_v53  ;;  %v2641_v53 = vld [vmem:[#allocation2 + $0x60] sm:$0xff] }
 0x196   : > { %3132 = vst.msk [vmem:[#allocation2 + $0x18] sm:$0xff] %vm512_vm2, %v3100_v9 }
 0x197   : > { %3130 = vst.msk [vmem:[#allocation2 + $0x8] sm:$0xff] %vm512_vm2, %v3098_v12  ;;  %v4874_v14 = vpop.f32.mrb[88].mxu1 }
 0x198   : > { %v2671_v16 = vadd.f32 %v4874_v14, %v2639_v15  ;;  %v2534_v17 = vpop.f32.mrb[89].mxu1 }
 0x199   : > { %v3071_v19 = vld [vmem:[#allocation2 + $0x30] sm:$0xff]  ;;  %v2669_v20 = vadd.f32 %v2637_v18, %v2534_v17  ;;  %v4875_v21 = vpop.f32.mrb[90].mxu1  ;;  %v4910_v28 = vpop.f32.mrb[88].mxu0 }
 0x19a   : > { %2703 = vst.msk [vmem:[#allocation2 + $0x50] sm:$0xff] %vm512_vm2, %v2671_v16  ;;  %v3103_v23 = vadd.f32 %v4906_v4, %v3071_v19  ;;  %v3069_v24 = vld [vmem:[#allocation2 + $0x20] sm:$0xff]  ;;  %v2672_v25 = vadd.f32 %v4875_v21, %v2640_v22  ;;  %v2537_v26 = vpop.f32.mrb[91].mxu1  ;;  %v2970_v33 = vpop.f32.mrb[89].mxu0 }
 0x19b   : > { %v5630_v29 = vld [vmem:[#allocation2 + $0x10] sm:$0xff]  ;;  %2701 = vst.msk [vmem:[#allocation2 + $0x40] sm:$0xff] %vm512_vm2, %v2669_v20  ;;  %v3101_v30 = vadd.f32 %v3069_v24, %v2954_v8  ;;  %v3072_v31 = vld [vmem:[#allocation2 + $0x38] sm:$0xff]  ;;  %v2670_v32 = vadd.f32 %v2638_v27, %v2537_v26  ;;  %v4911_v38 = vpop.f32.mrb[90].mxu0 }
 0x19c   : > { %v4413_v34 = vpack.c.bf16 %v5630_v29, %v5630_v29  ;;  %v5635_v35 = vld [vmem:[#allocation2] sm:$0xff]  ;;  %3135 = vst.msk [vmem:[#allocation2 + $0x30] sm:$0xff] %vm512_vm2, %v3103_v23  ;;  %2704 = vst.msk [vmem:[#allocation2 + $0x58] sm:$0xff] %vm512_vm2, %v2672_v25  ;;  %v3104_v36 = vadd.f32 %v4907_v11, %v3072_v31  ;;  %v3070_v37 = vld [vmem:[#allocation2 + $0x28] sm:$0xff]  ;;  %v2973_v42 = vpop.f32.mrb[91].mxu0  ;;  %v3200_v54 = vsel %vm512_vm2, %v5630_v29, 0.0 }
 0x19d   : > { %v4411_v39 = vpack.c.bf16 %v5635_v35, %v5635_v35  ;;  %v5641_v40 = vld [vmem:[#allocation2 + $0x18] sm:$0xff]  ;;  %3133 = vst.msk [vmem:[#allocation2 + $0x20] sm:$0xff] %vm512_vm2, %v3101_v30  ;;  %2702 = vst.msk [vmem:[#allocation2 + $0x48] sm:$0xff] %vm512_vm2, %v2670_v32  ;;  %v3102_v41 = vadd.f32 %v3070_v37, %v2957_v13  ;;  %v3197_v45 = vsel %vm512_vm2, %v5635_v35, 0.0  ;;  %v2647_v25 = vld [vmem:[#allocation2 + $0x90] sm:$0xff] }
 0x19e   : > { %3623 = vst.msk [vmem:[%s5628_s24 + $0x8] sm:$0xf] %vm3620_vm4, %v4413_v34  ;;  %v4414_v43 = vpack.c.bf16 %v5641_v40, %v5641_v40  ;;  %v5649_v44 = vld [vmem:[#allocation2 + $0x8] sm:$0xff]  ;;  %v3202_v2 = vsel %vm512_vm2, %v5641_v40, 0.0  ;;  %v2645_v30 = vld [vmem:[#allocation2 + $0x80] sm:$0xff] }
 0x19f   : > { %3136 = vst.msk [vmem:[#allocation2 + $0x38] sm:$0xff] %vm512_vm2, %v3104_v36  ;;  %v3198_v46 = vsel %vm512_vm2, %v5649_v44, 0.0  ;;  %v4412_v47 = vpack.c.bf16 %v5649_v44, %v5649_v44  ;;  %3134 = vst.msk [vmem:[#allocation2 + $0x28] sm:$0xff] %vm512_vm2, %v3102_v41  ;;  %v4878_v48 = vpop.f32.mrb[92].mxu1  ;;  %v2648_v36 = vld [vmem:[#allocation2 + $0x98] sm:$0xff] }
 0x1a0   : > { %3621 = vst.msk [vmem:[%s5628_s24] sm:$0xf] %vm3620_vm4, %v4411_v39  ;;  %3624 = vst.msk [vmem:[%s5628_s24 + $0xc] sm:$0xf] %vm3620_vm4, %v4414_v43  ;;  %v3199_v50 = vadd.f32 %v3198_v46, %v3197_v45  ;;  %v2675_v51 = vadd.f32 %v4878_v48, %v2643_v49  ;;  %v2550_v52 = vpop.f32.mrb[93].mxu1  ;;  %v2646_v43 = vld [vmem:[#allocation2 + $0x88] sm:$0xff] }
 0x1a1   : > { %3622 = vst.msk [vmem:[%s5628_s24 + $0x4] sm:$0xf] %vm3620_vm4, %v4412_v47  ;;  %v3075_v55 = vld [vmem:[#allocation2 + $0x50] sm:$0xff]  ;;  %v2673_v56 = vadd.f32 %v2641_v53, %v2550_v52  ;;  %v4879_v57 = vpop.f32.mrb[94].mxu1  ;;  %v4914_v1 = vpop.f32.mrb[92].mxu0 }
 0x1a2   : > { %v3201_v59 = vadd.f32 %v3200_v54, %v3199_v50  ;;  %2707 = vst.msk [vmem:[#allocation2 + $0x70] sm:$0xff] %vm512_vm2, %v2675_v51  ;;  %v3107_v60 = vadd.f32 %v4910_v28, %v3075_v55  ;;  %v3073_v61 = vld [vmem:[#allocation2 + $0x40] sm:$0xff]  ;;  %v2676_v62 = vadd.f32 %v4879_v57, %v2644_v58  ;;  %v2553_v63 = vpop.f32.mrb[95].mxu1  ;;  %v2986_v7 = vpop.f32.mrb[93].mxu0 }
 0x1a3   : > { %v5670_v3 = vld [vmem:[#allocation2 + $0x30] sm:$0xff]  ;;  %2705 = vst.msk [vmem:[#allocation2 + $0x60] sm:$0xff] %vm512_vm2, %v2673_v56  ;;  %v3105_v4 = vadd.f32 %v3073_v61, %v2970_v33  ;;  %v3076_v5 = vld [vmem:[#allocation2 + $0x58] sm:$0xff]  ;;  %v2674_v6 = vadd.f32 %v2642_v0, %v2553_v63  ;;  %v4915_v13 = vpop.f32.mrb[94].mxu0 }
 0x1a4   : > { %v4417_v8 = vpack.c.bf16 %v5670_v3, %v5670_v3  ;;  %v5675_v9 = vld [vmem:[#allocation2 + $0x20] sm:$0xff]  ;;  %v3203_v10 = vadd.f32 %v3202_v2, %v3201_v59  ;;  %3139 = vst.msk [vmem:[#allocation2 + $0x50] sm:$0xff] %vm512_vm2, %v3107_v60  ;;  %2708 = vst.msk [vmem:[#allocation2 + $0x78] sm:$0xff] %vm512_vm2, %v2676_v62  ;;  %v3108_v11 = vadd.f32 %v4911_v38, %v3076_v5  ;;  %v3074_v12 = vld [vmem:[#allocation2 + $0x48] sm:$0xff]  ;;  %v2989_v18 = vpop.f32.mrb[95].mxu0  ;;  %v3208_v31 = vsel %vm512_vm2, %v5670_v3, 0.0 }
 0x1a5   : > { %v3204_v14 = vsel %vm512_vm2, %v5675_v9, 0.0  ;;  %v4415_v15 = vpack.c.bf16 %v5675_v9, %v5675_v9  ;;  %3137 = vst.msk [vmem:[#allocation2 + $0x40] sm:$0xff] %vm512_vm2, %v3105_v4  ;;  %2706 = vst.msk [vmem:[#allocation2 + $0x68] sm:$0xff] %vm512_vm2, %v2674_v6  ;;  %v3106_v17 = vadd.f32 %v3074_v12, %v2973_v42  ;;  %v2651_v6 = vld [vmem:[#allocation2 + $0xb0] sm:$0xff] }
 0x1a6   : > { %v5683_v16 = vld [vmem:[#allocation2 + $0x38] sm:$0xff]  ;;  %3627 = vst.msk [vmem:[%s5628_s24 + $0x18] sm:$0xf] %vm3620_vm4, %v4417_v8  ;;  %v3205_v19 = vadd.f32 %v3204_v14, %v3203_v10  ;;  %v5691_v21 = vld [vmem:[#allocation2 + $0x28] sm:$0xff] }
 0x1a7   : > { %v4418_v20 = vpack.c.bf16 %v5683_v16, %v5683_v16  ;;  %3140 = vst.msk [vmem:[#allocation2 + $0x58] sm:$0xff] %vm512_vm2, %v3108_v11  ;;  %v3206_v22 = vsel %vm512_vm2, %v5691_v21, 0.0  ;;  %v4416_v23 = vpack.c.bf16 %v5691_v21, %v5691_v21  ;;  %3138 = vst.msk [vmem:[#allocation2 + $0x48] sm:$0xff] %vm512_vm2, %v3106_v17  ;;  %v4882_v24 = vpop.f32.mrb[96].mxu1  ;;  %v3210_v46 = vsel %vm512_vm2, %v5683_v16, 0.0  ;;  %v2649_v11 = vld [vmem:[#allocation2 + $0xa0] sm:$0xff] }
 0x1a8   : > { %3625 = vst.msk [vmem:[%s5628_s24 + $0x10] sm:$0xf] %vm3620_vm4, %v4415_v15  ;;  %v3207_v26 = vadd.f32 %v3206_v22, %v3205_v19  ;;  %v2679_v27 = vadd.f32 %v4882_v24, %v2647_v25  ;;  %v2566_v28 = vpop.f32.mrb[97].mxu1  ;;  %v2652_v17 = vld [vmem:[#allocation2 + $0xb8] sm:$0xff]  ;;  %v2650_v24 = vld [vmem:[#allocation2 + $0xa8] sm:$0xff] }
 0x1a9   : > { %3628 = vst.msk [vmem:[%s5628_s24 + $0x1c] sm:$0xf] %vm3620_vm4, %v4418_v20  ;;  %3626 = vst.msk [vmem:[%s5628_s24 + $0x14] sm:$0xf] %vm3620_vm4, %v4416_v23  ;;  %v3079_v32 = vld [vmem:[#allocation2 + $0x70] sm:$0xff]  ;;  %v2677_v33 = vadd.f32 %v2645_v30, %v2566_v28  ;;  %v4883_v34 = vpop.f32.mrb[98].mxu1 }
 0x1aa   : > { %v3209_v37 = vadd.f32 %v3208_v31, %v3207_v26  ;;  %2711 = vst.msk [vmem:[#allocation2 + $0x90] sm:$0xff] %vm512_vm2, %v2679_v27  ;;  %v3111_v38 = vadd.f32 %v4914_v1, %v3079_v32  ;;  %v3077_v39 = vld [vmem:[#allocation2 + $0x60] sm:$0xff]  ;;  %v2680_v41 = vadd.f32 %v4883_v34, %v2648_v36  ;;  %v2569_v42 = vpop.f32.mrb[99].mxu1  ;;  %v4918_v45 = vpop.f32.mrb[96].mxu0 }
 0x1ab   : > { %v5710_v47 = vld [vmem:[#allocation2 + $0x50] sm:$0xff]  ;;  %2709 = vst.msk [vmem:[#allocation2 + $0x80] sm:$0xff] %vm512_vm2, %v2677_v33  ;;  %v3109_v48 = vadd.f32 %v3077_v39, %v2986_v7  ;;  %v3080_v49 = vld [vmem:[#allocation2 + $0x78] sm:$0xff]  ;;  %v2678_v50 = vadd.f32 %v2646_v43, %v2569_v42  ;;  %v3002_v51 = vpop.f32.mrb[97].mxu0 }
 0x1ac   : > { %v4421_v52 = vpack.c.bf16 %v5710_v47, %v5710_v47  ;;  %v5715_v53 = vld [vmem:[#allocation2 + $0x40] sm:$0xff]  ;;  %v3211_v54 = vadd.f32 %v3210_v46, %v3209_v37  ;;  %3143 = vst.msk [vmem:[#allocation2 + $0x70] sm:$0xff] %vm512_vm2, %v3111_v38  ;;  %2712 = vst.msk [vmem:[#allocation2 + $0x98] sm:$0xff] %vm512_vm2, %v2680_v41  ;;  %v3112_v55 = vadd.f32 %v4915_v13, %v3080_v49  ;;  %v3078_v56 = vld [vmem:[#allocation2 + $0x68] sm:$0xff]  ;;  %v4919_v57 = vpop.f32.mrb[98].mxu0  ;;  %v3216_v12 = vsel %vm512_vm2, %v5710_v47, 0.0 }
 0x1ad   : > { %v3212_v58 = vsel %vm512_vm2, %v5715_v53, 0.0  ;;  %v4419_v59 = vpack.c.bf16 %v5715_v53, %v5715_v53  ;;  %3141 = vst.msk [vmem:[#allocation2 + $0x60] sm:$0xff] %vm512_vm2, %v3109_v48  ;;  %2710 = vst.msk [vmem:[#allocation2 + $0x88] sm:$0xff] %vm512_vm2, %v2678_v50  ;;  %v3110_v61 = vadd.f32 %v3078_v56, %v2989_v18  ;;  %v3005_v62 = vpop.f32.mrb[99].mxu0 }
 0x1ae   : > { %v5723_v60 = vld [vmem:[#allocation2 + $0x58] sm:$0xff]  ;;  %3631 = vst.msk [vmem:[%s5628_s24 + $0x28] sm:$0xf] %vm3620_vm4, %v4421_v52  ;;  %v3213_v63 = vadd.f32 %v3212_v58, %v3211_v54  ;;  %v5731_v1 = vld [vmem:[#allocation2 + $0x48] sm:$0xff] }
 0x1af   : > { %v4422_v0 = vpack.c.bf16 %v5723_v60, %v5723_v60  ;;  %3144 = vst.msk [vmem:[#allocation2 + $0x78] sm:$0xff] %vm512_vm2, %v3112_v55  ;;  %v3214_v2 = vsel %vm512_vm2, %v5731_v1, 0.0  ;;  %v4420_v4 = vpack.c.bf16 %v5731_v1, %v5731_v1  ;;  %3142 = vst.msk [vmem:[#allocation2 + $0x68] sm:$0xff] %vm512_vm2, %v3110_v61  ;;  %v4886_v5 = vpop.f32.mrb[100].mxu1  ;;  %v3218_v26 = vsel %vm512_vm2, %v5723_v60, 0.0  ;;  %v2655_v55 = vld [vmem:[#allocation2 + $0xd0] sm:$0xff] }
 0x1b0   : > { %3629 = vst.msk [vmem:[%s5628_s24 + $0x20] sm:$0xf] %vm3620_vm4, %v4419_v59  ;;  %v3215_v7 = vadd.f32 %v3214_v2, %v3213_v63  ;;  %v2683_v8 = vadd.f32 %v4886_v5, %v2651_v6  ;;  %v2582_v10 = vpop.f32.mrb[101].mxu1  ;;  %v2653_v59 = vld [vmem:[#allocation2 + $0xc0] sm:$0xff]  ;;  %v2656_v2 = vld [vmem:[#allocation2 + $0xd8] sm:$0xff] }
 0x1b1   : > { %3632 = vst.msk [vmem:[%s5628_s24 + $0x2c] sm:$0xf] %vm3620_vm4, %v4422_v0  ;;  %3630 = vst.msk [vmem:[%s5628_s24 + $0x24] sm:$0xf] %vm3620_vm4, %v4420_v4  ;;  %v3083_v13 = vld [vmem:[#allocation2 + $0x90] sm:$0xff]  ;;  %v2681_v14 = vadd.f32 %v2649_v11, %v2582_v10  ;;  %v4887_v15 = vpop.f32.mrb[102].mxu1 }
 0x1b2   : > { %v3217_v18 = vadd.f32 %v3216_v12, %v3215_v7  ;;  %2715 = vst.msk [vmem:[#allocation2 + $0xb0] sm:$0xff] %vm512_vm2, %v2683_v8  ;;  %v3115_v19 = vadd.f32 %v4918_v45, %v3083_v13  ;;  %v3081_v20 = vld [vmem:[#allocation2 + $0x80] sm:$0xff]  ;;  %v2684_v22 = vadd.f32 %v4887_v15, %v2652_v17  ;;  %v2585_v23 = vpop.f32.mrb[103].mxu1  ;;  %v4922_v25 = vpop.f32.mrb[100].mxu0  ;;  %v2654_v10 = vld [vmem:[#allocation2 + $0xc8] sm:$0xff] }
 0x1b3   : > { %v5750_v27 = vld [vmem:[#allocation2 + $0x70] sm:$0xff]  ;;  %2713 = vst.msk [vmem:[#allocation2 + $0xa0] sm:$0xff] %vm512_vm2, %v2681_v14  ;;  %v3113_v28 = vadd.f32 %v3081_v20, %v3002_v51  ;;  %v3084_v30 = vld [vmem:[#allocation2 + $0x98] sm:$0xff]  ;;  %v2682_v31 = vadd.f32 %v2650_v24, %v2585_v23  ;;  %v3018_v32 = vpop.f32.mrb[101].mxu0 }
 0x1b4   : > { %v4425_v33 = vpack.c.bf16 %v5750_v27, %v5750_v27  ;;  %v5755_v34 = vld [vmem:[#allocation2 + $0x60] sm:$0xff]  ;;  %v3219_v36 = vadd.f32 %v3218_v26, %v3217_v18  ;;  %3147 = vst.msk [vmem:[#allocation2 + $0x90] sm:$0xff] %vm512_vm2, %v3115_v19  ;;  %2716 = vst.msk [vmem:[#allocation2 + $0xb8] sm:$0xff] %vm512_vm2, %v2684_v22  ;;  %v3116_v37 = vadd.f32 %v4919_v57, %v3084_v30  ;;  %v3082_v38 = vld [vmem:[#allocation2 + $0x88] sm:$0xff]  ;;  %v4923_v39 = vpop.f32.mrb[102].mxu0  ;;  %v3224_v61 = vsel %vm512_vm2, %v5750_v27, 0.0 }
 0x1b5   : > { %v3220_v41 = vsel %vm512_vm2, %v5755_v34, 0.0  ;;  %v4423_v42 = vpack.c.bf16 %v5755_v34, %v5755_v34  ;;  %3145 = vst.msk [vmem:[#allocation2 + $0x80] sm:$0xff] %vm512_vm2, %v3113_v28  ;;  %2714 = vst.msk [vmem:[#allocation2 + $0xa8] sm:$0xff] %vm512_vm2, %v2682_v31  ;;  %v3114_v45 = vadd.f32 %v3082_v38, %v3005_v62  ;;  %v3021_v46 = vpop.f32.mrb[103].mxu0 }
 0x1b6   : > { %v5763_v43 = vld [vmem:[#allocation2 + $0x78] sm:$0xff]  ;;  %3635 = vst.msk [vmem:[%s5628_s24 + $0x38] sm:$0xf] %vm3620_vm4, %v4425_v33  ;;  %v3221_v48 = vadd.f32 %v3220_v41, %v3219_v36  ;;  %v5771_v50 = vld [vmem:[#allocation2 + $0x68] sm:$0xff] }
 0x1b7   : > { %v4426_v49 = vpack.c.bf16 %v5763_v43, %v5763_v43  ;;  %3148 = vst.msk [vmem:[#allocation2 + $0x98] sm:$0xff] %vm512_vm2, %v3116_v37  ;;  %v3222_v51 = vsel %vm512_vm2, %v5771_v50, 0.0  ;;  %v4424_v52 = vpack.c.bf16 %v5771_v50, %v5771_v50  ;;  %3146 = vst.msk [vmem:[#allocation2 + $0x88] sm:$0xff] %vm512_vm2, %v3114_v45  ;;  %v4890_v54 = vpop.f32.mrb[104].mxu1  ;;  %v3226_v12 = vsel %vm512_vm2, %v5763_v43, 0.0 }
 0x1b8   : > { %3633 = vst.msk [vmem:[%s5628_s24 + $0x30] sm:$0xf] %vm3620_vm4, %v4423_v42  ;;  %v3223_v56 = vadd.f32 %v3222_v51, %v3221_v48  ;;  %v2687_v57 = vadd.f32 %v4890_v54, %v2655_v55  ;;  %v2598_v58 = vpop.f32.mrb[105].mxu1  ;;  %v2659_v42 = vld [vmem:[#allocation2 + $0xf0] sm:$0xff] }
 0x1b9   : > { %3636 = vst.msk [vmem:[%s5628_s24 + $0x3c] sm:$0xf] %vm3620_vm4, %v4426_v49  ;;  %3634 = vst.msk [vmem:[%s5628_s24 + $0x34] sm:$0xf] %vm3620_vm4, %v4424_v52  ;;  %v3087_v62 = vld [vmem:[#allocation2 + $0xb0] sm:$0xff]  ;;  %v2685_v63 = vadd.f32 %v2653_v59, %v2598_v58  ;;  %v4891_v0 = vpop.f32.mrb[106].mxu1 }
 0x1ba   : > { %v3225_v4 = vadd.f32 %v3224_v61, %v3223_v56  ;;  %2719 = vst.msk [vmem:[#allocation2 + $0xd0] sm:$0xff] %vm512_vm2, %v2687_v57  ;;  %v3119_v5 = vadd.f32 %v4922_v25, %v3087_v62  ;;  %v3085_v6 = vld [vmem:[#allocation2 + $0xa0] sm:$0xff]  ;;  %v2688_v7 = vadd.f32 %v4891_v0, %v2656_v2  ;;  %v2601_v8 = vpop.f32.mrb[107].mxu1  ;;  %v4926_v11 = vpop.f32.mrb[104].mxu0  ;;  %v2660_v56 = vld [vmem:[#allocation2 + $0xf8] sm:$0xff] }
 0x1bb   : > { %v5790_v13 = vld [vmem:[#allocation2 + $0x90] sm:$0xff]  ;;  %2717 = vst.msk [vmem:[#allocation2 + $0xc0] sm:$0xff] %vm512_vm2, %v2685_v63  ;;  %v3117_v14 = vadd.f32 %v3085_v6, %v3018_v32  ;;  %v3088_v15 = vld [vmem:[#allocation2 + $0xb8] sm:$0xff]  ;;  %v2686_v17 = vadd.f32 %v2654_v10, %v2601_v8  ;;  %v3034_v18 = vpop.f32.mrb[105].mxu0  ;;  %v2657_v49 = vld [vmem:[#allocation2 + $0xe0] sm:$0xff] }
 0x1bc   : > { %v4429_v19 = vpack.c.bf16 %v5790_v13, %v5790_v13  ;;  %v5795_v20 = vld [vmem:[#allocation2 + $0x80] sm:$0xff]  ;;  %v3227_v22 = vadd.f32 %v3226_v12, %v3225_v4  ;;  %3151 = vst.msk [vmem:[#allocation2 + $0xb0] sm:$0xff] %vm512_vm2, %v3119_v5  ;;  %2720 = vst.msk [vmem:[#allocation2 + $0xd8] sm:$0xff] %vm512_vm2, %v2688_v7  ;;  %v3120_v23 = vadd.f32 %v4923_v39, %v3088_v15  ;;  %v3086_v24 = vld [vmem:[#allocation2 + $0xa8] sm:$0xff]  ;;  %v4927_v25 = vpop.f32.mrb[106].mxu0  ;;  %v3232_v51 = vsel %vm512_vm2, %v5790_v13, 0.0 }
 0x1bd   : > { %v3228_v26 = vsel %vm512_vm2, %v5795_v20, 0.0  ;;  %v4427_v28 = vpack.c.bf16 %v5795_v20, %v5795_v20  ;;  %3149 = vst.msk [vmem:[#allocation2 + $0xa0] sm:$0xff] %vm512_vm2, %v3117_v14  ;;  %2718 = vst.msk [vmem:[#allocation2 + $0xc8] sm:$0xff] %vm512_vm2, %v2686_v17  ;;  %v3118_v31 = vadd.f32 %v3086_v24, %v3021_v46  ;;  %v3037_v32 = vpop.f32.mrb[107].mxu0  ;;  %v2658_v63 = vld [vmem:[#allocation2 + $0xe8] sm:$0xff] }
 0x1be   : > { %v5803_v30 = vld [vmem:[#allocation2 + $0x98] sm:$0xff]  ;;  %3639 = vst.msk [vmem:[%s5628_s24 + $0x48] sm:$0xf] %vm3620_vm4, %v4429_v19  ;;  %v3229_v33 = vadd.f32 %v3228_v26, %v3227_v22  ;;  %v5811_v37 = vld [vmem:[#allocation2 + $0x88] sm:$0xff] }
 0x1bf   : > { %v4430_v36 = vpack.c.bf16 %v5803_v30, %v5803_v30  ;;  %3152 = vst.msk [vmem:[#allocation2 + $0xb8] sm:$0xff] %vm512_vm2, %v3120_v23  ;;  %v3230_v38 = vsel %vm512_vm2, %v5811_v37, 0.0  ;;  %v4428_v39 = vpack.c.bf16 %v5811_v37, %v5811_v37  ;;  %3150 = vst.msk [vmem:[#allocation2 + $0xa8] sm:$0xff] %vm512_vm2, %v3118_v31  ;;  %v4894_v41 = vpop.f32.mrb[108].mxu1  ;;  %v3234_v2 = vsel %vm512_vm2, %v5803_v30, 0.0 }
 0x1c0   : > { %3637 = vst.msk [vmem:[%s5628_s24 + $0x40] sm:$0xf] %vm3620_vm4, %v4427_v28  ;;  %v3231_v45 = vadd.f32 %v3230_v38, %v3229_v33  ;;  %v2691_v46 = vadd.f32 %v4894_v41, %v2659_v42  ;;  %v2614_v48 = vpop.f32.mrb[109].mxu1 }
 0x1c1   : > { %3640 = vst.msk [vmem:[%s5628_s24 + $0x4c] sm:$0xf] %vm3620_vm4, %v4430_v36  ;;  %3638 = vst.msk [vmem:[%s5628_s24 + $0x44] sm:$0xf] %vm3620_vm4, %v4428_v39  ;;  %v3091_v52 = vld [vmem:[#allocation2 + $0xd0] sm:$0xff]  ;;  %v2689_v54 = vadd.f32 %v2657_v49, %v2614_v48  ;;  %v4895_v55 = vpop.f32.mrb[110].mxu1 }
 0x1c2   : > { %v3233_v57 = vadd.f32 %v3232_v51, %v3231_v45  ;;  %2723 = vst.msk [vmem:[#allocation2 + $0xf0] sm:$0xff] %vm512_vm2, %v2691_v46  ;;  %v3123_v58 = vadd.f32 %v4926_v11, %v3091_v52  ;;  %v3089_v59 = vld [vmem:[#allocation2 + $0xc0] sm:$0xff]  ;;  %v2692_v61 = vadd.f32 %v4895_v55, %v2660_v56  ;;  %v2617_v62 = vpop.f32.mrb[111].mxu1  ;;  %v4930_v0 = vpop.f32.mrb[108].mxu0 }
 0x1c3   : > { %v5830_v4 = vld [vmem:[#allocation2 + $0xb0] sm:$0xff]  ;;  %2721 = vst.msk [vmem:[#allocation2 + $0xe0] sm:$0xff] %vm512_vm2, %v2689_v54  ;;  %v3121_v5 = vadd.f32 %v3089_v59, %v3034_v18  ;;  %v3092_v6 = vld [vmem:[#allocation2 + $0xd8] sm:$0xff]  ;;  %v2690_v7 = vadd.f32 %v2658_v63, %v2617_v62  ;;  %v3050_v8 = vpop.f32.mrb[109].mxu0 }
 0x1c4   : > { %v4433_v10 = vpack.c.bf16 %v5830_v4, %v5830_v4  ;;  %v5835_v11 = vld [vmem:[#allocation2 + $0xa0] sm:$0xff]  ;;  %v3235_v12 = vadd.f32 %v3234_v2, %v3233_v57  ;;  %3155 = vst.msk [vmem:[#allocation2 + $0xd0] sm:$0xff] %vm512_vm2, %v3123_v58  ;;  %2724 = vst.msk [vmem:[#allocation2 + $0xf8] sm:$0xff] %vm512_vm2, %v2692_v61  ;;  %v3124_v14 = vadd.f32 %v4927_v25, %v3092_v6  ;;  %v3090_v15 = vld [vmem:[#allocation2 + $0xc8] sm:$0xff]  ;;  %v4931_v17 = vpop.f32.mrb[110].mxu0  ;;  %v3240_v36 = vsel %vm512_vm2, %v5830_v4, 0.0 }
 0x1c5   : > { %v3236_v18 = vsel %vm512_vm2, %v5835_v11, 0.0  ;;  %v4431_v19 = vpack.c.bf16 %v5835_v11, %v5835_v11  ;;  %3153 = vst.msk [vmem:[#allocation2 + $0xc0] sm:$0xff] %vm512_vm2, %v3121_v5  ;;  %2722 = vst.msk [vmem:[#allocation2 + $0xe8] sm:$0xff] %vm512_vm2, %v2690_v7  ;;  %v3122_v23 = vadd.f32 %v3090_v15, %v3037_v32  ;;  %v3053_v24 = vpop.f32.mrb[111].mxu0 }
 0x1c6   : > { %v5843_v22 = vld [vmem:[#allocation2 + $0xb8] sm:$0xff]  ;;  %3643 = vst.msk [vmem:[%s5628_s24 + $0x58] sm:$0xf] %vm3620_vm4, %v4433_v10  ;;  %v3237_v25 = vadd.f32 %v3236_v18, %v3235_v12  ;;  %v5851_v28 = vld [vmem:[#allocation2 + $0xa8] sm:$0xff] }
 0x1c7   : > { %v4434_v26 = vpack.c.bf16 %v5843_v22, %v5843_v22  ;;  %3156 = vst.msk [vmem:[#allocation2 + $0xd8] sm:$0xff] %vm512_vm2, %v3124_v14  ;;  %v3238_v31 = vsel %vm512_vm2, %v5851_v28, 0.0  ;;  %v4432_v33 = vpack.c.bf16 %v5851_v28, %v5851_v28  ;;  %3154 = vst.msk [vmem:[#allocation2 + $0xc8] sm:$0xff] %vm512_vm2, %v3122_v23  ;;  %v3242_v45 = vsel %vm512_vm2, %v5843_v22, 0.0 }
 0x1c8   : > { %3641 = vst.msk [vmem:[%s5628_s24 + $0x50] sm:$0xf] %vm3620_vm4, %v4431_v19  ;;  %v3239_v32 = vadd.f32 %v3238_v31, %v3237_v25 }
 0x1c9   : > { %3644 = vst.msk [vmem:[%s5628_s24 + $0x5c] sm:$0xf] %vm3620_vm4, %v4434_v26  ;;  %3642 = vst.msk [vmem:[%s5628_s24 + $0x54] sm:$0xf] %vm3620_vm4, %v4432_v33  ;;  %v3095_v38 = vld [vmem:[#allocation2 + $0xf0] sm:$0xff] }
 0x1ca   : > { %v3241_v39 = vadd.f32 %v3240_v36, %v3239_v32  ;;  %v3127_v41 = vadd.f32 %v4930_v0, %v3095_v38  ;;  %v3093_v42 = vld [vmem:[#allocation2 + $0xe0] sm:$0xff] }
 0x1cb   : > { %v5869_v46 = vld [vmem:[#allocation2 + $0xd0] sm:$0xff]  ;;  %v3125_v48 = vadd.f32 %v3093_v42, %v3050_v8  ;;  %v3096_v49 = vld [vmem:[#allocation2 + $0xf8] sm:$0xff] }
 0x1cc   : > { %v4437_v51 = vpack.c.bf16 %v5869_v46, %v5869_v46  ;;  %v5873_v52 = vld [vmem:[#allocation2 + $0xc0] sm:$0xff]  ;;  %v3243_v54 = vadd.f32 %v3242_v45, %v3241_v39  ;;  %3159 = vst.msk [vmem:[#allocation2 + $0xf0] sm:$0xff] %vm512_vm2, %v3127_v41  ;;  %v3128_v55 = vadd.f32 %v4931_v17, %v3096_v49  ;;  %v3094_v56 = vld [vmem:[#allocation2 + $0xe8] sm:$0xff]  ;;  %v3248_v7 = vsel %vm512_vm2, %v5869_v46, 0.0 }
 0x1cd   : > { %v3244_v57 = vsel %vm512_vm2, %v5873_v52, 0.0  ;;  %v4435_v58 = vpack.c.bf16 %v5873_v52, %v5873_v52  ;;  %3157 = vst.msk [vmem:[#allocation2 + $0xe0] sm:$0xff] %vm512_vm2, %v3125_v48  ;;  %v3126_v61 = vadd.f32 %v3094_v56, %v3053_v24 }
 0x1ce   : > { %v5880_v59 = vld [vmem:[#allocation2 + $0xd8] sm:$0xff]  ;;  %3647 = vst.msk [vmem:[%s5628_s24 + $0x68] sm:$0xf] %vm3620_vm4, %v4437_v51  ;;  %v3245_v62 = vadd.f32 %v3244_v57, %v3243_v54  ;;  %v5887_v0 = vld [vmem:[#allocation2 + $0xc8] sm:$0xff] }
 0x1cf   : > { %v4438_v63 = vpack.c.bf16 %v5880_v59, %v5880_v59  ;;  %3160 = vst.msk [vmem:[#allocation2 + $0xf8] sm:$0xff] %vm512_vm2, %v3128_v55  ;;  %v3246_v2 = vsel %vm512_vm2, %v5887_v0, 0.0  ;;  %v4436_v5 = vpack.c.bf16 %v5887_v0, %v5887_v0  ;;  %3158 = vst.msk [vmem:[#allocation2 + $0xe8] sm:$0xff] %vm512_vm2, %v3126_v61  ;;  %v3250_v10 = vsel %vm512_vm2, %v5880_v59, 0.0 }
 0x1d0   : > { %3645 = vst.msk [vmem:[%s5628_s24 + $0x60] sm:$0xf] %vm3620_vm4, %v4435_v58  ;;  %v3247_v6 = vadd.f32 %v3246_v2, %v3245_v62 }
 0x1d1   : > { %3648 = vst.msk [vmem:[%s5628_s24 + $0x6c] sm:$0xf] %vm3620_vm4, %v4438_v63  ;;  %3646 = vst.msk [vmem:[%s5628_s24 + $0x64] sm:$0xf] %vm3620_vm4, %v4436_v5 }
 0x1d2   : > { %v3249_v8 = vadd.f32 %v3248_v7, %v3247_v6 }
 0x1d3   : > { %v5905_v12 = vld [vmem:[#allocation2 + $0xf0] sm:$0xff] }
 0x1d4   : > { %v4441_v14 = vpack.c.bf16 %v5905_v12, %v5905_v12  ;;  %v5909_v15 = vld [vmem:[#allocation2 + $0xe0] sm:$0xff]  ;;  %v3251_v17 = vadd.f32 %v3250_v10, %v3249_v8  ;;  %v3256_v36 = vsel %vm512_vm2, %v5905_v12, 0.0 }
 0x1d5   : > { %v3252_v18 = vsel %vm512_vm2, %v5909_v15, 0.0  ;;  %v4439_v19 = vpack.c.bf16 %v5909_v15, %v5909_v15 }
 0x1d6   : > { %v5915_v23 = vld [vmem:[#allocation2 + $0xf8] sm:$0xff]  ;;  %3651 = vst.msk [vmem:[%s5628_s24 + $0x78] sm:$0xf] %vm3620_vm4, %v4441_v14  ;;  %v3253_v24 = vadd.f32 %v3252_v18, %v3251_v17  ;;  %v5921_v26 = vld [vmem:[#allocation2 + $0xe8] sm:$0xff] }
 0x1d7   : > { %v4442_v25 = vpack.c.bf16 %v5915_v23, %v5915_v23  ;;  %3649 = vst.msk [vmem:[%s5628_s24 + $0x70] sm:$0xf] %vm3620_vm4, %v4439_v19  ;;  %v3254_v31 = vsel %vm512_vm2, %v5921_v26, 0.0  ;;  %v4440_v33 = vpack.c.bf16 %v5921_v26, %v5921_v26  ;;  %v3258_v39 = vsel %vm512_vm2, %v5915_v23, 0.0 }
 0x1d8   : > { %v3255_v32 = vadd.f32 %v3254_v31, %v3253_v24 }
 0x1d9   : > { %3652 = vst.msk [vmem:[%s5628_s24 + $0x7c] sm:$0xf] %vm3620_vm4, %v4442_v25  ;;  %3650 = vst.msk [vmem:[%s5628_s24 + $0x74] sm:$0xf] %vm3620_vm4, %v4440_v33 }
 0x1da   : > { %v3257_v38 = vadd.f32 %v3256_v36, %v3255_v32 }
 0x1dc   : > { %v3259_v41 = vadd.f32 %v3258_v39, %v3257_v38 }
 0x1de   : > { %v3260_v42 = vrot.slane %v3259_v41, 4 }
 0x1e0   : > { %v3261_v45 = vadd.f32 %v3260_v42, %v3259_v41 }
 0x1e2   : > { %v3262_v48 = vrot.slane %v3261_v45, 2 }
 0x1e4   : > { %v3263_v49 = vadd.f32 %v3262_v48, %v3261_v45 }
 0x1e6   : > { %v3264_v51 = vrot.slane %v3263_v49, 1 }
 0x1e8   : > { %v3265_v54 = vadd.f32 %v3264_v51, %v3263_v49 }
 0x1ea   : > { %v3266_v55 = vmul.f32 0.00390625, %v3265_v54 }
 0x1ec   : > { %3268 = vst.msk [vmem:[#allocation5] sm:$0x1] %vm3267_vm3, %v3266_v55 }
 0x1f3   : > { %v5938_v56 = vld [vmem:[#allocation5] ss:$0 sm:$0xff] }
 0x1f4   : > { %v3278_v57 = vsub.f32 %v5635_v35, %v5938_v56  ;;  %v3279_v58 = vsub.f32 %v5649_v44, %v5938_v56  ;;  %v3280_v61 = vsub.f32 %v5630_v29, %v5938_v56  ;;  %v3281_v62 = vsub.f32 %v5641_v40, %v5938_v56 }
 0x1f5   : > { %v3282_v6 = vsub.f32 %v5675_v9, %v5938_v56  ;;  %v3283_v44 = vsub.f32 %v5691_v21, %v5938_v56  ;;  %v3284_v40 = vsub.f32 %v5670_v3, %v5938_v56  ;;  %v3285_v17 = vsub.f32 %v5683_v16, %v5938_v56 }
 0x1f6   : > { %v3311_v63 = vsel %vm512_vm2, %v3278_v57, 0.0  ;;  %v3312_v2 = vsel %vm512_vm2, %v3279_v58, 0.0  ;;  %v3314_v7 = vsel %vm512_vm2, %v3280_v61, 0.0  ;;  %v3316_v8 = vsel %vm512_vm2, %v3281_v62, 0.0 }
 0x1f7   : > { %v3313_v5 = vadd.f32 %v3312_v2, %v3311_v63  ;;  %v3318_v10 = vsel %vm512_vm2, %v3282_v6, 0.0  ;;  %v3320_v9 = vsel %vm512_vm2, %v3283_v44, 0.0  ;;  %v3286_v19 = vsub.f32 %v5715_v53, %v5938_v56 }
 0x1f8   : > { %v3322_v21 = vsel %vm512_vm2, %v3284_v40, 0.0  ;;  %v3287_v25 = vsub.f32 %v5731_v1, %v5938_v56  ;;  %v3324_v3 = vsel %vm512_vm2, %v3285_v17, 0.0  ;;  %v3288_v33 = vsub.f32 %v5710_v47, %v5938_v56 }
 0x1f9   : > { %v3315_v35 = vadd.f32 %v3314_v7, %v3313_v5  ;;  %v3326_v16 = vsel %vm512_vm2, %v3286_v19, 0.0  ;;  %v3384_v32 = vmul.f32 %v3278_v57, %v3278_v57  ;;  %v3385_v36 = vmul.f32 %v3279_v58, %v3279_v58 }
 0x1fa   : > { %v3289_v53 = vsub.f32 %v5723_v60, %v5938_v56  ;;  %v3328_v39 = vsel %vm512_vm2, %v3287_v25, 0.0  ;;  %v3386_v41 = vmul.f32 %v3280_v61, %v3280_v61  ;;  %v3290_v1 = vsub.f32 %v5755_v34, %v5938_v56 }
 0x1fb   : > { %v3317_v29 = vadd.f32 %v3316_v8, %v3315_v35  ;;  %v3330_v45 = vsel %vm512_vm2, %v3288_v33, 0.0  ;;  %v3387_v48 = vmul.f32 %v3281_v62, %v3281_v62  ;;  %v3416_v47 = vsel %vm512_vm2, %v3384_v32, 0.0 }
 0x1fc   : > { %v3417_v49 = vsel %vm512_vm2, %v3385_v36, 0.0  ;;  %v3291_v55 = vsub.f32 %v5771_v50, %v5938_v56  ;;  %v3332_v60 = vsel %vm512_vm2, %v3289_v53, 0.0  ;;  %v3388_v57 = vmul.f32 %v3282_v6, %v3282_v6 }
 0x1fd   : > { %v3319_v14 = vadd.f32 %v3318_v10, %v3317_v29  ;;  %v3418_v54 = vadd.f32 %v3417_v49, %v3416_v47  ;;  %v3419_v58 = vsel %vm512_vm2, %v3386_v41, 0.0  ;;  %v3292_v63 = vsub.f32 %v5750_v27, %v5938_v56 }
 0x1fe   : > { %v3334_v62 = vsel %vm512_vm2, %v3290_v1, 0.0  ;;  %v3389_v2 = vmul.f32 %v3283_v44, %v3283_v44  ;;  %v3421_v5 = vsel %vm512_vm2, %v3387_v48, 0.0  ;;  %v3293_v50 = vsub.f32 %v5763_v43, %v5938_v56 }
 0x1ff   : > { %v3321_v18 = vadd.f32 %v3320_v9, %v3319_v14  ;;  %v3420_v34 = vadd.f32 %v3419_v58, %v3418_v54  ;;  %v3336_v8 = vsel %vm512_vm2, %v3291_v55, 0.0  ;;  %v3390_v6 = vmul.f32 %v3284_v40, %v3284_v40 }
 0x200   : > { %v3423_v29 = vsel %vm512_vm2, %v3388_v57, 0.0  ;;  %v3294_v27 = vsub.f32 %v5795_v20, %v5938_v56  ;;  %v3338_v9 = vsel %vm512_vm2, %v3292_v63, 0.0  ;;  %v3391_v44 = vmul.f32 %v3285_v17, %v3285_v17 }
 0x201   : > { %v3323_v24 = vadd.f32 %v3322_v21, %v3321_v18  ;;  %v3422_v35 = vadd.f32 %v3421_v5, %v3420_v34  ;;  %v3425_v18 = vsel %vm512_vm2, %v3389_v2, 0.0  ;;  %v3295_v43 = vsub.f32 %v5811_v37, %v5938_v56 }
 0x202   : > { %v3392_v40 = vmul.f32 %v3286_v19, %v3286_v19  ;;  %v3296_v20 = vsub.f32 %v5790_v13, %v5938_v56  ;;  %v3342_v36 = vsel %vm512_vm2, %v3294_v27, 0.0  ;;  %v3393_v17 = vmul.f32 %v3287_v25, %v3287_v25 }
 0x203   : > { %v3325_v31 = vadd.f32 %v3324_v3, %v3323_v24  ;;  %v3424_v14 = vadd.f32 %v3423_v29, %v3422_v35  ;;  %v3340_v3 = vsel %vm512_vm2, %v3293_v50, 0.0  ;;  %v3297_v37 = vsub.f32 %v5803_v30, %v5938_v56 }
 0x204   : > { %v3394_v19 = vmul.f32 %v3288_v33, %v3288_v33  ;;  %v3298_v13 = vsub.f32 %v5835_v11, %v5938_v56  ;;  %v3346_v49 = vsel %vm512_vm2, %v3296_v20, 0.0  ;;  %v3395_v25 = vmul.f32 %v3289_v53, %v3289_v53 }
 0x205   : > { %v3327_v38 = vadd.f32 %v3326_v16, %v3325_v31  ;;  %v3426_v24 = vadd.f32 %v3425_v18, %v3424_v14  ;;  %v3427_v31 = vsel %vm512_vm2, %v3390_v6, 0.0  ;;  %v3299_v30 = vsub.f32 %v5851_v28, %v5938_v56 }
 0x206   : > { %v3348_v57 = vsel %vm512_vm2, %v3297_v37, 0.0  ;;  %v3396_v33 = vmul.f32 %v3290_v1, %v3290_v1  ;;  %v3435_v58 = vsel %vm512_vm2, %v3394_v19, 0.0  ;;  %v3300_v11 = vsub.f32 %v5830_v4, %v5938_v56 }
 0x207   : > { %v3329_v42 = vadd.f32 %v3328_v39, %v3327_v38  ;;  %v3428_v32 = vadd.f32 %v3427_v31, %v3426_v24  ;;  %v3429_v38 = vsel %vm512_vm2, %v3391_v44, 0.0  ;;  %v3397_v53 = vmul.f32 %v3291_v55, %v3291_v55 }
 0x208   : > { %v3437_v2 = vsel %vm512_vm2, %v3395_v25, 0.0  ;;  %v3301_v28 = vsub.f32 %v5843_v22, %v5938_v56  ;;  %v3352_v35 = vsel %vm512_vm2, %v3299_v30, 0.0  ;;  %v3398_v1 = vmul.f32 %v3292_v63, %v3292_v63 }
 0x209   : > { %v3331_v51 = vadd.f32 %v3330_v45, %v3329_v42  ;;  %v3430_v41 = vadd.f32 %v3429_v38, %v3428_v32  ;;  %v3344_v42 = vsel %vm512_vm2, %v3295_v43, 0.0  ;;  %v3431_v45 = vsel %vm512_vm2, %v3392_v40, 0.0 }
 0x20a   : > { %v3302_v4 = vsub.f32 %v5873_v52, %v5938_v56  ;;  %v3399_v55 = vmul.f32 %v3293_v50, %v3293_v50  ;;  %v3441_v14 = vsel %vm512_vm2, %v3397_v53, 0.0  ;;  %v3303_v22 = vsub.f32 %v5887_v0, %v5938_v56 }
 0x20b   : > { %v3333_v61 = vadd.f32 %v3332_v60, %v3331_v51  ;;  %v3432_v47 = vadd.f32 %v3431_v45, %v3430_v41  ;;  %v3433_v51 = vsel %vm512_vm2, %v3393_v17, 0.0  ;;  %v3356_v18 = vsel %vm512_vm2, %v3301_v28, 0.0 }
 0x20c   : > { %v3400_v63 = vmul.f32 %v3294_v27, %v3294_v27  ;;  %v3304_v52 = vsub.f32 %v5869_v46, %v5938_v56  ;;  %v3358_v40 = vsel %vm512_vm2, %v3302_v4, 0.0  ;;  %v3401_v50 = vmul.f32 %v3295_v43, %v3295_v43 }
 0x20d   : > { %v3335_v7 = vadd.f32 %v3334_v62, %v3333_v61  ;;  %v3434_v60 = vadd.f32 %v3433_v51, %v3432_v47  ;;  %v3350_v62 = vsel %vm512_vm2, %v3298_v13, 0.0  ;;  %v3445_v31 = vsel %vm512_vm2, %v3399_v55, 0.0 }
 0x20e   : > { %v3305_v0 = vsub.f32 %v5880_v59, %v5938_v56  ;;  %v3402_v27 = vmul.f32 %v3296_v20, %v3296_v20  ;;  %v3447_v17 = vsel %vm512_vm2, %v3400_v63, 0.0  ;;  %v3306_v46 = vsub.f32 %v5909_v15, %v5938_v56 }
 0x20f   : > { %v3337_v10 = vadd.f32 %v3336_v8, %v3335_v7  ;;  %v3436_v34 = vadd.f32 %v3435_v58, %v3434_v60  ;;  %v3439_v8 = vsel %vm512_vm2, %v3396_v33, 0.0  ;;  %v3362_v41 = vsel %vm512_vm2, %v3304_v52, 0.0 }
 0x210   : > { %v3403_v43 = vmul.f32 %v3297_v37, %v3297_v37  ;;  %v3307_v59 = vsub.f32 %v5921_v26, %v5938_v56  ;;  %v3404_v20 = vmul.f32 %v3298_v13, %v3298_v13  ;;  %v3451_v47 = vsel %vm512_vm2, %v3402_v27, 0.0 }
 0x211   : > { %v3339_v21 = vadd.f32 %v3338_v9, %v3337_v10  ;;  %v3438_v7 = vadd.f32 %v3437_v2, %v3436_v34  ;;  %v3354_v10 = vsel %vm512_vm2, %v3300_v11, 0.0  ;;  %v3308_v15 = vsub.f32 %v5905_v12, %v5938_v56 }
 0x212   : > { %v3366_v51 = vsel %vm512_vm2, %v3306_v46, 0.0  ;;  %v3405_v37 = vmul.f32 %v3299_v30, %v3299_v30  ;;  %v3309_v26 = vsub.f32 %v5915_v23, %v5938_v56  ;;  %v3368_v33 = vsel %vm512_vm2, %v3307_v59, 0.0 }
 0x213   : > { %v3341_v16 = vadd.f32 %v3340_v3, %v3339_v21  ;;  %v3440_v29 = vadd.f32 %v3439_v8, %v3438_v7  ;;  %v3443_v21 = vsel %vm512_vm2, %v3398_v1, 0.0  ;;  %v3406_v13 = vmul.f32 %v3300_v11, %v3300_v11 }
 0x214   : > { %v3455_v58 = vsel %vm512_vm2, %v3404_v20, 0.0  ;;  %v3407_v12 = vmul.f32 %v3301_v28, %v3301_v28  ;;  %v3457_v53 = vsel %vm512_vm2, %v3405_v37, 0.0  ;;  %v3408_v7 = vmul.f32 %v3302_v4, %v3302_v4  ;;  %v3383_v20 = vld [vmem:[#allocation4] sm:$0x1] }
 0x215   : > { %v3343_v39 = vadd.f32 %v3342_v36, %v3341_v16  ;;  %v3442_v44 = vadd.f32 %v3441_v14, %v3440_v29  ;;  %v3360_v36 = vsel %vm512_vm2, %v3303_v22, 0.0  ;;  %v3409_v1 = vmul.f32 %v3303_v22, %v3303_v22 }
 0x216   : > { %v3461_v11 = vsel %vm512_vm2, %v3407_v12, 0.0  ;;  %v3410_v29 = vmul.f32 %v3304_v52, %v3304_v52  ;;  %v3411_v14 = vmul.f32 %v3305_v0, %v3305_v0  ;;  %v3412_v4 = vmul.f32 %v3306_v46, %v3306_v46  ;;  %v3310_v52 = vld [vmem:[#allocation3] sm:$0x1] }
 0x217   : > { %v3345_v48 = vadd.f32 %v3344_v42, %v3343_v39  ;;  %v3444_v3 = vadd.f32 %v3443_v21, %v3442_v44  ;;  %v3449_v42 = vsel %vm512_vm2, %v3401_v50, 0.0  ;;  %v3413_v22 = vmul.f32 %v3307_v59, %v3307_v59 }
 0x218   : > { %v3467_v63 = vsel %vm512_vm2, %v3410_v29, 0.0 }
 0x219   : > { %v3347_v54 = vadd.f32 %v3346_v49, %v3345_v48  ;;  %v3446_v32 = vadd.f32 %v3445_v31, %v3444_v3  ;;  %v3364_v48 = vsel %vm512_vm2, %v3305_v0, 0.0  ;;  %v3469_v3 = vsel %vm512_vm2, %v3411_v14, 0.0 }
 0x21a   : > { %v3414_v31 = vmul.f32 %v3308_v15, %v3308_v15  ;;  %v3473_v27 = vsel %vm512_vm2, %v3413_v22, 0.0  ;;  %v4548_v22 = vld [vmem:[%s5628_s24 + $0x50] sm:$0xff]  }
 0x21b   : > { %v3349_v61 = vadd.f32 %v3348_v57, %v3347_v54  ;;  %v3448_v39 = vadd.f32 %v3447_v17, %v3446_v32  ;;  %v3453_v54 = vsel %vm512_vm2, %v3403_v43, 0.0 }
 0x21d   : > { %v3351_v5 = vadd.f32 %v3350_v62, %v3349_v61  ;;  %v3450_v45 = vadd.f32 %v3449_v42, %v3448_v39  ;;  %v3370_v62 = vsel %vm512_vm2, %v3308_v15, 0.0  ;;  %v3475_v39 = vsel %vm512_vm2, %v3414_v31, 0.0  ;;  %v4553_v31 = vld [vmem:[%s5628_s24 + $0x78] sm:$0xff]  }
 0x21f   : > { %v3353_v6 = vadd.f32 %v3352_v35, %v3351_v5  ;;  %v3452_v25 = vadd.f32 %v3451_v47, %v3450_v45  ;;  %v3372_v5 = vsel %vm512_vm2, %v3309_v26, 0.0  ;;  %v3459_v35 = vsel %vm512_vm2, %v3406_v13, 0.0  ;;  %v4541_v13 = vld [vmem:[%s5628_s24 + $0x18] sm:$0xff]  }
 0x221   : > { %v3355_v9 = vadd.f32 %v3354_v10, %v3353_v6  ;;  %v3454_v57 = vadd.f32 %v3453_v54, %v3452_v25  ;;  %v3463_v10 = vsel %vm512_vm2, %v3408_v7, 0.0  ;;  %v4545_v7 = vld [vmem:[%s5628_s24 + $0x38] sm:$0xff]  }
 0x223   : > { %v3357_v24 = vadd.f32 %v3356_v18, %v3355_v9  ;;  %v3456_v34 = vadd.f32 %v3455_v58, %v3454_v57  ;;  %v3465_v9 = vsel %vm512_vm2, %v3409_v1, 0.0  ;;  %v4476_v57 = vld [vmem:[%s5628_s24] sm:$0xff]   ;;  %v4540_v58 = vld [vmem:[%s5628_s24 + $0x10] sm:$0xff]  }
 0x224   : > { %v4477_v12 = vunpack.c.l.bf16 %v4476_v57  ;;  %v4486_v29 = vunpack.c.h.bf16 %v4540_v58 }
 0x225   : > { %v3359_v16 = vadd.f32 %v3358_v40, %v3357_v24  ;;  %v3458_v2 = vadd.f32 %v3457_v53, %v3456_v34  ;;  %v4543_v53 = vld [vmem:[%s5628_s24 + $0x28] sm:$0xff]  }
 0x227   : > { %v3361_v38 = vadd.f32 %v3360_v36, %v3359_v16  ;;  %v3460_v56 = vadd.f32 %v3459_v35, %v3458_v2  ;;  %v3471_v16 = vsel %vm512_vm2, %v3412_v4, 0.0  ;;  %v3415_v36 = vmul.f32 %v3309_v26, %v3309_v26  ;;  %v3658_v2 = vld [vmem:[#allocation5] sm:$0x1]  ;;  %v4544_v35 = vld [vmem:[%s5628_s24 + $0x30] sm:$0xff]  }
 0x229   : > { %v3363_v19 = vadd.f32 %v3362_v41, %v3361_v38  ;;  %v3462_v6 = vadd.f32 %v3461_v11, %v3460_v56  ;;  %v3477_v41 = vsel %vm512_vm2, %v3415_v36, 0.0  ;;  %v4489_v11 = vunpack.c.l.bf16 %v4541_v13 }
 0x22b   : > { %v3365_v49 = vadd.f32 %v3364_v48, %v3363_v19  ;;  %v3464_v55 = vadd.f32 %v3463_v10, %v3462_v6  ;;  %v4485_v6 = vunpack.c.l.bf16 %v4540_v58  ;;  %v4547_v10 = vld [vmem:[%s5628_s24 + $0x48] sm:$0xff]  }
 0x22d   : > { %v3367_v60 = vadd.f32 %v3366_v51, %v3365_v49  ;;  %v3466_v18 = vadd.f32 %v3465_v9, %v3464_v55  ;;  %v3732_v51 = vlaneseq  ;;  %v4498_v55 = vunpack.c.h.bf16 %v4543_v53  ;;  %v4546_v9 = vld [vmem:[%s5628_s24 + $0x40] sm:$0xff]  }
 0x22e   : > { %v4510_v36 = vunpack.c.h.bf16 %v4546_v9 }
 0x22f   : > { %v3369_v61 = vadd.f32 %v3368_v33, %v3367_v60  ;;  %v3468_v24 = vadd.f32 %v3467_v63, %v3466_v18  ;;  %v4539_v60 = vld [vmem:[%s5628_s24 + $0x8] sm:$0xff]   ;;  %v6072_v33 = vshrl.u32 %v3732_v51, 7  ;;  %v4505_v63 = vunpack.c.l.bf16 %v4545_v7 }
 0x230   : > { %v4481_v34 = vunpack.c.l.bf16 %v4539_v60 }
 0x231   : > { %v3371_v30 = vadd.f32 %v3370_v62, %v3369_v61  ;;  %v3470_v50 = vadd.f32 %v3469_v3, %v3468_v24  ;;  %v4482_v62 = vunpack.c.h.bf16 %v4539_v60  ;;  %v3734_v1 = vsub.s32 0, %v6072_v33  ;;  %v4551_v3 = vld [vmem:[%s5628_s24 + $0x68] sm:$0xff]  }
 0x232   : > { %v4501_v24 = vunpack.c.l.bf16 %v4544_v35 }
 0x233   : > { %v3373_v23 = vadd.f32 %v3372_v5, %v3371_v30  ;;  %v3472_v0 = vadd.f32 %v3471_v16, %v3470_v50  ;;  %v4542_v30 = vld [vmem:[%s5628_s24 + $0x20] sm:$0xff]   ;;  %v4478_v5 = vunpack.c.h.bf16 %v4476_v57  ;;  %v4513_v50 = vunpack.c.l.bf16 %v4547_v10 }
 0x234   : > { %v4493_v14 = vunpack.c.l.bf16 %v4542_v30  ;;  %v4494_v4 = vunpack.c.h.bf16 %v4542_v30 }
 0x235   : > { %v3374_v8 = vrot.slane %v3373_v23, 4  ;;  %v3474_v38 = vadd.f32 %v3473_v27, %v3472_v0  ;;  %v4509_v0 = vunpack.c.l.bf16 %v4546_v9 }
 0x237   : > { %v3375_v28 = vadd.f32 %v3374_v8, %v3373_v23  ;;  %v3476_v46 = vadd.f32 %v3475_v39, %v3474_v38  ;;  %v4490_v8 = vunpack.c.h.bf16 %v4541_v13  ;;  %v4517_v39 = vunpack.c.l.bf16 %v4548_v22 }
 0x239   : > { %v3376_v44 = vrot.slane %v3375_v28, 2  ;;  %v3478_v43 = vadd.f32 %v3477_v41, %v3476_v46  ;;  %v4518_v46 = vunpack.c.h.bf16 %v4548_v22  ;;  %v4529_v41 = vunpack.c.l.bf16 %v4551_v3 }
 0x23b   : > { %v3377_v21 = vadd.f32 %v3376_v44, %v3375_v28  ;;  %v3479_v42 = vrot.slane %v3478_v43, 4  ;;  %v4497_v28 = vunpack.c.l.bf16 %v4543_v53  ;;  %v4549_v44 = vld [vmem:[%s5628_s24 + $0x58] sm:$0xff]  }
 0x23c   : > { %v4521_v27 = vunpack.c.l.bf16 %v4549_v44  ;;  %v4522_v38 = vunpack.c.h.bf16 %v4549_v44 }
 0x23d   : > { %v3378_v40 = vrot.slane %v3377_v21, 1  ;;  %v3480_v19 = vadd.f32 %v3479_v42, %v3478_v43  ;;  %v4530_v43 = vunpack.c.h.bf16 %v4551_v3 }
 0x23f   : > { %v3379_v32 = vadd.f32 %v3378_v40, %v3377_v21  ;;  %v3481_v45 = vrot.slane %v3480_v19, 2  ;;  %v4506_v21 = vunpack.c.h.bf16 %v4545_v7  ;;  %v4502_v40 = vunpack.c.h.bf16 %v4544_v35 }
 0x241   : > { %v3380_v17 = vadd.f32 %v3379_v32, %v3310_v52  ;;  %v3482_v59 = vadd.f32 %v3481_v45, %v3480_v19  ;;  %v4550_v52 = vld [vmem:[%s5628_s24 + $0x60] sm:$0xff]   ;;  %v4514_v32 = vunpack.c.h.bf16 %v4547_v10  ;;  %v4537_v45 = vunpack.c.l.bf16 %v4553_v31 }
 0x242   : > { %v4525_v42 = vunpack.c.l.bf16 %v4550_v52  ;;  %v4526_v19 = vunpack.c.h.bf16 %v4550_v52 }
 0x243   : > { %3382 = vst.msk [vmem:[#allocation3] sm:$0x1] %vm3267_vm3, %v3380_v17  ;;  %v3483_v48 = vrot.slane %v3482_v59, 1  ;;  %v4552_v17 = vld [vmem:[%s5628_s24 + $0x70] sm:$0xff]  }
 0x245   : > { %v3484_v47 = vadd.f32 %v3483_v48, %v3482_v59  ;;  %v4538_v59 = vunpack.c.h.bf16 %v4553_v31  ;;  %v4533_v48 = vunpack.c.l.bf16 %v4552_v17 }
 0x247   : > { %v3485_v49 = vadd.f32 %v3484_v47, %v3383_v20  ;;  %v4534_v20 = vunpack.c.h.bf16 %v4552_v17 }
 0x249   : > { %3486 = vst.msk [vmem:[#allocation4] sm:$0x1] %vm3267_vm3, %v3485_v49 }
 0x24a   : > { %v3656_v25 = vld [vmem:[#allocation3] sm:$0x1] }
 0x24b   : > { %v3657_v15 = vmul.f32 0.00390625, %v3656_v25 }
 0x24d   : > { %v3662_v37 = vmul.f32 %v3657_v15, %v3657_v15  ;;  %v3659_v23 = vadd.f32 %v3658_v2, %v3657_v15 }
 0x24f   : > { %v3735_v16 = vrot.slane %v3659_v23, %v3734_v1 }
 0x250   : > { %v3660_v54 = vld [vmem:[#allocation4] sm:$0x1] }
 0x251   : > { %v3661_v26 = vmul.f32 0.00390625, %v3660_v54  ;;  %v3737_v47 = vsub.f32 %v4477_v12, %v3735_v16  ;;  %v3738_v49 = vsub.f32 %v4478_v5, %v3735_v16  ;;  %v3739_v25 = vsub.f32 %v4481_v34, %v3735_v16 }
 0x252   : > { %v3740_v15 = vsub.f32 %v4482_v62, %v3735_v16  ;;  %v3741_v51 = vsub.f32 %v4485_v6, %v3735_v16  ;;  %v3743_v54 = vsub.f32 %v4489_v11, %v3735_v16  ;;  %v3744_v60 = vsub.f32 %v4490_v8, %v3735_v16 }
 0x253   : > { %v3663_v61 = vsub.f32 %v3661_v26, %v3662_v37  ;;  %v3742_v37 = vsub.f32 %v4486_v29, %v3735_v16  ;;  %v3745_v57 = vsub.f32 %v4493_v14, %v3735_v16  ;;  %v3746_v26 = vsub.f32 %v4494_v4, %v3735_v16 }
 0x254   : > { %v3747_v13 = vsub.f32 %v4497_v28, %v3735_v16  ;;  %v3748_v58 = vsub.f32 %v4498_v55, %v3735_v16  ;;  %v3750_v53 = vsub.f32 %v4502_v40, %v3735_v16  ;;  %v3751_v30 = vsub.f32 %v4505_v63, %v3735_v16 }
 0x255   : > { %v3664_v56 = vmax.f32 %v3663_v61, 0.0  ;;  %v3749_v61 = vsub.f32 %v4501_v24, %v3735_v16  ;;  %v3752_v2 = vsub.f32 %v4506_v21, %v3735_v16  ;;  %v3753_v7 = vsub.f32 %v4509_v0, %v3735_v16 }
 0x256   : > { %v3754_v35 = vsub.f32 %v4510_v36, %v3735_v16  ;;  %v3755_v23 = vsub.f32 %v4513_v50, %v3735_v16  ;;  %v3757_v12 = vsub.f32 %v4517_v39, %v3735_v16  ;;  %v3758_v34 = vsub.f32 %v4518_v46, %v3735_v16 }
 0x257   : > { %v3665_v18 = vadd.f32 1e-05, %v3664_v56  ;;  %v3756_v56 = vsub.f32 %v4514_v32, %v3735_v16  ;;  %v3759_v62 = vsub.f32 %v4521_v27, %v3735_v16  ;;  %v3760_v6 = vsub.f32 %v4522_v38, %v3735_v16 }
 0x258   : > { %v3761_v29 = vsub.f32 %v4525_v42, %v3735_v16  ;;  %v3762_v11 = vsub.f32 %v4526_v19, %v3735_v16  ;;  %v3763_v8 = vsub.f32 %v4529_v41, %v3735_v16  ;;  %v3764_v10 = vsub.f32 %v4530_v43, %v3735_v16 }
 0x259   : > { %5096 = vrsqrt.f32 %v3665_v18  ;;  %v3765_v55 = vsub.f32 %v4533_v48, %v3735_v16  ;;  %v3766_v14 = vsub.f32 %v4534_v20, %v3735_v16  ;;  %v3767_v9 = vsub.f32 %v4537_v45, %v3735_v16 }
 0x25a   : > { %v3768_v44 = vsub.f32 %v4538_v59, %v3735_v16 }
 0x263   : > { %v5097_v5 = vpop.eup %5096 }
 0x264   : > { %v3773_v28 = vrot.slane %v5097_v5, %v3734_v1 }
 0x266   : > { %v6093_v18 = vmul.f32 %v3773_v28, %v3737_v47  ;;  %v6095_v4 = vmul.f32 %v3773_v28, %v3738_v49  ;;  %v6097_v63 = vmul.f32 %v3773_v28, %v3739_v25  ;;  %v6099_v21 = vmul.f32 %v3773_v28, %v3740_v15 }
 0x267   : > { %v6101_v24 = vmul.f32 %v3773_v28, %v3741_v51  ;;  %v6103_v22 = vmul.f32 %v3773_v28, %v3742_v37  ;;  %v6105_v3 = vmul.f32 %v3773_v28, %v3743_v54  ;;  %v6107_v33 = vmul.f32 %v3773_v28, %v3744_v60 }
 0x268   : > { %v6109_v1 = vmul.f32 %v3773_v28, %v3745_v57  ;;  %v6111_v40 = vmul.f32 %v3773_v28, %v3746_v26  ;;  %v6113_v50 = vmul.f32 %v3773_v28, %v3747_v13  ;;  %v6115_v52 = vmul.f32 %v3773_v28, %v3748_v58 }
 0x269   : > { %v6117_v31 = vmul.f32 %v3773_v28, %v3749_v61  ;;  %v6119_v16 = vmul.f32 %v3773_v28, %v3750_v53  ;;  %v6121_v32 = vmul.f32 %v3773_v28, %v3751_v30  ;;  %v6123_v0 = vmul.f32 %v3773_v28, %v3752_v2 }
 0x26a   : > { %v6125_v36 = vmul.f32 %v3773_v28, %v3753_v7  ;;  %v6127_v27 = vmul.f32 %v3773_v28, %v3754_v35  ;;  %v6129_v17 = vmul.f32 %v3773_v28, %v3755_v23  ;;  %v6131_v38 = vmul.f32 %v3773_v28, %v3756_v56 }
 0x26b   : > { %v6133_v39 = vmul.f32 %v3773_v28, %v3757_v12  ;;  %v6135_v46 = vmul.f32 %v3773_v28, %v3758_v34  ;;  %v6137_v41 = vmul.f32 %v3773_v28, %v3759_v62  ;;  %v6139_v43 = vmul.f32 %v3773_v28, %v3760_v6 }
 0x26c   : > { %v6141_v42 = vmul.f32 %v3773_v28, %v3761_v29  ;;  %v6143_v19 = vmul.f32 %v3773_v28, %v3762_v11  ;;  %v6145_v45 = vmul.f32 %v3773_v28, %v3763_v8  ;;  %v6147_v59 = vmul.f32 %v3773_v28, %v3764_v10 }
 0x26d   : > { %v6149_v48 = vmul.f32 %v3773_v28, %v3765_v55  ;;  %v6151_v20 = vmul.f32 %v3773_v28, %v3766_v14  ;;  %v6153_v47 = vmul.f32 %v3773_v28, %v3767_v9  ;;  %v6155_v49 = vmul.f32 %v3773_v28, %v3768_v44 }
 0x26e   : > { %v3807_v25 = vmax.f32 %v6093_v18, 0.0  ;;  %v3808_v15 = vmax.f32 %v6095_v4, 0.0  ;;  %v3809_v51 = vmax.f32 %v6097_v63, 0.0  ;;  %v3810_v37 = vmax.f32 %v6099_v21, 0.0 }
 0x26f   : > { %v3811_v54 = vmax.f32 %v6101_v24, 0.0  ;;  %v3812_v60 = vmax.f32 %v6103_v22, 0.0  ;;  %v3813_v57 = vmax.f32 %v6105_v3, 0.0  ;;  %v3814_v26 = vmax.f32 %v6107_v33, 0.0 }
 0x270   : > { %v3815_v13 = vmax.f32 %v6109_v1, 0.0  ;;  %v3816_v58 = vmax.f32 %v6111_v40, 0.0  ;;  %v3817_v61 = vmax.f32 %v6113_v50, 0.0  ;;  %v3818_v53 = vmax.f32 %v6115_v52, 0.0 }
 0x271   : > { %v3819_v30 = vmax.f32 %v6117_v31, 0.0  ;;  %v3820_v2 = vmax.f32 %v6119_v16, 0.0  ;;  %v3821_v7 = vmax.f32 %v6121_v32, 0.0  ;;  %v3822_v35 = vmax.f32 %v6123_v0, 0.0 }
 0x272   : > { %v3823_v23 = vmax.f32 %v6125_v36, 0.0  ;;  %v3824_v56 = vmax.f32 %v6127_v27, 0.0  ;;  %v3825_v12 = vmax.f32 %v6129_v17, 0.0  ;;  %v3826_v5 = vmax.f32 %v6131_v38, 0.0 }
 0x273   : > { %v3827_v34 = vmax.f32 %v6133_v39, 0.0  ;;  %v3828_v62 = vmax.f32 %v6135_v46, 0.0  ;;  %v3829_v6 = vmax.f32 %v6137_v41, 0.0  ;;  %v3830_v29 = vmax.f32 %v6139_v43, 0.0 }
 0x274   : > { %v3831_v11 = vmax.f32 %v6141_v42, 0.0  ;;  %v3832_v8 = vmax.f32 %v6143_v19, 0.0  ;;  %v3833_v10 = vmax.f32 %v6145_v45, 0.0  ;;  %v3834_v28 = vmax.f32 %v6147_v59, 0.0 }
 0x275   : > { %v3835_v55 = vmax.f32 %v6149_v48, 0.0  ;;  %v3836_v14 = vmax.f32 %v6151_v20, 0.0  ;;  %v3837_v9 = vmax.f32 %v6153_v47, 0.0  ;;  %v3838_v44 = vmax.f32 %v6155_v49, 0.0 }
 0x276   : > { %v4443_v18 = vpack.c.bf16 %v3807_v25, %v3807_v25  ;;  %v4444_v4 = vpack.c.bf16 %v3808_v15, %v3808_v15  ;;  %v4445_v63 = vpack.c.bf16 %v3809_v51, %v3809_v51  ;;  %v4446_v21 = vpack.c.bf16 %v3810_v37, %v3810_v37 }
 0x277   : > { %v4447_v24 = vpack.c.bf16 %v3811_v54, %v3811_v54  ;;  %v4448_v22 = vpack.c.bf16 %v3812_v60, %v3812_v60  ;;  %v4449_v3 = vpack.c.bf16 %v3813_v57, %v3813_v57  ;;  %v4450_v33 = vpack.c.bf16 %v3814_v26, %v3814_v26 }
 0x278   : > { %v4451_v1 = vpack.c.bf16 %v3815_v13, %v3815_v13  ;;  %v4452_v40 = vpack.c.bf16 %v3816_v58, %v3816_v58  ;;  %v4453_v50 = vpack.c.bf16 %v3817_v61, %v3817_v61  ;;  %v4454_v52 = vpack.c.bf16 %v3818_v53, %v3818_v53  ;;  %3967 = vst.msk [vmem:[%s5628_s24] sm:$0xf] %vm3620_vm4, %v4443_v18 }
 0x279   : > { %3968 = vst.msk [vmem:[%s5628_s24 + $0x4] sm:$0xf] %vm3620_vm4, %v4444_v4  ;;  %3969 = vst.msk [vmem:[%s5628_s24 + $0x8] sm:$0xf] %vm3620_vm4, %v4445_v63  ;;  %v4455_v31 = vpack.c.bf16 %v3819_v30, %v3819_v30  ;;  %v4456_v16 = vpack.c.bf16 %v3820_v2, %v3820_v2  ;;  %v4457_v32 = vpack.c.bf16 %v3821_v7, %v3821_v7 }
 0x27a   : > { %3970 = vst.msk [vmem:[%s5628_s24 + $0xc] sm:$0xf] %vm3620_vm4, %v4446_v21  ;;  %v4458_v0 = vpack.c.bf16 %v3822_v35, %v3822_v35  ;;  %3971 = vst.msk [vmem:[%s5628_s24 + $0x10] sm:$0xf] %vm3620_vm4, %v4447_v24  ;;  %v4459_v36 = vpack.c.bf16 %v3823_v23, %v3823_v23  ;;  %v4460_v27 = vpack.c.bf16 %v3824_v56, %v3824_v56 }
 0x27b   : > { %3972 = vst.msk [vmem:[%s5628_s24 + $0x14] sm:$0xf] %vm3620_vm4, %v4448_v22  ;;  %3973 = vst.msk [vmem:[%s5628_s24 + $0x18] sm:$0xf] %vm3620_vm4, %v4449_v3  ;;  %v4461_v17 = vpack.c.bf16 %v3825_v12, %v3825_v12  ;;  %v4462_v38 = vpack.c.bf16 %v3826_v5, %v3826_v5  ;;  %v4463_v39 = vpack.c.bf16 %v3827_v34, %v3827_v34 }
 0x27c   : > { %3974 = vst.msk [vmem:[%s5628_s24 + $0x1c] sm:$0xf] %vm3620_vm4, %v4450_v33  ;;  %3975 = vst.msk [vmem:[%s5628_s24 + $0x20] sm:$0xf] %vm3620_vm4, %v4451_v1  ;;  %v4464_v46 = vpack.c.bf16 %v3828_v62, %v3828_v62  ;;  %v4465_v41 = vpack.c.bf16 %v3829_v6, %v3829_v6  ;;  %v4466_v43 = vpack.c.bf16 %v3830_v29, %v3830_v29 }
 0x27d   : > { %3976 = vst.msk [vmem:[%s5628_s24 + $0x24] sm:$0xf] %vm3620_vm4, %v4452_v40  ;;  %3977 = vst.msk [vmem:[%s5628_s24 + $0x28] sm:$0xf] %vm3620_vm4, %v4453_v50  ;;  %v4467_v42 = vpack.c.bf16 %v3831_v11, %v3831_v11  ;;  %v4468_v19 = vpack.c.bf16 %v3832_v8, %v3832_v8  ;;  %v4469_v45 = vpack.c.bf16 %v3833_v10, %v3833_v10 }
 0x27e   : > { %3978 = vst.msk [vmem:[%s5628_s24 + $0x2c] sm:$0xf] %vm3620_vm4, %v4454_v52  ;;  %3979 = vst.msk [vmem:[%s5628_s24 + $0x30] sm:$0xf] %vm3620_vm4, %v4455_v31  ;;  %v4470_v59 = vpack.c.bf16 %v3834_v28, %v3834_v28  ;;  %v4471_v48 = vpack.c.bf16 %v3835_v55, %v3835_v55  ;;  %v4472_v20 = vpack.c.bf16 %v3836_v14, %v3836_v14 }
 0x27f   : > { %3980 = vst.msk [vmem:[%s5628_s24 + $0x34] sm:$0xf] %vm3620_vm4, %v4456_v16  ;;  %3981 = vst.msk [vmem:[%s5628_s24 + $0x38] sm:$0xf] %vm3620_vm4, %v4457_v32  ;;  %v4473_v47 = vpack.c.bf16 %v3837_v9, %v3837_v9  ;;  %v4474_v49 = vpack.c.bf16 %v3838_v44, %v3838_v44 }
 0x280   : > { %3982 = vst.msk [vmem:[%s5628_s24 + $0x3c] sm:$0xf] %vm3620_vm4, %v4458_v0  ;;  %3983 = vst.msk [vmem:[%s5628_s24 + $0x40] sm:$0xf] %vm3620_vm4, %v4459_v36 }
 0x281   : > { %3984 = vst.msk [vmem:[%s5628_s24 + $0x44] sm:$0xf] %vm3620_vm4, %v4460_v27  ;;  %3985 = vst.msk [vmem:[%s5628_s24 + $0x48] sm:$0xf] %vm3620_vm4, %v4461_v17 }
 0x282   : > { %3986 = vst.msk [vmem:[%s5628_s24 + $0x4c] sm:$0xf] %vm3620_vm4, %v4462_v38  ;;  %3987 = vst.msk [vmem:[%s5628_s24 + $0x50] sm:$0xf] %vm3620_vm4, %v4463_v39 }
 0x283   : > { %3988 = vst.msk [vmem:[%s5628_s24 + $0x54] sm:$0xf] %vm3620_vm4, %v4464_v46  ;;  %3989 = vst.msk [vmem:[%s5628_s24 + $0x58] sm:$0xf] %vm3620_vm4, %v4465_v41 }
 0x284   : > { %3990 = vst.msk [vmem:[%s5628_s24 + $0x5c] sm:$0xf] %vm3620_vm4, %v4466_v43  ;;  %3991 = vst.msk [vmem:[%s5628_s24 + $0x60] sm:$0xf] %vm3620_vm4, %v4467_v42 }
 0x285   : > { %3992 = vst.msk [vmem:[%s5628_s24 + $0x64] sm:$0xf] %vm3620_vm4, %v4468_v19  ;;  %3993 = vst.msk [vmem:[%s5628_s24 + $0x68] sm:$0xf] %vm3620_vm4, %v4469_v45 }
 0x286   : > { %3994 = vst.msk [vmem:[%s5628_s24 + $0x6c] sm:$0xf] %vm3620_vm4, %v4470_v59  ;;  %3995 = vst.msk [vmem:[%s5628_s24 + $0x70] sm:$0xf] %vm3620_vm4, %v4471_v48 }
 0x287   : > { %3996 = vst.msk [vmem:[%s5628_s24 + $0x74] sm:$0xf] %vm3620_vm4, %v4472_v20  ;;  %3997 = vst.msk [vmem:[%s5628_s24 + $0x78] sm:$0xf] %vm3620_vm4, %v4473_v47 }
 0x288   : > { %3998 = vst.msk [vmem:[%s5628_s24 + $0x7c] sm:$0xf] %vm3620_vm4, %v4474_v49 }
 0x289 PF: > { %s12_s11 = sadd.s32 1, %s5120_s11   ;;  %s6265_s9 = smov %s5116_s10 }
 0x28a   : > { %p9_p5 = scmp.ge.s32.totalorder %s12_s11, 4   ;;  %s6266_s10 = smov %s6268_s12 }
 0x28c   :  { %11 = sbr.rel (!%p9_p5) target bundleno = 2 (0x2), region = 73 }

</bundles_post_ra>
